<compile_context>
chip_gen: v7x
topology: tpu7x:2x2x1
jax: 0.10.0
libtpu: 0.0.40
codegen_flags: <defaults>
</compile_context>

<pallas_src>
import functools

import jax
import jax.numpy as jnp
from jax.experimental import pallas as pl
from jax.experimental.pallas import tpu as pltpu


def _leaky(x, alpha):
    return jnp.where(x > 0, x, alpha * x)


def _elu(x):
    return jnp.where(x > 0, x, jnp.exp(jnp.minimum(x, 0.0)) - 1.0)


def _tanh_cols_from(start):
    """Post-activation: tanh on columns >= start, identity elsewhere."""
    def post(y):
        cols = jax.lax.broadcasted_iota(jnp.int32, y.shape, 1)
        return jnp.where(cols >= start, jnp.tanh(y), y)
    return post


# --------------------------------------------------------------------------
# Generic batched dense kernel:  y = post(x @ W + b)   (whole arrays, no grid)
# --------------------------------------------------------------------------
def _dense_kernel(x_ref, w_ref, b_ref, o_ref, *, post):
    y = jnp.dot(x_ref[...], w_ref[...], preferred_element_type=jnp.float32) + b_ref[...]
    o_ref[...] = post(y)


def dense(x, w, b, post=None):
    if post is None:
        post = lambda y: y
    M, Dout = x.shape[0], w.shape[1]
    return pl.pallas_call(
        functools.partial(_dense_kernel, post=post),
        out_shape=jax.ShapeDtypeStruct((M, Dout), jnp.float32),
    )(x, w, b)


# --------------------------------------------------------------------------
# Fused comp_gat kernel (one batch item per grid step, all heads + gat_out + W_comp)
# --------------------------------------------------------------------------
def _comp_gat_kernel(h_ref, adj_ref, wcat_ref, a1c_ref, a2c_ref,
                     wout_ref, ao1_ref, ao2_ref, wcomp_ref, bcomp_ref,
                     o_ref, *, num_head, gat_dim, alpha):
    h = h_ref[0]                                     # (Na, comp_dim)
    adj = adj_ref[0]                                 # (Na, Na)
    Na = h.shape[0]
    neg = jnp.float32(-9.0e15)

    def gat_attention(wh, a1, a2):
        # e[i,j] = leaky(a1.Wh[i] + a2.Wh[j]) ; masked softmax over j ; att @ Wh
        f1 = jnp.sum(wh * a1, axis=-1, keepdims=True)                          # (N, 1)
        f2 = jax.lax.dot_general(a2, wh, (((1,), (1,)), ((), ())),
                                 preferred_element_type=jnp.float32)            # (1, N)
        e = _leaky(f1 + f2, alpha)
        e = jnp.where(adj > 0, e, neg)
        e = e - jnp.max(e, axis=-1, keepdims=True)
        p = jnp.exp(e)
        att = p / jnp.sum(p, axis=-1, keepdims=True)
        return jnp.dot(att, wh, preferred_element_type=jnp.float32)

    # One matmul for all heads: h @ [W_0 | ... | W_{H-1}]
    wh_all = jnp.dot(h, wcat_ref[...], preferred_element_type=jnp.float32)      # (Na, H*gd)
    a1c = a1c_ref[...]
    a2c = a2c_ref[...]
    wout = wout_ref[...]                                                        # (H*gd, comp_dim)
    comp_dim = wout.shape[1]

    # multi_head = cat_h elu(head_h);  gat_out's first matmul folded in:
    #   multi_head @ W_out == sum_h elu(head_h) @ W_out[h*gd:(h+1)*gd, :]
    wh2 = jnp.zeros((Na, comp_dim), jnp.float32)
    for hd in range(num_head):
        lo, hi = hd * gat_dim, (hd + 1) * gat_dim
        wh_h = jax.lax.slice(wh_all, (0, lo), (Na, hi))
        a1_h = jax.lax.slice(a1c, (0, lo), (1, hi))
        a2_h = jax.lax.slice(a2c, (0, lo), (1, hi))
        head = _elu(gat_attention(wh_h, a1_h, a2_h))                            # concat=True -> ELU
        wh2 = wh2 + jnp.dot(head, jax.lax.slice(wout, (lo, 0), (hi, comp_dim)),
                            preferred_element_type=jnp.float32)

    # gat_out attention (concat=False), then F.elu (applied in comp_gat), then W_comp.
    hp = _elu(gat_attention(wh2, ao1_ref[...], ao2_ref[...]))                   # (Na, comp_dim)
    o_ref[0] = _leaky(jnp.dot(hp, wcomp_ref[...], preferred_element_type=jnp.float32)
                      + bcomp_ref[...], alpha)


def comp_gat(h, adj, wcat, a1c, a2c, wout, ao1, ao2, wcomp, bcomp, *,
             num_head, gat_dim, alpha):
    B, Na, comp_dim = h.shape
    HG = num_head * gat_dim
    L = wcomp.shape[1]
    return pl.pallas_call(
        functools.partial(_comp_gat_kernel, num_head=num_head, gat_dim=gat_dim, alpha=alpha),
        grid=(B,),
        in_specs=[
            pl.BlockSpec((1, Na, comp_dim), lambda b: (b, 0, 0)),
            pl.BlockSpec((1, Na, Na), lambda b: (b, 0, 0)),
            pl.BlockSpec((comp_dim, HG), lambda b: (0, 0)),
            pl.BlockSpec((1, HG), lambda b: (0, 0)),
            pl.BlockSpec((1, HG), lambda b: (0, 0)),
            pl.BlockSpec((HG, comp_dim), lambda b: (0, 0)),
            pl.BlockSpec((1, comp_dim), lambda b: (0, 0)),
            pl.BlockSpec((1, comp_dim), lambda b: (0, 0)),
            pl.BlockSpec((comp_dim, L), lambda b: (0, 0)),
            pl.BlockSpec((1, L), lambda b: (0, 0)),
        ],
        out_specs=pl.BlockSpec((1, Na, L), lambda b: (b, 0, 0)),
        out_shape=jax.ShapeDtypeStruct((B, Na, L), jnp.float32),
        compiler_params=pltpu.CompilerParams(dimension_semantics=("parallel",)),
    )(h, adj, wcat, a1c, a2c, wout, ao1, ao2, wcomp, bcomp)


# --------------------------------------------------------------------------
# 1-in/1-out channel "same" Conv2d + leaky ReLU, whole batch in one grid step
# --------------------------------------------------------------------------
def _conv_kernel(xpad_ref, w_ref, b_ref, o_ref, *, K, Bn, Ls, D, alpha):
    x = xpad_ref[...]                                 # (Bn, Ls+K-1, D+K-1)
    acc = jnp.zeros((Bn, Ls, D), jnp.float32)
    for p in range(K):
        for q in range(K):
            acc = acc + w_ref[p, q] * jax.lax.slice(x, (0, p, q), (Bn, p + Ls, q + D))
    o_ref[...] = _leaky(acc + b_ref[0, 0], alpha)


def conv_same_1ch(x, w, b, window, alpha):
    Bn, Ls, D = x.shape
    K = 2 * window + 1
    xpad = jnp.pad(x, ((0, 0), (window, window), (window, window)))
    return pl.pallas_call(
        functools.partial(_conv_kernel, K=K, Bn=Bn, Ls=Ls, D=D, alpha=alpha),
        in_specs=[pl.BlockSpec(memory_space=pltpu.MemorySpace.VMEM),
                  pl.BlockSpec(memory_space=pltpu.MemorySpace.SMEM),
                  pl.BlockSpec(memory_space=pltpu.MemorySpace.SMEM)],
        out_shape=jax.ShapeDtypeStruct((Bn, Ls, D), jnp.float32),
    )(xpad, w, b)


# --------------------------------------------------------------------------
# Fused bidirectional attention: all bidat_num iterations in one per-batch kernel.
# Row-wise projections (avU, tp, tc, hc, hp) are precomputed by the grouped dense
# calls and delivered pre-transposed as (B, n_blocks, seq, L) so the kernel only
# does leading-dim indexing (no lane slicing).
# --------------------------------------------------------------------------
def _bidat_kernel(av_ref, pv_ref, amc_ref, pmr_ref, pmc_ref, avp_ref, pvp_ref,
                  wac1_ref, wac2_ref, bac_ref, wap1_ref, wap2_ref, bap_ref,
                  cf_ref, pf_ref, *, bidat_num):
    av = av_ref[0]           # (Na, L)
    pv = pv_ref[0]           # (Np, L)
    amc = amc_ref[0]         # (Na, 1)
    pmr = pmr_ref[0]         # (1, Np)
    pmc = pmc_ref[0]         # (Np, 1)
    mask2 = amc * pmr        # (Na, Np)

    for i in range(bidat_num):
        avU = avp_ref[0, i]                      # (Na, L)  atoms @ U[i]
        tc = avp_ref[0, bidat_num + i]           # (Na, L)  tanh(transform_c2p[i](atoms))
        hc = avp_ref[0, 2 * bidat_num + i]       # (Na, L)  tanh(bihidden_c[i](atoms))
        tp = pvp_ref[0, i]                       # (Np, L)  tanh(transform_p2c[i](amino))
        hp = pvp_ref[0, bidat_num + i]           # (Np, L)  tanh(bihidden_p[i](amino))

        A = jnp.tanh(jax.lax.dot_general(avU, pv, (((1,), (1,)), ((), ())),
                                         preferred_element_type=jnp.float32))   # (Na, Np)
        A = A * mask2
        atoms_trans = jnp.dot(A, tp, preferred_element_type=jnp.float32)         # (Na, L)
        amino_trans = jax.lax.dot_general(A, tc, (((0,), (0,)), ((), ())),
                                          preferred_element_type=jnp.float32)    # (Np, L)

        logit_c = (jnp.sum(hc * wac1_ref[i], axis=-1, keepdims=True)
                   + jnp.sum(atoms_trans * wac2_ref[i], axis=-1, keepdims=True)
                   + bac_ref[i])                                                 # (Na, 1)
        logit_p = (jnp.sum(hp * wap1_ref[i], axis=-1, keepdims=True)
                   + jnp.sum(amino_trans * wap2_ref[i], axis=-1, keepdims=True)
                   + bap_ref[i])                                                 # (Np, 1)

        # mask_softmax exactly as in the PyTorch reference (max over ALL logits).
        ec = jnp.exp(logit_c - jnp.max(logit_c, axis=0, keepdims=True)) * amc
        ac = ec / (jnp.sum(ec, axis=0, keepdims=True) + 1e-6)
        ep = jnp.exp(logit_p - jnp.max(logit_p, axis=0, keepdims=True)) * pmc
        ap = ep / (jnp.sum(ep, axis=0, keepdims=True) + 1e-6)

        cf_ref[0, i:i + 1, :] = jnp.sum(av * ac, axis=0, keepdims=True)          # (1, L)
        pf_ref[0, i:i + 1, :] = jnp.sum(pv * ap, axis=0, keepdims=True)          # (1, L)


def bidat_fused(av, pv, amc, pmr, pmc, av_proj, pv_proj,
                wac1, wac2, bac, wap1, wap2, bap, *, bidat_num):
    B, Na, L = av.shape
    Np = pv.shape[1]
    return pl.pallas_call(
        functools.partial(_bidat_kernel, bidat_num=bidat_num),
        grid=(B,),
        in_specs=[
            pl.BlockSpec((1, Na, L), lambda b: (b, 0, 0)),
            pl.BlockSpec((1, Np, L), lambda b: (b, 0, 0)),
            pl.BlockSpec((1, Na, 1), lambda b: (b, 0, 0)),
            pl.BlockSpec((1, 1, Np), lambda b: (b, 0, 0)),
            pl.BlockSpec((1, Np, 1), lambda b: (b, 0, 0)),
            pl.BlockSpec((1, 3 * bidat_num, Na, L), lambda b: (b, 0, 0, 0)),
            pl.BlockSpec((1, 2 * bidat_num, Np, L), lambda b: (b, 0, 0, 0)),
            # constant index maps -> weights stay resident in VMEM across grid steps
            pl.BlockSpec((bidat_num, 1, L), lambda b: (0, 0, 0)),
            pl.BlockSpec((bidat_num, 1, L), lambda b: (0, 0, 0)),
            pl.BlockSpec((bidat_num, 1, 1), lambda b: (0, 0, 0)),
            pl.BlockSpec((bidat_num, 1, L), lambda b: (0, 0, 0)),
            pl.BlockSpec((bidat_num, 1, L), lambda b: (0, 0, 0)),
            pl.BlockSpec((bidat_num, 1, 1), lambda b: (0, 0, 0)),
        ],
        out_specs=[pl.BlockSpec((1, bidat_num, L), lambda b: (b, 0, 0)),
                   pl.BlockSpec((1, bidat_num, L), lambda b: (b, 0, 0))],
        out_shape=(jax.ShapeDtypeStruct((B, bidat_num, L), jnp.float32),
                   jax.ShapeDtypeStruct((B, bidat_num, L), jnp.float32)),
        compiler_params=pltpu.CompilerParams(dimension_semantics=("parallel",)),
    )(av, pv, amc, pmr, pmc, av_proj, pv_proj, wac1, wac2, bac, wap1, wap2, bap)


# --------------------------------------------------------------------------
# Fused MLP tail: fp0/fp1 super-feature + comb_c + comb_p + W_out stack + output.
# The concat [comb_c(cat_cf) | sf | comb_p(cat_pf) | 1/T | T] is folded into
# row-split matmuls against W_out[0] (no in-kernel concatenation needed).
# --------------------------------------------------------------------------
def _tail_kernel(cat_cf_ref, cat_pf_ref, fps_ref, it_ref, t_ref,
                 fp0_ref, fp1_ref, cc_w_ref, cc_b_ref, cp_w_ref, cp_b_ref,
                 w0cf_ref, w0sf_ref, w0pf_ref, w0it_ref, w0t_ref, b0_ref,
                 *rest, n_rest, alpha):
    out_w_ref = rest[2 * n_rest]
    out_b_ref = rest[2 * n_rest + 1]
    o_ref = rest[2 * n_rest + 2]
    f32 = jnp.float32

    sf = _leaky(jnp.dot(fps_ref[...], fp0_ref[...], preferred_element_type=f32), 0.1)
    sf = _leaky(jnp.dot(sf, fp1_ref[...], preferred_element_type=f32), 0.1)

    cf_comb = jnp.dot(cat_cf_ref[...], cc_w_ref[...], preferred_element_type=f32) + cc_b_ref[...]
    pf_final = jnp.dot(cat_pf_ref[...], cp_w_ref[...], preferred_element_type=f32) + cp_b_ref[...]

    y = (jnp.dot(cf_comb, w0cf_ref[...], preferred_element_type=f32)
         + jnp.dot(sf, w0sf_ref[...], preferred_element_type=f32)
         + jnp.dot(pf_final, w0pf_ref[...], preferred_element_type=f32)
         + it_ref[...] * w0it_ref[...]
         + t_ref[...] * w0t_ref[...]
         + b0_ref[...])
    y = _leaky(y, alpha)
    for j in range(n_rest):
        y = _leaky(jnp.dot(y, rest[2 * j][...], preferred_element_type=f32)
                   + rest[2 * j + 1][...], alpha)
    o_ref[...] = jnp.sum(y * out_w_ref[...], axis=-1, keepdims=True) + out_b_ref[...]


def tail_mlp(cat_cf, cat_pf, fps, invT, T, p, *, layer_out, alpha, latent_dim):
    B = cat_cf.shape[0]
    L = latent_dim
    W0 = p['W_out_w'][0]
    args = [cat_cf, cat_pf, fps, invT, T,
            p['fp0'], p['fp1'],
            p['comb_c_w'], p['comb_c_b'], p['comb_p_w'], p['comb_p_b'],
            W0[:L], W0[L:2 * L], W0[2 * L:3 * L],
            W0[3 * L:3 * L + 1], W0[3 * L + 1:3 * L + 2], p['W_out_b'][0]]
    rest = []
    for j in range(1, layer_out):
        rest += [p['W_out_w'][j], p['W_out_b'][j]]
    args = args + rest + [p['output_w'], p['output_b']]
    return pl.pallas_call(
        functools.partial(_tail_kernel, n_rest=layer_out - 1, alpha=alpha),
        out_shape=jax.ShapeDtypeStruct((B, 1), jnp.float32),
    )(*args)


# --------------------------------------------------------------------------
# Full DLTKcat forward
# --------------------------------------------------------------------------
def dltkcat_forward(params, atoms, atoms_mask, adjacency, amino, amino_mask,
                    fps, inv_Temp, Temp, *, alpha, window, layer_cnn, layer_out,
                    num_head, latent_dim, bidat_num=4):
    assert layer_out >= 1
    B, Na = atoms.shape
    Np = amino.shape[1]
    L = latent_dim
    comp_dim = params['emb_atom'].shape[1]
    gat_dim = params['gat_W'][0].shape[1]

    # ---- comp_gat (embedding gather in XLA, rest fused in one kernel) ----
    atoms_emb = jnp.take(params['emb_atom'], atoms, axis=0)              # (B, Na, comp_dim)
    wcat = jnp.concatenate(params['gat_W'], axis=1)                       # (comp_dim, H*gd)
    a1c = jnp.concatenate([a[:gat_dim, 0] for a in params['gat_a']]).reshape(1, -1)
    a2c = jnp.concatenate([a[gat_dim:, 0] for a in params['gat_a']]).reshape(1, -1)
    ao1 = params['gat_out_a'][:comp_dim, 0].reshape(1, comp_dim)
    ao2 = params['gat_out_a'][comp_dim:, 0].reshape(1, comp_dim)
    atoms_vector = comp_gat(atoms_emb, adjacency, wcat, a1c, a2c,
                            params['gat_out_W'], ao1, ao2,
                            params['W_comp_w'], params['W_comp_b'],
                            num_head=num_head, gat_dim=gat_dim, alpha=alpha)   # (B, Na, L)

    # ---- prot_cnn: whole-batch conv layers + batched W_prot dense ----
    amino_vector = jnp.take(params['emb_amino'], amino, axis=0)           # (B, Np, prot_dim)
    for i in range(layer_cnn):
        amino_vector = conv_same_1ch(amino_vector, params['conv_w'][i],
                                     params['conv_b'][i], window, alpha)
    prot_dim = amino_vector.shape[2]
    amino_vector = dense(amino_vector.reshape(B * Np, prot_dim),
                         params['W_prot_w'], params['W_prot_b'],
                         post=lambda y: _leaky(y, alpha)).reshape(B, Np, L)

    # ---- grouped bidat projections (batch folded into M, lane-dense 384/256 outputs) ----
    av_w = jnp.concatenate(list(params['U']) + list(params['tc2p_w'])
                           + list(params['bhc_w']), axis=1)                # (L, 12L)
    av_b = jnp.concatenate([jnp.zeros((1, bidat_num * L), jnp.float32)]
                           + list(params['tc2p_b']) + list(params['bhc_b']), axis=1)
    pv_w = jnp.concatenate(list(params['tp2c_w']) + list(params['bhp_w']), axis=1)  # (L, 8L)
    pv_b = jnp.concatenate(list(params['tp2c_b']) + list(params['bhp_b']), axis=1)

    av_proj = dense(atoms_vector.reshape(B * Na, L), av_w, av_b,
                    post=_tanh_cols_from(bidat_num * L))                   # (B*Na, 12L)
    pv_proj = dense(amino_vector.reshape(B * Np, L), pv_w, pv_b, post=jnp.tanh)

    av_proj = av_proj.reshape(B, Na, 3 * bidat_num, L).transpose(0, 2, 1, 3)  # (B, 12, Na, L)
    pv_proj = pv_proj.reshape(B, Np, 2 * bidat_num, L).transpose(0, 2, 1, 3)  # (B, 8,  Np, L)

    wac1 = jnp.stack(params['battc_w1'])   # (bidat, 1, L)
    wac2 = jnp.stack(params['battc_w2'])
    bac = jnp.stack(params['battc_b'])     # (bidat, 1, 1)
    wap1 = jnp.stack(params['battp_w1'])
    wap2 = jnp.stack(params['battp_w2'])
    bap = jnp.stack(params['battp_b'])

    amc = atoms_mask.reshape(B, Na, 1)
    pmr = amino_mask.reshape(B, 1, Np)
    pmc = amino_mask.reshape(B, Np, 1)

    cf, pf = bidat_fused(atoms_vector, amino_vector, amc, pmr, pmc,
                         av_proj, pv_proj, wac1, wac2, bac, wap1, wap2, bap,
                         bidat_num=bidat_num)
    cat_cf = cf.reshape(B, bidat_num * L)
    cat_pf = pf.reshape(B, bidat_num * L)

    # ---- fused MLP tail ----
    return tail_mlp(cat_cf, cat_pf, fps, inv_Temp.reshape(B, 1), Temp.reshape(B, 1),
                    params, layer_out=layer_out, alpha=alpha, latent_dim=L)


# --------------------------------------------------------------------------
# Deterministic synthetic parameter initialization
# --------------------------------------------------------------------------
def init_params(key, *, n_atom, n_amino, comp_dim, prot_dim, gat_dim, num_head,
                window, layer_cnn, latent_dim, layer_out, bidat_num=4):
    cnt = [0]

    def nrm(shape, scale=0.2):
        cnt[0] += 1
        return scale * jax.random.normal(jax.random.fold_in(key, cnt[0]), shape, dtype=jnp.float32)

    K = 2 * window + 1
    L = latent_dim
    p = {
        'emb_atom': nrm((n_atom + 1, comp_dim)),
        'emb_amino': nrm((n_amino + 1, prot_dim)),
        'gat_W': [nrm((comp_dim, gat_dim)) for _ in range(num_head)],
        'gat_a': [nrm((2 * gat_dim, 1)) for _ in range(num_head)],
        'gat_out_W': nrm((gat_dim * num_head, comp_dim)),
        'gat_out_a': nrm((2 * comp_dim, 1)),
        'W_comp_w': nrm((comp_dim, L)), 'W_comp_b': nrm((1, L)),
        'conv_w': [nrm((K, K)) for _ in range(layer_cnn)],
        'conv_b': [nrm((1, 1)) for _ in range(layer_cnn)],
        'W_prot_w': nrm((prot_dim, L)), 'W_prot_b': nrm((1, L)),
        'fp0': nrm((1024, L), 0.05), 'fp1': nrm((L, L)),
        'U': [nrm((L, L)) for _ in range(bidat_num)],
        'tp2c_w': [nrm((L, L)) for _ in range(bidat_num)],
        'tp2c_b': [nrm((1, L)) for _ in range(bidat_num)],
        'tc2p_w': [nrm((L, L)) for _ in range(bidat_num)],
        'tc2p_b': [nrm((1, L)) for _ in range(bidat_num)],
        'bhc_w': [nrm((L, L)) for _ in range(bidat_num)],
        'bhc_b': [nrm((1, L)) for _ in range(bidat_num)],
        'bhp_w': [nrm((L, L)) for _ in range(bidat_num)],
        'bhp_b': [nrm((1, L)) for _ in range(bidat_num)],
        'battc_w1': [nrm((1, L)) for _ in range(bidat_num)],
        'battc_w2': [nrm((1, L)) for _ in range(bidat_num)],
        'battc_b': [nrm((1, 1)) for _ in range(bidat_num)],
        'battp_w1': [nrm((1, L)) for _ in range(bidat_num)],
        'battp_w2': [nrm((1, L)) for _ in range(bidat_num)],
        'battp_b': [nrm((1, 1)) for _ in range(bidat_num)],
        'comb_c_w': nrm((L * bidat_num, L)), 'comb_c_b': nrm((1, L)),
        'comb_p_w': nrm((L * bidat_num, L)), 'comb_p_b': nrm((1, L)),
        'W_out_w': [nrm((3 * L + 2, 3 * L + 2)) for _ in range(layer_out)],
        'W_out_b': [nrm((1, 3 * L + 2)) for _ in range(layer_out)],
        'output_w': nrm((1, 3 * L + 2)),   # row layout for the final 1-dim projection
        'output_b': nrm((1, 1)),
    }
    return p


if __name__ == "__main__":
    # Small, module-consistent shapes
    B, Na, Np = 2, 8, 16
    n_atom, n_amino = 10, 20
    comp_dim = prot_dim = 16
    gat_dim, num_head = 8, 2          # gat_dim * num_head == comp_dim feeds gat_out
    window, layer_cnn = 2, 2          # conv kernel 5x5, same padding
    latent_dim, layer_out = 32, 2
    alpha = 0.2

    params = init_params(jax.random.PRNGKey(0),
                         n_atom=n_atom, n_amino=n_amino, comp_dim=comp_dim,
                         prot_dim=prot_dim, gat_dim=gat_dim, num_head=num_head,
                         window=window, layer_cnn=layer_cnn,
                         latent_dim=latent_dim, layer_out=layer_out)

    dk = jax.random.split(jax.random.PRNGKey(0), 8)
    atoms = jax.random.randint(dk[0], (B, Na), 0, n_atom + 1, dtype=jnp.int32)
    amino = jax.random.randint(dk[1], (B, Np), 0, n_amino + 1, dtype=jnp.int32)
    atoms_mask = (jax.random.uniform(dk[2], (B, Na)) > 0.2).astype(jnp.float32)
    amino_mask = (jax.random.uniform(dk[3], (B, Np)) > 0.2).astype(jnp.float32)
    adjacency = (jax.random.uniform(dk[4], (B, Na, Na)) > 0.5).astype(jnp.float32)
    adjacency = jnp.maximum(adjacency, jnp.eye(Na, dtype=jnp.float32)[None])
    fps = (jax.random.uniform(dk[5], (B, 1024)) > 0.5).astype(jnp.float32)
    inv_Temp = jax.random.uniform(dk[6], (B, 1), minval=0.003, maxval=0.004).astype(jnp.float32)
    Temp = jax.random.uniform(dk[7], (B, 1), minval=290.0, maxval=320.0).astype(jnp.float32)

    fwd = jax.jit(functools.partial(dltkcat_forward,
                                    alpha=alpha, window=window, layer_cnn=layer_cnn,
                                    layer_out=layer_out, num_head=num_head,
                                    latent_dim=latent_dim))
    out = fwd(params, atoms, atoms_mask, adjacency, amino, amino_mask,
              fps, inv_Temp, Temp)
    out = jax.block_until_ready(out)
    assert out.shape == (B, 1) and jnp.all(jnp.isfinite(out))
    print("KERNEL_OK")
</pallas_src>

<mosaic_0001>
module attributes {stable_mosaic.version = 11 : i64} {
  func.func @_comp_gat_kernel(%arg0: i32, %arg1: memref<1x8x16xf32, #tpu.memory_space<vmem>>, %arg2: memref<1x8x8xf32, #tpu.memory_space<vmem>>, %arg3: memref<16x16xf32, #tpu.memory_space<vmem>>, %arg4: memref<1x16xf32, #tpu.memory_space<vmem>>, %arg5: memref<1x16xf32, #tpu.memory_space<vmem>>, %arg6: memref<16x16xf32, #tpu.memory_space<vmem>>, %arg7: memref<1x16xf32, #tpu.memory_space<vmem>>, %arg8: memref<1x16xf32, #tpu.memory_space<vmem>>, %arg9: memref<16x32xf32, #tpu.memory_space<vmem>>, %arg10: memref<1x32xf32, #tpu.memory_space<vmem>>, %arg11: memref<1x8x32xf32, #tpu.memory_space<vmem>>) attributes {dimension_semantics = [#tpu.dimension_semantics<parallel>], iteration_bounds = array<i64: 2>, scalar_prefetch = 0 : i64, scratch_operands = 0 : i64, tpu.core_type = #tpu.core_type<tc>, window_params = [{transform_indices = @transform_0, window_bounds = array<i64: 1, 8, 16>}, {transform_indices = @transform_1, window_bounds = array<i64: 1, 8, 8>}, {pipeline_mode = #tpu.pipeline_mode<synchronous>, transform_indices = @transform_2, window_bounds = array<i64: 16, 16>}, {pipeline_mode = #tpu.pipeline_mode<synchronous>, transform_indices = @transform_3, window_bounds = array<i64: 1, 16>}, {pipeline_mode = #tpu.pipeline_mode<synchronous>, transform_indices = @transform_4, window_bounds = array<i64: 1, 16>}, {pipeline_mode = #tpu.pipeline_mode<synchronous>, transform_indices = @transform_5, window_bounds = array<i64: 16, 16>}, {pipeline_mode = #tpu.pipeline_mode<synchronous>, transform_indices = @transform_6, window_bounds = array<i64: 1, 16>}, {pipeline_mode = #tpu.pipeline_mode<synchronous>, transform_indices = @transform_7, window_bounds = array<i64: 1, 16>}, {pipeline_mode = #tpu.pipeline_mode<synchronous>, transform_indices = @transform_8, window_bounds = array<i64: 16, 32>}, {pipeline_mode = #tpu.pipeline_mode<synchronous>, transform_indices = @transform_9, window_bounds = array<i64: 1, 32>}, {transform_indices = @transform_10, window_bounds = array<i64: 1, 8, 32>}]} {
    %c0 = arith.constant 0 : index
    %c0_0 = arith.constant 0 : index
    %c0_1 = arith.constant 0 : index
    %0 = vector.load %arg1[%c0, %c0_0, %c0_1] : memref<1x8x16xf32, #tpu.memory_space<vmem>>, vector<1x8x16xf32>
    %1 = vector.shape_cast %0 : vector<1x8x16xf32> to vector<8x16xf32>
    %c0_2 = arith.constant 0 : index
    %c0_3 = arith.constant 0 : index
    %c0_4 = arith.constant 0 : index
    %2 = vector.load %arg2[%c0_2, %c0_3, %c0_4] : memref<1x8x8xf32, #tpu.memory_space<vmem>>, vector<1x8x8xf32>
    %3 = vector.shape_cast %2 : vector<1x8x8xf32> to vector<8x8xf32>
    %c0_5 = arith.constant 0 : index
    %c0_6 = arith.constant 0 : index
    %4 = vector.load %arg3[%c0_5, %c0_6] : memref<16x16xf32, #tpu.memory_space<vmem>>, vector<16x16xf32>
    %cst = arith.constant dense<0.000000e+00> : vector<8x16xf32>
    %5 = tpu.matmul %1, %4, %cst {dimension_numbers = #tpu.dot_dimension_numbers<[1], [0], [0], [1], [0, 0, 1, 1], [], []>} : vector<8x16xf32>, vector<16x16xf32>, vector<8x16xf32> -> vector<8x16xf32>
    %c0_7 = arith.constant 0 : index
    %c0_8 = arith.constant 0 : index
    %6 = vector.load %arg4[%c0_7, %c0_8] : memref<1x16xf32, #tpu.memory_space<vmem>>, vector<1x16xf32>
    %c0_9 = arith.constant 0 : index
    %c0_10 = arith.constant 0 : index
    %7 = vector.load %arg5[%c0_9, %c0_10] : memref<1x16xf32, #tpu.memory_space<vmem>>, vector<1x16xf32>
    %c0_11 = arith.constant 0 : index
    %c0_12 = arith.constant 0 : index
    %8 = vector.load %arg6[%c0_11, %c0_12] : memref<16x16xf32, #tpu.memory_space<vmem>>, vector<16x16xf32>
    %cst_13 = arith.constant 0.000000e+00 : f32
    %9 = vector.broadcast %cst_13 : f32 to vector<8x16xf32>
    %10 = vector.extract_strided_slice %5 {offsets = [0, 0], sizes = [8, 8], strides = [1, 1]} : vector<8x16xf32> to vector<8x8xf32>
    %11 = vector.extract_strided_slice %6 {offsets = [0, 0], sizes = [1, 8], strides = [1, 1]} : vector<1x16xf32> to vector<1x8xf32>
    %12 = vector.extract_strided_slice %7 {offsets = [0, 0], sizes = [1, 8], strides = [1, 1]} : vector<1x16xf32> to vector<1x8xf32>
    %13 = vector.broadcast %11 : vector<1x8xf32> to vector<8x8xf32>
    %14 = arith.mulf %10, %13 : vector<8x8xf32>
    %cst_14 = arith.constant dense<0.000000e+00> : vector<8xf32>
    %15 = vector.multi_reduction <add>, %14, %cst_14 [1] : vector<8x8xf32> to vector<8xf32>
    %16 = vector.shape_cast %15 : vector<8xf32> to vector<8x1xf32>
    %cst_15 = arith.constant dense<0.000000e+00> : vector<1x8xf32>
    %17 = tpu.matmul %12, %10, %cst_15 {dimension_numbers = #tpu.dot_dimension_numbers<[1], [1], [0], [0], [0, 0, 1, 0], [], []>} : vector<1x8xf32>, vector<8x8xf32>, vector<1x8xf32> -> vector<1x8xf32>
    %18 = vector.broadcast %16 : vector<8x1xf32> to vector<8x8xf32>
    %19 = vector.broadcast %17 : vector<1x8xf32> to vector<8x8xf32>
    %20 = arith.addf %18, %19 : vector<8x8xf32>
    %cst_16 = arith.constant 0.000000e+00 : f32
    %21 = vector.broadcast %cst_16 : f32 to vector<8x8xf32>
    %22 = arith.cmpf ogt, %20, %21 : vector<8x8xf32>
    %cst_17 = arith.constant 2.000000e-01 : f32
    %23 = vector.broadcast %cst_17 : f32 to vector<8x8xf32>
    %24 = arith.mulf %23, %20 : vector<8x8xf32>
    %25 = arith.select %22, %20, %24 : vector<8x8xi1>, vector<8x8xf32>
    %cst_18 = arith.constant 0.000000e+00 : f32
    %26 = vector.broadcast %cst_18 : f32 to vector<8x8xf32>
    %27 = arith.cmpf ogt, %3, %26 : vector<8x8xf32>
    %cst_19 = arith.constant -9.000000e+15 : f32
    %28 = vector.broadcast %cst_19 : f32 to vector<8x8xf32>
    %29 = arith.select %27, %25, %28 : vector<8x8xi1>, vector<8x8xf32>
    %cst_20 = arith.constant dense<0xFF800000> : vector<8xf32>
    %30 = vector.multi_reduction <maximumf>, %29, %cst_20 [1] : vector<8x8xf32> to vector<8xf32>
    %31 = vector.shape_cast %30 : vector<8xf32> to vector<8x1xf32>
    %32 = vector.broadcast %31 : vector<8x1xf32> to vector<8x8xf32>
    %33 = arith.subf %29, %32 : vector<8x8xf32>
    %34 = math.exp %33 : vector<8x8xf32>
    %cst_21 = arith.constant dense<0.000000e+00> : vector<8xf32>
    %35 = vector.multi_reduction <add>, %34, %cst_21 [1] : vector<8x8xf32> to vector<8xf32>
    %36 = vector.shape_cast %35 : vector<8xf32> to vector<8x1xf32>
    %37 = vector.broadcast %36 : vector<8x1xf32> to vector<8x8xf32>
    %38 = arith.divf %34, %37 : vector<8x8xf32>
    %cst_22 = arith.constant dense<0.000000e+00> : vector<8x8xf32>
    %39 = tpu.matmul %38, %10, %cst_22 {dimension_numbers = #tpu.dot_dimension_numbers<[1], [0], [0], [1], [0, 0, 1, 1], [], []>} : vector<8x8xf32>, vector<8x8xf32>, vector<8x8xf32> -> vector<8x8xf32>
    %cst_23 = arith.constant 0.000000e+00 : f32
    %40 = vector.broadcast %cst_23 : f32 to vector<8x8xf32>
    %41 = arith.cmpf ogt, %39, %40 : vector<8x8xf32>
    %cst_24 = arith.constant 0.000000e+00 : f32
    %42 = vector.broadcast %cst_24 : f32 to vector<8x8xf32>
    %43 = arith.minimumf %39, %42 : vector<8x8xf32>
    %44 = math.exp %43 : vector<8x8xf32>
    %cst_25 = arith.constant 1.000000e+00 : f32
    %45 = vector.broadcast %cst_25 : f32 to vector<8x8xf32>
    %46 = arith.subf %44, %45 : vector<8x8xf32>
    %47 = arith.select %41, %39, %46 : vector<8x8xi1>, vector<8x8xf32>
    %48 = vector.extract_strided_slice %8 {offsets = [0, 0], sizes = [8, 16], strides = [1, 1]} : vector<16x16xf32> to vector<8x16xf32>
    %cst_26 = arith.constant dense<0.000000e+00> : vector<8x16xf32>
    %49 = tpu.matmul %47, %48, %cst_26 {dimension_numbers = #tpu.dot_dimension_numbers<[1], [0], [0], [1], [0, 0, 1, 1], [], []>} : vector<8x8xf32>, vector<8x16xf32>, vector<8x16xf32> -> vector<8x16xf32>
    %50 = arith.addf %9, %49 : vector<8x16xf32>
    %51 = vector.extract_strided_slice %5 {offsets = [0, 8], sizes = [8, 8], strides = [1, 1]} : vector<8x16xf32> to vector<8x8xf32>
    %52 = vector.extract_strided_slice %6 {offsets = [0, 8], sizes = [1, 8], strides = [1, 1]} : vector<1x16xf32> to vector<1x8xf32>
    %53 = vector.extract_strided_slice %7 {offsets = [0, 8], sizes = [1, 8], strides = [1, 1]} : vector<1x16xf32> to vector<1x8xf32>
    %54 = vector.broadcast %52 : vector<1x8xf32> to vector<8x8xf32>
    %55 = arith.mulf %51, %54 : vector<8x8xf32>
    %cst_27 = arith.constant dense<0.000000e+00> : vector<8xf32>
    %56 = vector.multi_reduction <add>, %55, %cst_27 [1] : vector<8x8xf32> to vector<8xf32>
    %57 = vector.shape_cast %56 : vector<8xf32> to vector<8x1xf32>
    %cst_28 = arith.constant dense<0.000000e+00> : vector<1x8xf32>
    %58 = tpu.matmul %53, %51, %cst_28 {dimension_numbers = #tpu.dot_dimension_numbers<[1], [1], [0], [0], [0, 0, 1, 0], [], []>} : vector<1x8xf32>, vector<8x8xf32>, vector<1x8xf32> -> vector<1x8xf32>
    %59 = vector.broadcast %57 : vector<8x1xf32> to vector<8x8xf32>
    %60 = vector.broadcast %58 : vector<1x8xf32> to vector<8x8xf32>
    %61 = arith.addf %59, %60 : vector<8x8xf32>
    %cst_29 = arith.constant 0.000000e+00 : f32
    %62 = vector.broadcast %cst_29 : f32 to vector<8x8xf32>
    %63 = arith.cmpf ogt, %61, %62 : vector<8x8xf32>
    %cst_30 = arith.constant 2.000000e-01 : f32
    %64 = vector.broadcast %cst_30 : f32 to vector<8x8xf32>
    %65 = arith.mulf %64, %61 : vector<8x8xf32>
    %66 = arith.select %63, %61, %65 : vector<8x8xi1>, vector<8x8xf32>
    %cst_31 = arith.constant 0.000000e+00 : f32
    %67 = vector.broadcast %cst_31 : f32 to vector<8x8xf32>
    %68 = arith.cmpf ogt, %3, %67 : vector<8x8xf32>
    %cst_32 = arith.constant -9.000000e+15 : f32
    %69 = vector.broadcast %cst_32 : f32 to vector<8x8xf32>
    %70 = arith.select %68, %66, %69 : vector<8x8xi1>, vector<8x8xf32>
    %cst_33 = arith.constant dense<0xFF800000> : vector<8xf32>
    %71 = vector.multi_reduction <maximumf>, %70, %cst_33 [1] : vector<8x8xf32> to vector<8xf32>
    %72 = vector.shape_cast %71 : vector<8xf32> to vector<8x1xf32>
    %73 = vector.broadcast %72 : vector<8x1xf32> to vector<8x8xf32>
    %74 = arith.subf %70, %73 : vector<8x8xf32>
    %75 = math.exp %74 : vector<8x8xf32>
    %cst_34 = arith.constant dense<0.000000e+00> : vector<8xf32>
    %76 = vector.multi_reduction <add>, %75, %cst_34 [1] : vector<8x8xf32> to vector<8xf32>
    %77 = vector.shape_cast %76 : vector<8xf32> to vector<8x1xf32>
    %78 = vector.broadcast %77 : vector<8x1xf32> to vector<8x8xf32>
    %79 = arith.divf %75, %78 : vector<8x8xf32>
    %cst_35 = arith.constant dense<0.000000e+00> : vector<8x8xf32>
    %80 = tpu.matmul %79, %51, %cst_35 {dimension_numbers = #tpu.dot_dimension_numbers<[1], [0], [0], [1], [0, 0, 1, 1], [], []>} : vector<8x8xf32>, vector<8x8xf32>, vector<8x8xf32> -> vector<8x8xf32>
    %cst_36 = arith.constant 0.000000e+00 : f32
    %81 = vector.broadcast %cst_36 : f32 to vector<8x8xf32>
    %82 = arith.cmpf ogt, %80, %81 : vector<8x8xf32>
    %cst_37 = arith.constant 0.000000e+00 : f32
    %83 = vector.broadcast %cst_37 : f32 to vector<8x8xf32>
    %84 = arith.minimumf %80, %83 : vector<8x8xf32>
    %85 = math.exp %84 : vector<8x8xf32>
    %cst_38 = arith.constant 1.000000e+00 : f32
    %86 = vector.broadcast %cst_38 : f32 to vector<8x8xf32>
    %87 = arith.subf %85, %86 : vector<8x8xf32>
    %88 = arith.select %82, %80, %87 : vector<8x8xi1>, vector<8x8xf32>
    %89 = vector.extract_strided_slice %8 {offsets = [8, 0], sizes = [8, 16], strides = [1, 1]} : vector<16x16xf32> to vector<8x16xf32>
    %cst_39 = arith.constant dense<0.000000e+00> : vector<8x16xf32>
    %90 = tpu.matmul %88, %89, %cst_39 {dimension_numbers = #tpu.dot_dimension_numbers<[1], [0], [0], [1], [0, 0, 1, 1], [], []>} : vector<8x8xf32>, vector<8x16xf32>, vector<8x16xf32> -> vector<8x16xf32>
    %91 = arith.addf %50, %90 : vector<8x16xf32>
    %c0_40 = arith.constant 0 : index
    %c0_41 = arith.constant 0 : index
    %92 = vector.load %arg7[%c0_40, %c0_41] : memref<1x16xf32, #tpu.memory_space<vmem>>, vector<1x16xf32>
    %c0_42 = arith.constant 0 : index
    %c0_43 = arith.constant 0 : index
    %93 = vector.load %arg8[%c0_42, %c0_43] : memref<1x16xf32, #tpu.memory_space<vmem>>, vector<1x16xf32>
    %94 = vector.broadcast %92 : vector<1x16xf32> to vector<8x16xf32>
    %95 = arith.mulf %91, %94 : vector<8x16xf32>
    %cst_44 = arith.constant dense<0.000000e+00> : vector<8xf32>
    %96 = vector.multi_reduction <add>, %95, %cst_44 [1] : vector<8x16xf32> to vector<8xf32>
    %97 = vector.shape_cast %96 : vector<8xf32> to vector<8x1xf32>
    %cst_45 = arith.constant dense<0.000000e+00> : vector<1x8xf32>
    %98 = tpu.matmul %93, %91, %cst_45 {dimension_numbers = #tpu.dot_dimension_numbers<[1], [1], [0], [0], [0, 0, 1, 0], [], []>} : vector<1x16xf32>, vector<8x16xf32>, vector<1x8xf32> -> vector<1x8xf32>
    %99 = vector.broadcast %97 : vector<8x1xf32> to vector<8x8xf32>
    %100 = vector.broadcast %98 : vector<1x8xf32> to vector<8x8xf32>
    %101 = arith.addf %99, %100 : vector<8x8xf32>
    %cst_46 = arith.constant 0.000000e+00 : f32
    %102 = vector.broadcast %cst_46 : f32 to vector<8x8xf32>
    %103 = arith.cmpf ogt, %101, %102 : vector<8x8xf32>
    %cst_47 = arith.constant 2.000000e-01 : f32
    %104 = vector.broadcast %cst_47 : f32 to vector<8x8xf32>
    %105 = arith.mulf %104, %101 : vector<8x8xf32>
    %106 = arith.select %103, %101, %105 : vector<8x8xi1>, vector<8x8xf32>
    %cst_48 = arith.constant 0.000000e+00 : f32
    %107 = vector.broadcast %cst_48 : f32 to vector<8x8xf32>
    %108 = arith.cmpf ogt, %3, %107 : vector<8x8xf32>
    %cst_49 = arith.constant -9.000000e+15 : f32
    %109 = vector.broadcast %cst_49 : f32 to vector<8x8xf32>
    %110 = arith.select %108, %106, %109 : vector<8x8xi1>, vector<8x8xf32>
    %cst_50 = arith.constant dense<0xFF800000> : vector<8xf32>
    %111 = vector.multi_reduction <maximumf>, %110, %cst_50 [1] : vector<8x8xf32> to vector<8xf32>
    %112 = vector.shape_cast %111 : vector<8xf32> to vector<8x1xf32>
    %113 = vector.broadcast %112 : vector<8x1xf32> to vector<8x8xf32>
    %114 = arith.subf %110, %113 : vector<8x8xf32>
    %115 = math.exp %114 : vector<8x8xf32>
    %cst_51 = arith.constant dense<0.000000e+00> : vector<8xf32>
    %116 = vector.multi_reduction <add>, %115, %cst_51 [1] : vector<8x8xf32> to vector<8xf32>
    %117 = vector.shape_cast %116 : vector<8xf32> to vector<8x1xf32>
    %118 = vector.broadcast %117 : vector<8x1xf32> to vector<8x8xf32>
    %119 = arith.divf %115, %118 : vector<8x8xf32>
    %cst_52 = arith.constant dense<0.000000e+00> : vector<8x16xf32>
    %120 = tpu.matmul %119, %91, %cst_52 {dimension_numbers = #tpu.dot_dimension_numbers<[1], [0], [0], [1], [0, 0, 1, 1], [], []>} : vector<8x8xf32>, vector<8x16xf32>, vector<8x16xf32> -> vector<8x16xf32>
    %cst_53 = arith.constant 0.000000e+00 : f32
    %121 = vector.broadcast %cst_53 : f32 to vector<8x16xf32>
    %122 = arith.cmpf ogt, %120, %121 : vector<8x16xf32>
    %cst_54 = arith.constant 0.000000e+00 : f32
    %123 = vector.broadcast %cst_54 : f32 to vector<8x16xf32>
    %124 = arith.minimumf %120, %123 : vector<8x16xf32>
    %125 = math.exp %124 : vector<8x16xf32>
    %cst_55 = arith.constant 1.000000e+00 : f32
    %126 = vector.broadcast %cst_55 : f32 to vector<8x16xf32>
    %127 = arith.subf %125, %126 : vector<8x16xf32>
    %128 = arith.select %122, %120, %127 : vector<8x16xi1>, vector<8x16xf32>
    %c0_56 = arith.constant 0 : index
    %c0_57 = arith.constant 0 : index
    %129 = vector.load %arg9[%c0_56, %c0_57] : memref<16x32xf32, #tpu.memory_space<vmem>>, vector<16x32xf32>
    %cst_58 = arith.constant dense<0.000000e+00> : vector<8x32xf32>
    %130 = tpu.matmul %128, %129, %cst_58 {dimension_numbers = #tpu.dot_dimension_numbers<[1], [0], [0], [1], [0, 0, 1, 1], [], []>} : vector<8x16xf32>, vector<16x32xf32>, vector<8x32xf32> -> vector<8x32xf32>
    %c0_59 = arith.constant 0 : index
    %c0_60 = arith.constant 0 : index
    %131 = vector.load %arg10[%c0_59, %c0_60] : memref<1x32xf32, #tpu.memory_space<vmem>>, vector<1x32xf32>
    %132 = vector.broadcast %131 : vector<1x32xf32> to vector<8x32xf32>
    %133 = arith.addf %130, %132 : vector<8x32xf32>
    %cst_61 = arith.constant 0.000000e+00 : f32
    %134 = vector.broadcast %cst_61 : f32 to vector<8x32xf32>
    %135 = arith.cmpf ogt, %133, %134 : vector<8x32xf32>
    %cst_62 = arith.constant 2.000000e-01 : f32
    %136 = vector.broadcast %cst_62 : f32 to vector<8x32xf32>
    %137 = arith.mulf %136, %133 : vector<8x32xf32>
    %138 = arith.select %135, %133, %137 : vector<8x32xi1>, vector<8x32xf32>
    %c0_63 = arith.constant 0 : index
    %c0_64 = arith.constant 0 : index
    %c0_65 = arith.constant 0 : index
    %139 = vector.load %arg11[%c0_63, %c0_64, %c0_65] : memref<1x8x32xf32, #tpu.memory_space<vmem>>, vector<1x8x32xf32>
    %140 = vector.shape_cast %139 : vector<1x8x32xf32> to vector<8x32xf32>
    %141 = vector.shape_cast %138 : vector<8x32xf32> to vector<1x8x32xf32>
    tpu.vector_store %arg11[%c0_63, %c0_64, %c0_65], %141 {strides = array<i32>} : memref<1x8x32xf32, #tpu.memory_space<vmem>>, vector<1x8x32xf32>,
    return
  }
  func.func @transform_0(%arg0: i32) -> (i32, i32, i32) {
    %c0_i32 = arith.constant 0 : i32
    %c0_i32_0 = arith.constant 0 : i32
    %c0_i32_1 = arith.constant 0 : i32
    return %arg0, %c0_i32, %c0_i32_0 : i32, i32, i32
  }
  func.func @transform_1(%arg0: i32) -> (i32, i32, i32) {
    %c0_i32 = arith.constant 0 : i32
    %c0_i32_0 = arith.constant 0 : i32
    %c0_i32_1 = arith.constant 0 : i32
    return %arg0, %c0_i32, %c0_i32_0 : i32, i32, i32
  }
  func.func @transform_2(%arg0: i32) -> (i32, i32) {
    %c0_i32 = arith.constant 0 : i32
    %c0_i32_0 = arith.constant 0 : i32
    %c0_i32_1 = arith.constant 0 : i32
    return %c0_i32, %c0_i32_0 : i32, i32
  }
  func.func @transform_3(%arg0: i32) -> (i32, i32) {
    %c0_i32 = arith.constant 0 : i32
    %c0_i32_0 = arith.constant 0 : i32
    %c0_i32_1 = arith.constant 0 : i32
    return %c0_i32, %c0_i32_0 : i32, i32
  }
  func.func @transform_4(%arg0: i32) -> (i32, i32) {
    %c0_i32 = arith.constant 0 : i32
    %c0_i32_0 = arith.constant 0 : i32
    %c0_i32_1 = arith.constant 0 : i32
    return %c0_i32, %c0_i32_0 : i32, i32
  }
  func.func @transform_5(%arg0: i32) -> (i32, i32) {
    %c0_i32 = arith.constant 0 : i32
    %c0_i32_0 = arith.constant 0 : i32
    %c0_i32_1 = arith.constant 0 : i32
    return %c0_i32, %c0_i32_0 : i32, i32
  }
  func.func @transform_6(%arg0: i32) -> (i32, i32) {
    %c0_i32 = arith.constant 0 : i32
    %c0_i32_0 = arith.constant 0 : i32
    %c0_i32_1 = arith.constant 0 : i32
    return %c0_i32, %c0_i32_0 : i32, i32
  }
  func.func @transform_7(%arg0: i32) -> (i32, i32) {
    %c0_i32 = arith.constant 0 : i32
    %c0_i32_0 = arith.constant 0 : i32
    %c0_i32_1 = arith.constant 0 : i32
    return %c0_i32, %c0_i32_0 : i32, i32
  }
  func.func @transform_8(%arg0: i32) -> (i32, i32) {
    %c0_i32 = arith.constant 0 : i32
    %c0_i32_0 = arith.constant 0 : i32
    %c0_i32_1 = arith.constant 0 : i32
    return %c0_i32, %c0_i32_0 : i32, i32
  }
  func.func @transform_9(%arg0: i32) -> (i32, i32) {
    %c0_i32 = arith.constant 0 : i32
    %c0_i32_0 = arith.constant 0 : i32
    %c0_i32_1 = arith.constant 0 : i32
    return %c0_i32, %c0_i32_0 : i32, i32
  }
  func.func @transform_10(%arg0: i32) -> (i32, i32, i32) {
    %c0_i32 = arith.constant 0 : i32
    %c0_i32_0 = arith.constant 0 : i32
    %c0_i32_1 = arith.constant 0 : i32
    return %arg0, %c0_i32, %c0_i32_0 : i32, i32, i32
  }
}

module attributes {stable_mosaic.version = 11 : i64} {
  func.func @_conv_kernel(%arg0: memref<2x20x20xf32, #tpu.memory_space<vmem>>, %arg1: memref<5x5xf32, #tpu.memory_space<smem>>, %arg2: memref<1x1xf32, #tpu.memory_space<smem>>, %arg3: memref<2x16x16xf32, #tpu.memory_space<vmem>>) attributes {dimension_semantics = [], scalar_prefetch = 0 : i64, scratch_operands = 0 : i64, tpu.core_type = #tpu.core_type<tc>} {
    %c0 = arith.constant 0 : index
    %c0_0 = arith.constant 0 : index
    %c0_1 = arith.constant 0 : index
    %0 = vector.load %arg0[%c0, %c0_0, %c0_1] : memref<2x20x20xf32, #tpu.memory_space<vmem>>, vector<2x20x20xf32>
    %cst = arith.constant 0.000000e+00 : f32
    %1 = vector.broadcast %cst : f32 to vector<2x16x16xf32>
    %c0_2 = arith.constant 0 : index
    %c0_3 = arith.constant 0 : index
    %2 = memref.load %arg1[%c0_2, %c0_3] : memref<5x5xf32, #tpu.memory_space<smem>>
    %3 = vector.extract_strided_slice %0 {offsets = [0, 0, 0], sizes = [2, 16, 16], strides = [1, 1, 1]} : vector<2x20x20xf32> to vector<2x16x16xf32>
    %4 = vector.broadcast %2 : f32 to vector<2x16x16xf32>
    %5 = arith.mulf %4, %3 : vector<2x16x16xf32>
    %6 = arith.addf %1, %5 : vector<2x16x16xf32>
    %c0_4 = arith.constant 0 : index
    %c1 = arith.constant 1 : index
    %7 = memref.load %arg1[%c0_4, %c1] : memref<5x5xf32, #tpu.memory_space<smem>>
    %8 = vector.extract_strided_slice %0 {offsets = [0, 0, 1], sizes = [2, 16, 16], strides = [1, 1, 1]} : vector<2x20x20xf32> to vector<2x16x16xf32>
    %9 = vector.broadcast %7 : f32 to vector<2x16x16xf32>
    %10 = arith.mulf %9, %8 : vector<2x16x16xf32>
    %11 = arith.addf %6, %10 : vector<2x16x16xf32>
    %c0_5 = arith.constant 0 : index
    %c2 = arith.constant 2 : index
    %12 = memref.load %arg1[%c0_5, %c2] : memref<5x5xf32, #tpu.memory_space<smem>>
    %13 = vector.extract_strided_slice %0 {offsets = [0, 0, 2], sizes = [2, 16, 16], strides = [1, 1, 1]} : vector<2x20x20xf32> to vector<2x16x16xf32>
    %14 = vector.broadcast %12 : f32 to vector<2x16x16xf32>
    %15 = arith.mulf %14, %13 : vector<2x16x16xf32>
    %16 = arith.addf %11, %15 : vector<2x16x16xf32>
    %c0_6 = arith.constant 0 : index
    %c3 = arith.constant 3 : index
    %17 = memref.load %arg1[%c0_6, %c3] : memref<5x5xf32, #tpu.memory_space<smem>>
    %18 = vector.extract_strided_slice %0 {offsets = [0, 0, 3], sizes = [2, 16, 16], strides = [1, 1, 1]} : vector<2x20x20xf32> to vector<2x16x16xf32>
    %19 = vector.broadcast %17 : f32 to vector<2x16x16xf32>
    %20 = arith.mulf %19, %18 : vector<2x16x16xf32>
    %21 = arith.addf %16, %20 : vector<2x16x16xf32>
    %c0_7 = arith.constant 0 : index
    %c4 = arith.constant 4 : index
    %22 = memref.load %arg1[%c0_7, %c4] : memref<5x5xf32, #tpu.memory_space<smem>>
    %23 = vector.extract_strided_slice %0 {offsets = [0, 0, 4], sizes = [2, 16, 16], strides = [1, 1, 1]} : vector<2x20x20xf32> to vector<2x16x16xf32>
    %24 = vector.broadcast %22 : f32 to vector<2x16x16xf32>
    %25 = arith.mulf %24, %23 : vector<2x16x16xf32>
    %26 = arith.addf %21, %25 : vector<2x16x16xf32>
    %c1_8 = arith.constant 1 : index
    %c0_9 = arith.constant 0 : index
    %27 = memref.load %arg1[%c1_8, %c0_9] : memref<5x5xf32, #tpu.memory_space<smem>>
    %28 = vector.extract_strided_slice %0 {offsets = [0, 1, 0], sizes = [2, 16, 16], strides = [1, 1, 1]} : vector<2x20x20xf32> to vector<2x16x16xf32>
    %29 = vector.broadcast %27 : f32 to vector<2x16x16xf32>
    %30 = arith.mulf %29, %28 : vector<2x16x16xf32>
    %31 = arith.addf %26, %30 : vector<2x16x16xf32>
    %c1_10 = arith.constant 1 : index
    %c1_11 = arith.constant 1 : index
    %32 = memref.load %arg1[%c1_10, %c1_11] : memref<5x5xf32, #tpu.memory_space<smem>>
    %33 = vector.extract_strided_slice %0 {offsets = [0, 1, 1], sizes = [2, 16, 16], strides = [1, 1, 1]} : vector<2x20x20xf32> to vector<2x16x16xf32>
    %34 = vector.broadcast %32 : f32 to vector<2x16x16xf32>
    %35 = arith.mulf %34, %33 : vector<2x16x16xf32>
    %36 = arith.addf %31, %35 : vector<2x16x16xf32>
    %c1_12 = arith.constant 1 : index
    %c2_13 = arith.constant 2 : index
    %37 = memref.load %arg1[%c1_12, %c2_13] : memref<5x5xf32, #tpu.memory_space<smem>>
    %38 = vector.extract_strided_slice %0 {offsets = [0, 1, 2], sizes = [2, 16, 16], strides = [1, 1, 1]} : vector<2x20x20xf32> to vector<2x16x16xf32>
    %39 = vector.broadcast %37 : f32 to vector<2x16x16xf32>
    %40 = arith.mulf %39, %38 : vector<2x16x16xf32>
    %41 = arith.addf %36, %40 : vector<2x16x16xf32>
    %c1_14 = arith.constant 1 : index
    %c3_15 = arith.constant 3 : index
    %42 = memref.load %arg1[%c1_14, %c3_15] : memref<5x5xf32, #tpu.memory_space<smem>>
    %43 = vector.extract_strided_slice %0 {offsets = [0, 1, 3], sizes = [2, 16, 16], strides = [1, 1, 1]} : vector<2x20x20xf32> to vector<2x16x16xf32>
    %44 = vector.broadcast %42 : f32 to vector<2x16x16xf32>
    %45 = arith.mulf %44, %43 : vector<2x16x16xf32>
    %46 = arith.addf %41, %45 : vector<2x16x16xf32>
    %c1_16 = arith.constant 1 : index
    %c4_17 = arith.constant 4 : index
    %47 = memref.load %arg1[%c1_16, %c4_17] : memref<5x5xf32, #tpu.memory_space<smem>>
    %48 = vector.extract_strided_slice %0 {offsets = [0, 1, 4], sizes = [2, 16, 16], strides = [1, 1, 1]} : vector<2x20x20xf32> to vector<2x16x16xf32>
    %49 = vector.broadcast %47 : f32 to vector<2x16x16xf32>
    %50 = arith.mulf %49, %48 : vector<2x16x16xf32>
    %51 = arith.addf %46, %50 : vector<2x16x16xf32>
    %c2_18 = arith.constant 2 : index
    %c0_19 = arith.constant 0 : index
    %52 = memref.load %arg1[%c2_18, %c0_19] : memref<5x5xf32, #tpu.memory_space<smem>>
    %53 = vector.extract_strided_slice %0 {offsets = [0, 2, 0], sizes = [2, 16, 16], strides = [1, 1, 1]} : vector<2x20x20xf32> to vector<2x16x16xf32>
    %54 = vector.broadcast %52 : f32 to vector<2x16x16xf32>
    %55 = arith.mulf %54, %53 : vector<2x16x16xf32>
    %56 = arith.addf %51, %55 : vector<2x16x16xf32>
    %c2_20 = arith.constant 2 : index
    %c1_21 = arith.constant 1 : index
    %57 = memref.load %arg1[%c2_20, %c1_21] : memref<5x5xf32, #tpu.memory_space<smem>>
    %58 = vector.extract_strided_slice %0 {offsets = [0, 2, 1], sizes = [2, 16, 16], strides = [1, 1, 1]} : vector<2x20x20xf32> to vector<2x16x16xf32>
    %59 = vector.broadcast %57 : f32 to vector<2x16x16xf32>
    %60 = arith.mulf %59, %58 : vector<2x16x16xf32>
    %61 = arith.addf %56, %60 : vector<2x16x16xf32>
    %c2_22 = arith.constant 2 : index
    %c2_23 = arith.constant 2 : index
    %62 = memref.load %arg1[%c2_22, %c2_23] : memref<5x5xf32, #tpu.memory_space<smem>>
    %63 = vector.extract_strided_slice %0 {offsets = [0, 2, 2], sizes = [2, 16, 16], strides = [1, 1, 1]} : vector<2x20x20xf32> to vector<2x16x16xf32>
    %64 = vector.broadcast %62 : f32 to vector<2x16x16xf32>
    %65 = arith.mulf %64, %63 : vector<2x16x16xf32>
    %66 = arith.addf %61, %65 : vector<2x16x16xf32>
    %c2_24 = arith.constant 2 : index
    %c3_25 = arith.constant 3 : index
    %67 = memref.load %arg1[%c2_24, %c3_25] : memref<5x5xf32, #tpu.memory_space<smem>>
    %68 = vector.extract_strided_slice %0 {offsets = [0, 2, 3], sizes = [2, 16, 16], strides = [1, 1, 1]} : vector<2x20x20xf32> to vector<2x16x16xf32>
    %69 = vector.broadcast %67 : f32 to vector<2x16x16xf32>
    %70 = arith.mulf %69, %68 : vector<2x16x16xf32>
    %71 = arith.addf %66, %70 : vector<2x16x16xf32>
    %c2_26 = arith.constant 2 : index
    %c4_27 = arith.constant 4 : index
    %72 = memref.load %arg1[%c2_26, %c4_27] : memref<5x5xf32, #tpu.memory_space<smem>>
    %73 = vector.extract_strided_slice %0 {offsets = [0, 2, 4], sizes = [2, 16, 16], strides = [1, 1, 1]} : vector<2x20x20xf32> to vector<2x16x16xf32>
    %74 = vector.broadcast %72 : f32 to vector<2x16x16xf32>
    %75 = arith.mulf %74, %73 : vector<2x16x16xf32>
    %76 = arith.addf %71, %75 : vector<2x16x16xf32>
    %c3_28 = arith.constant 3 : index
    %c0_29 = arith.constant 0 : index
    %77 = memref.load %arg1[%c3_28, %c0_29] : memref<5x5xf32, #tpu.memory_space<smem>>
    %78 = vector.extract_strided_slice %0 {offsets = [0, 3, 0], sizes = [2, 16, 16], strides = [1, 1, 1]} : vector<2x20x20xf32> to vector<2x16x16xf32>
    %79 = vector.broadcast %77 : f32 to vector<2x16x16xf32>
    %80 = arith.mulf %79, %78 : vector<2x16x16xf32>
    %81 = arith.addf %76, %80 : vector<2x16x16xf32>
    %c3_30 = arith.constant 3 : index
    %c1_31 = arith.constant 1 : index
    %82 = memref.load %arg1[%c3_30, %c1_31] : memref<5x5xf32, #tpu.memory_space<smem>>
    %83 = vector.extract_strided_slice %0 {offsets = [0, 3, 1], sizes = [2, 16, 16], strides = [1, 1, 1]} : vector<2x20x20xf32> to vector<2x16x16xf32>
    %84 = vector.broadcast %82 : f32 to vector<2x16x16xf32>
    %85 = arith.mulf %84, %83 : vector<2x16x16xf32>
    %86 = arith.addf %81, %85 : vector<2x16x16xf32>
    %c3_32 = arith.constant 3 : index
    %c2_33 = arith.constant 2 : index
    %87 = memref.load %arg1[%c3_32, %c2_33] : memref<5x5xf32, #tpu.memory_space<smem>>
    %88 = vector.extract_strided_slice %0 {offsets = [0, 3, 2], sizes = [2, 16, 16], strides = [1, 1, 1]} : vector<2x20x20xf32> to vector<2x16x16xf32>
    %89 = vector.broadcast %87 : f32 to vector<2x16x16xf32>
    %90 = arith.mulf %89, %88 : vector<2x16x16xf32>
    %91 = arith.addf %86, %90 : vector<2x16x16xf32>
    %c3_34 = arith.constant 3 : index
    %c3_35 = arith.constant 3 : index
    %92 = memref.load %arg1[%c3_34, %c3_35] : memref<5x5xf32, #tpu.memory_space<smem>>
    %93 = vector.extract_strided_slice %0 {offsets = [0, 3, 3], sizes = [2, 16, 16], strides = [1, 1, 1]} : vector<2x20x20xf32> to vector<2x16x16xf32>
    %94 = vector.broadcast %92 : f32 to vector<2x16x16xf32>
    %95 = arith.mulf %94, %93 : vector<2x16x16xf32>
    %96 = arith.addf %91, %95 : vector<2x16x16xf32>
    %c3_36 = arith.constant 3 : index
    %c4_37 = arith.constant 4 : index
    %97 = memref.load %arg1[%c3_36, %c4_37] : memref<5x5xf32, #tpu.memory_space<smem>>
    %98 = vector.extract_strided_slice %0 {offsets = [0, 3, 4], sizes = [2, 16, 16], strides = [1, 1, 1]} : vector<2x20x20xf32> to vector<2x16x16xf32>
    %99 = vector.broadcast %97 : f32 to vector<2x16x16xf32>
    %100 = arith.mulf %99, %98 : vector<2x16x16xf32>
    %101 = arith.addf %96, %100 : vector<2x16x16xf32>
    %c4_38 = arith.constant 4 : index
    %c0_39 = arith.constant 0 : index
    %102 = memref.load %arg1[%c4_38, %c0_39] : memref<5x5xf32, #tpu.memory_space<smem>>
    %103 = vector.extract_strided_slice %0 {offsets = [0, 4, 0], sizes = [2, 16, 16], strides = [1, 1, 1]} : vector<2x20x20xf32> to vector<2x16x16xf32>
    %104 = vector.broadcast %102 : f32 to vector<2x16x16xf32>
    %105 = arith.mulf %104, %103 : vector<2x16x16xf32>
    %106 = arith.addf %101, %105 : vector<2x16x16xf32>
    %c4_40 = arith.constant 4 : index
    %c1_41 = arith.constant 1 : index
    %107 = memref.load %arg1[%c4_40, %c1_41] : memref<5x5xf32, #tpu.memory_space<smem>>
    %108 = vector.extract_strided_slice %0 {offsets = [0, 4, 1], sizes = [2, 16, 16], strides = [1, 1, 1]} : vector<2x20x20xf32> to vector<2x16x16xf32>
    %109 = vector.broadcast %107 : f32 to vector<2x16x16xf32>
    %110 = arith.mulf %109, %108 : vector<2x16x16xf32>
    %111 = arith.addf %106, %110 : vector<2x16x16xf32>
    %c4_42 = arith.constant 4 : index
    %c2_43 = arith.constant 2 : index
    %112 = memref.load %arg1[%c4_42, %c2_43] : memref<5x5xf32, #tpu.memory_space<smem>>
    %113 = vector.extract_strided_slice %0 {offsets = [0, 4, 2], sizes = [2, 16, 16], strides = [1, 1, 1]} : vector<2x20x20xf32> to vector<2x16x16xf32>
    %114 = vector.broadcast %112 : f32 to vector<2x16x16xf32>
    %115 = arith.mulf %114, %113 : vector<2x16x16xf32>
    %116 = arith.addf %111, %115 : vector<2x16x16xf32>
    %c4_44 = arith.constant 4 : index
    %c3_45 = arith.constant 3 : index
    %117 = memref.load %arg1[%c4_44, %c3_45] : memref<5x5xf32, #tpu.memory_space<smem>>
    %118 = vector.extract_strided_slice %0 {offsets = [0, 4, 3], sizes = [2, 16, 16], strides = [1, 1, 1]} : vector<2x20x20xf32> to vector<2x16x16xf32>
    %119 = vector.broadcast %117 : f32 to vector<2x16x16xf32>
    %120 = arith.mulf %119, %118 : vector<2x16x16xf32>
    %121 = arith.addf %116, %120 : vector<2x16x16xf32>
    %c4_46 = arith.constant 4 : index
    %c4_47 = arith.constant 4 : index
    %122 = memref.load %arg1[%c4_46, %c4_47] : memref<5x5xf32, #tpu.memory_space<smem>>
    %123 = vector.extract_strided_slice %0 {offsets = [0, 4, 4], sizes = [2, 16, 16], strides = [1, 1, 1]} : vector<2x20x20xf32> to vector<2x16x16xf32>
    %124 = vector.broadcast %122 : f32 to vector<2x16x16xf32>
    %125 = arith.mulf %124, %123 : vector<2x16x16xf32>
    %126 = arith.addf %121, %125 : vector<2x16x16xf32>
    %c0_48 = arith.constant 0 : index
    %c0_49 = arith.constant 0 : index
    %127 = memref.load %arg2[%c0_48, %c0_49] : memref<1x1xf32, #tpu.memory_space<smem>>
    %128 = vector.broadcast %127 : f32 to vector<2x16x16xf32>
    %129 = arith.addf %126, %128 : vector<2x16x16xf32>
    %cst_50 = arith.constant 0.000000e+00 : f32
    %130 = vector.broadcast %cst_50 : f32 to vector<2x16x16xf32>
    %131 = arith.cmpf ogt, %129, %130 : vector<2x16x16xf32>
    %cst_51 = arith.constant 2.000000e-01 : f32
    %132 = vector.broadcast %cst_51 : f32 to vector<2x16x16xf32>
    %133 = arith.mulf %132, %129 : vector<2x16x16xf32>
    %134 = arith.select %131, %129, %133 : vector<2x16x16xi1>, vector<2x16x16xf32>
    %c0_52 = arith.constant 0 : index
    %c0_53 = arith.constant 0 : index
    %c0_54 = arith.constant 0 : index
    %135 = vector.load %arg3[%c0_52, %c0_53, %c0_54] : memref<2x16x16xf32, #tpu.memory_space<vmem>>, vector<2x16x16xf32>
    tpu.vector_store %arg3[%c0_52, %c0_53, %c0_54], %134 {strides = array<i32>} : memref<2x16x16xf32, #tpu.memory_space<vmem>>, vector<2x16x16xf32>,
    return
  }
}

module attributes {stable_mosaic.version = 11 : i64} {
  func.func @_dense_kernel(%arg0: memref<32x16xf32, #tpu.memory_space<vmem>>, %arg1: memref<16x32xf32, #tpu.memory_space<vmem>>, %arg2: memref<1x32xf32, #tpu.memory_space<vmem>>, %arg3: memref<32x32xf32, #tpu.memory_space<vmem>>) attributes {dimension_semantics = [], scalar_prefetch = 0 : i64, scratch_operands = 0 : i64, tpu.core_type = #tpu.core_type<tc>} {
    %c0 = arith.constant 0 : index
    %c0_0 = arith.constant 0 : index
    %0 = vector.load %arg0[%c0, %c0_0] : memref<32x16xf32, #tpu.memory_space<vmem>>, vector<32x16xf32>
    %c0_1 = arith.constant 0 : index
    %c0_2 = arith.constant 0 : index
    %1 = vector.load %arg1[%c0_1, %c0_2] : memref<16x32xf32, #tpu.memory_space<vmem>>, vector<16x32xf32>
    %cst = arith.constant dense<0.000000e+00> : vector<32x32xf32>
    %2 = tpu.matmul %0, %1, %cst {dimension_numbers = #tpu.dot_dimension_numbers<[1], [0], [0], [1], [0, 0, 1, 1], [], []>} : vector<32x16xf32>, vector<16x32xf32>, vector<32x32xf32> -> vector<32x32xf32>
    %c0_3 = arith.constant 0 : index
    %c0_4 = arith.constant 0 : index
    %3 = vector.load %arg2[%c0_3, %c0_4] : memref<1x32xf32, #tpu.memory_space<vmem>>, vector<1x32xf32>
    %4 = vector.broadcast %3 : vector<1x32xf32> to vector<32x32xf32>
    %5 = arith.addf %2, %4 : vector<32x32xf32>
    %cst_5 = arith.constant 0.000000e+00 : f32
    %6 = vector.broadcast %cst_5 : f32 to vector<32x32xf32>
    %7 = arith.cmpf ogt, %5, %6 : vector<32x32xf32>
    %cst_6 = arith.constant 2.000000e-01 : f32
    %8 = vector.broadcast %cst_6 : f32 to vector<32x32xf32>
    %9 = arith.mulf %8, %5 : vector<32x32xf32>
    %10 = arith.select %7, %5, %9 : vector<32x32xi1>, vector<32x32xf32>
    %c0_7 = arith.constant 0 : index
    %c0_8 = arith.constant 0 : index
    %11 = vector.load %arg3[%c0_7, %c0_8] : memref<32x32xf32, #tpu.memory_space<vmem>>, vector<32x32xf32>
    tpu.vector_store %arg3[%c0_7, %c0_8], %10 {strides = array<i32>} : memref<32x32xf32, #tpu.memory_space<vmem>>, vector<32x32xf32>,
    return
  }
}

module attributes {stable_mosaic.version = 11 : i64} {
  func.func @_dense_kernel(%arg0: memref<32x32xf32, #tpu.memory_space<vmem>>, %arg1: memref<32x256xf32, #tpu.memory_space<vmem>>, %arg2: memref<1x256xf32, #tpu.memory_space<vmem>>, %arg3: memref<32x256xf32, #tpu.memory_space<vmem>>) attributes {dimension_semantics = [], scalar_prefetch = 0 : i64, scratch_operands = 0 : i64, tpu.core_type = #tpu.core_type<tc>} {
    %c0 = arith.constant 0 : index
    %c0_0 = arith.constant 0 : index
    %0 = vector.load %arg0[%c0, %c0_0] : memref<32x32xf32, #tpu.memory_space<vmem>>, vector<32x32xf32>
    %c0_1 = arith.constant 0 : index
    %c0_2 = arith.constant 0 : index
    %1 = vector.load %arg1[%c0_1, %c0_2] : memref<32x256xf32, #tpu.memory_space<vmem>>, vector<32x256xf32>
    %cst = arith.constant dense<0.000000e+00> : vector<32x256xf32>
    %2 = tpu.matmul %0, %1, %cst {dimension_numbers = #tpu.dot_dimension_numbers<[1], [0], [0], [1], [0, 0, 1, 1], [], []>} : vector<32x32xf32>, vector<32x256xf32>, vector<32x256xf32> -> vector<32x256xf32>
    %c0_3 = arith.constant 0 : index
    %c0_4 = arith.constant 0 : index
    %3 = vector.load %arg2[%c0_3, %c0_4] : memref<1x256xf32, #tpu.memory_space<vmem>>, vector<1x256xf32>
    %4 = vector.broadcast %3 : vector<1x256xf32> to vector<32x256xf32>
    %5 = arith.addf %2, %4 : vector<32x256xf32>
    %6 = math.tanh %5 : vector<32x256xf32>
    %c0_5 = arith.constant 0 : index
    %c0_6 = arith.constant 0 : index
    %7 = vector.load %arg3[%c0_5, %c0_6] : memref<32x256xf32, #tpu.memory_space<vmem>>, vector<32x256xf32>
    tpu.vector_store %arg3[%c0_5, %c0_6], %6 {strides = array<i32>} : memref<32x256xf32, #tpu.memory_space<vmem>>, vector<32x256xf32>,
    return
  }
}

module attributes {stable_mosaic.version = 11 : i64} {
  func.func @_dense_kernel(%arg0: memref<16x32xf32, #tpu.memory_space<vmem>>, %arg1: memref<32x384xf32, #tpu.memory_space<vmem>>, %arg2: memref<1x384xf32, #tpu.memory_space<vmem>>, %arg3: memref<16x384xf32, #tpu.memory_space<vmem>>) attributes {dimension_semantics = [], scalar_prefetch = 0 : i64, scratch_operands = 0 : i64, tpu.core_type = #tpu.core_type<tc>} {
    %c0 = arith.constant 0 : index
    %c0_0 = arith.constant 0 : index
    %0 = vector.load %arg0[%c0, %c0_0] : memref<16x32xf32, #tpu.memory_space<vmem>>, vector<16x32xf32>
    %c0_1 = arith.constant 0 : index
    %c0_2 = arith.constant 0 : index
    %1 = vector.load %arg1[%c0_1, %c0_2] : memref<32x384xf32, #tpu.memory_space<vmem>>, vector<32x384xf32>
    %cst = arith.constant dense<0.000000e+00> : vector<16x384xf32>
    %2 = tpu.matmul %0, %1, %cst {dimension_numbers = #tpu.dot_dimension_numbers<[1], [0], [0], [1], [0, 0, 1, 1], [], []>} : vector<16x32xf32>, vector<32x384xf32>, vector<16x384xf32> -> vector<16x384xf32>
    %c0_3 = arith.constant 0 : index
    %c0_4 = arith.constant 0 : index
    %3 = vector.load %arg2[%c0_3, %c0_4] : memref<1x384xf32, #tpu.memory_space<vmem>>, vector<1x384xf32>
    %4 = vector.broadcast %3 : vector<1x384xf32> to vector<16x384xf32>
    %5 = arith.addf %2, %4 : vector<16x384xf32>
    %6 = tpu.iota {dimensions = array<i32: 1>} : vector<16x384xi32>
    %c128_i32 = arith.constant 128 : i32
    %7 = vector.broadcast %c128_i32 : i32 to vector<16x384xi32>
    %8 = arith.cmpi sge, %6, %7 : vector<16x384xi32>
    %9 = math.tanh %5 : vector<16x384xf32>
    %10 = arith.select %8, %9, %5 : vector<16x384xi1>, vector<16x384xf32>
    %c0_5 = arith.constant 0 : index
    %c0_6 = arith.constant 0 : index
    %11 = vector.load %arg3[%c0_5, %c0_6] : memref<16x384xf32, #tpu.memory_space<vmem>>, vector<16x384xf32>
    tpu.vector_store %arg3[%c0_5, %c0_6], %10 {strides = array<i32>} : memref<16x384xf32, #tpu.memory_space<vmem>>, vector<16x384xf32>,
    return
  }
}

module attributes {stable_mosaic.version = 11 : i64} {
  func.func @_bidat_kernel(%arg0: i32, %arg1: memref<1x8x32xf32, #tpu.memory_space<vmem>>, %arg2: memref<1x16x32xf32, #tpu.memory_space<vmem>>, %arg3: memref<1x8x1xf32, #tpu.memory_space<vmem>>, %arg4: memref<1x1x16xf32, #tpu.memory_space<vmem>>, %arg5: memref<1x16x1xf32, #tpu.memory_space<vmem>>, %arg6: memref<1x12x8x32xf32, #tpu.memory_space<vmem>>, %arg7: memref<1x8x16x32xf32, #tpu.memory_space<vmem>>, %arg8: memref<4x1x32xf32, #tpu.memory_space<vmem>>, %arg9: memref<4x1x32xf32, #tpu.memory_space<vmem>>, %arg10: memref<4x1x1xf32, #tpu.memory_space<vmem>>, %arg11: memref<4x1x32xf32, #tpu.memory_space<vmem>>, %arg12: memref<4x1x32xf32, #tpu.memory_space<vmem>>, %arg13: memref<4x1x1xf32, #tpu.memory_space<vmem>>, %arg14: memref<1x4x32xf32, #tpu.memory_space<vmem>>, %arg15: memref<1x4x32xf32, #tpu.memory_space<vmem>>) attributes {dimension_semantics = [#tpu.dimension_semantics<parallel>], iteration_bounds = array<i64: 2>, scalar_prefetch = 0 : i64, scratch_operands = 0 : i64, tpu.core_type = #tpu.core_type<tc>, window_params = [{transform_indices = @transform_0, window_bounds = array<i64: 1, 8, 32>}, {transform_indices = @transform_1, window_bounds = array<i64: 1, 16, 32>}, {transform_indices = @transform_2, window_bounds = array<i64: 1, 8, 1>}, {transform_indices = @transform_3, window_bounds = array<i64: 1, 1, 16>}, {transform_indices = @transform_4, window_bounds = array<i64: 1, 16, 1>}, {transform_indices = @transform_5, window_bounds = array<i64: 1, 12, 8, 32>}, {transform_indices = @transform_6, window_bounds = array<i64: 1, 8, 16, 32>}, {pipeline_mode = #tpu.pipeline_mode<synchronous>, transform_indices = @transform_7, window_bounds = array<i64: 4, 1, 32>}, {pipeline_mode = #tpu.pipeline_mode<synchronous>, transform_indices = @transform_8, window_bounds = array<i64: 4, 1, 32>}, {pipeline_mode = #tpu.pipeline_mode<synchronous>, transform_indices = @transform_9, window_bounds = array<i64: 4, 1, 1>}, {pipeline_mode = #tpu.pipeline_mode<synchronous>, transform_indices = @transform_10, window_bounds = array<i64: 4, 1, 32>}, {pipeline_mode = #tpu.pipeline_mode<synchronous>, transform_indices = @transform_11, window_bounds = array<i64: 4, 1, 32>}, {pipeline_mode = #tpu.pipeline_mode<synchronous>, transform_indices = @transform_12, window_bounds = array<i64: 4, 1, 1>}, {transform_indices = @transform_13, window_bounds = array<i64: 1, 4, 32>}, {transform_indices = @transform_14, window_bounds = array<i64: 1, 4, 32>}]} {
    %c0 = arith.constant 0 : index
    %c0_0 = arith.constant 0 : index
    %c0_1 = arith.constant 0 : index
    %0 = vector.load %arg1[%c0, %c0_0, %c0_1] : memref<1x8x32xf32, #tpu.memory_space<vmem>>, vector<1x8x32xf32>
    %1 = vector.shape_cast %0 : vector<1x8x32xf32> to vector<8x32xf32>
    %c0_2 = arith.constant 0 : index
    %c0_3 = arith.constant 0 : index
    %c0_4 = arith.constant 0 : index
    %2 = vector.load %arg2[%c0_2, %c0_3, %c0_4] : memref<1x16x32xf32, #tpu.memory_space<vmem>>, vector<1x16x32xf32>
    %3 = vector.shape_cast %2 : vector<1x16x32xf32> to vector<16x32xf32>
    %c0_5 = arith.constant 0 : index
    %c0_6 = arith.constant 0 : index
    %c0_7 = arith.constant 0 : index
    %4 = vector.load %arg3[%c0_5, %c0_6, %c0_7] : memref<1x8x1xf32, #tpu.memory_space<vmem>>, vector<1x8x1xf32>
    %5 = vector.shape_cast %4 : vector<1x8x1xf32> to vector<8x1xf32>
    %c0_8 = arith.constant 0 : index
    %c0_9 = arith.constant 0 : index
    %c0_10 = arith.constant 0 : index
    %6 = vector.load %arg4[%c0_8, %c0_9, %c0_10] : memref<1x1x16xf32, #tpu.memory_space<vmem>>, vector<1x1x16xf32>
    %7 = vector.shape_cast %6 : vector<1x1x16xf32> to vector<1x16xf32>
    %c0_11 = arith.constant 0 : index
    %c0_12 = arith.constant 0 : index
    %c0_13 = arith.constant 0 : index
    %8 = vector.load %arg5[%c0_11, %c0_12, %c0_13] : memref<1x16x1xf32, #tpu.memory_space<vmem>>, vector<1x16x1xf32>
    %9 = vector.shape_cast %8 : vector<1x16x1xf32> to vector<16x1xf32>
    %10 = vector.broadcast %5 : vector<8x1xf32> to vector<8x16xf32>
    %11 = vector.broadcast %7 : vector<1x16xf32> to vector<8x16xf32>
    %12 = arith.mulf %10, %11 : vector<8x16xf32>
    %c0_14 = arith.constant 0 : index
    %c0_15 = arith.constant 0 : index
    %c0_16 = arith.constant 0 : index
    %c0_17 = arith.constant 0 : index
    %13 = vector.load %arg6[%c0_14, %c0_15, %c0_16, %c0_17] : memref<1x12x8x32xf32, #tpu.memory_space<vmem>>, vector<1x1x8x32xf32>
    %14 = vector.shape_cast %13 : vector<1x1x8x32xf32> to vector<8x32xf32>
    %c0_18 = arith.constant 0 : index
    %c4 = arith.constant 4 : index
    %c0_19 = arith.constant 0 : index
    %c0_20 = arith.constant 0 : index
    %15 = vector.load %arg6[%c0_18, %c4, %c0_19, %c0_20] : memref<1x12x8x32xf32, #tpu.memory_space<vmem>>, vector<1x1x8x32xf32>
    %16 = vector.shape_cast %15 : vector<1x1x8x32xf32> to vector<8x32xf32>
    %c0_21 = arith.constant 0 : index
    %c8 = arith.constant 8 : index
    %c0_22 = arith.constant 0 : index
    %c0_23 = arith.constant 0 : index
    %17 = vector.load %arg6[%c0_21, %c8, %c0_22, %c0_23] : memref<1x12x8x32xf32, #tpu.memory_space<vmem>>, vector<1x1x8x32xf32>
    %18 = vector.shape_cast %17 : vector<1x1x8x32xf32> to vector<8x32xf32>
    %c0_24 = arith.constant 0 : index
    %c0_25 = arith.constant 0 : index
    %c0_26 = arith.constant 0 : index
    %c0_27 = arith.constant 0 : index
    %19 = vector.load %arg7[%c0_24, %c0_25, %c0_26, %c0_27] : memref<1x8x16x32xf32, #tpu.memory_space<vmem>>, vector<1x1x16x32xf32>
    %20 = vector.shape_cast %19 : vector<1x1x16x32xf32> to vector<16x32xf32>
    %c0_28 = arith.constant 0 : index
    %c4_29 = arith.constant 4 : index
    %c0_30 = arith.constant 0 : index
    %c0_31 = arith.constant 0 : index
    %21 = vector.load %arg7[%c0_28, %c4_29, %c0_30, %c0_31] : memref<1x8x16x32xf32, #tpu.memory_space<vmem>>, vector<1x1x16x32xf32>
    %22 = vector.shape_cast %21 : vector<1x1x16x32xf32> to vector<16x32xf32>
    %cst = arith.constant dense<0.000000e+00> : vector<8x16xf32>
    %23 = tpu.matmul %14, %3, %cst {dimension_numbers = #tpu.dot_dimension_numbers<[1], [1], [0], [0], [0, 0, 1, 0], [], []>} : vector<8x32xf32>, vector<16x32xf32>, vector<8x16xf32> -> vector<8x16xf32>
    %24 = math.tanh %23 : vector<8x16xf32>
    %25 = arith.mulf %24, %12 : vector<8x16xf32>
    %cst_32 = arith.constant dense<0.000000e+00> : vector<8x32xf32>
    %26 = tpu.matmul %25, %20, %cst_32 {dimension_numbers = #tpu.dot_dimension_numbers<[1], [0], [0], [1], [0, 0, 1, 1], [], []>} : vector<8x16xf32>, vector<16x32xf32>, vector<8x32xf32> -> vector<8x32xf32>
    %cst_33 = arith.constant dense<0.000000e+00> : vector<16x32xf32>
    %27 = tpu.matmul %25, %16, %cst_33 {dimension_numbers = #tpu.dot_dimension_numbers<[0], [0], [1], [1], [0, 1, 1, 1], [], []>} : vector<8x16xf32>, vector<8x32xf32>, vector<16x32xf32> -> vector<16x32xf32>
    %c0_34 = arith.constant 0 : index
    %c0_35 = arith.constant 0 : index
    %c0_36 = arith.constant 0 : index
    %28 = vector.load %arg8[%c0_34, %c0_35, %c0_36] : memref<4x1x32xf32, #tpu.memory_space<vmem>>, vector<1x1x32xf32>
    %29 = vector.shape_cast %28 : vector<1x1x32xf32> to vector<1x32xf32>
    %30 = vector.broadcast %29 : vector<1x32xf32> to vector<8x32xf32>
    %31 = arith.mulf %18, %30 : vector<8x32xf32>
    %cst_37 = arith.constant dense<0.000000e+00> : vector<8xf32>
    %32 = vector.multi_reduction <add>, %31, %cst_37 [1] : vector<8x32xf32> to vector<8xf32>
    %33 = vector.shape_cast %32 : vector<8xf32> to vector<8x1xf32>
    %c0_38 = arith.constant 0 : index
    %c0_39 = arith.constant 0 : index
    %c0_40 = arith.constant 0 : index
    %34 = vector.load %arg9[%c0_38, %c0_39, %c0_40] : memref<4x1x32xf32, #tpu.memory_space<vmem>>, vector<1x1x32xf32>
    %35 = vector.shape_cast %34 : vector<1x1x32xf32> to vector<1x32xf32>
    %36 = vector.broadcast %35 : vector<1x32xf32> to vector<8x32xf32>
    %37 = arith.mulf %26, %36 : vector<8x32xf32>
    %cst_41 = arith.constant dense<0.000000e+00> : vector<8xf32>
    %38 = vector.multi_reduction <add>, %37, %cst_41 [1] : vector<8x32xf32> to vector<8xf32>
    %39 = vector.shape_cast %38 : vector<8xf32> to vector<8x1xf32>
    %40 = arith.addf %33, %39 : vector<8x1xf32>
    %c0_42 = arith.constant 0 : index
    %c0_43 = arith.constant 0 : index
    %c0_44 = arith.constant 0 : index
    %41 = vector.load %arg10[%c0_42, %c0_43, %c0_44] : memref<4x1x1xf32, #tpu.memory_space<vmem>>, vector<1x1x1xf32>
    %42 = vector.shape_cast %41 : vector<1x1x1xf32> to vector<1x1xf32>
    %43 = vector.broadcast %42 : vector<1x1xf32> to vector<8x1xf32>
    %44 = arith.addf %40, %43 : vector<8x1xf32>
    %c0_45 = arith.constant 0 : index
    %c0_46 = arith.constant 0 : index
    %c0_47 = arith.constant 0 : index
    %45 = vector.load %arg11[%c0_45, %c0_46, %c0_47] : memref<4x1x32xf32, #tpu.memory_space<vmem>>, vector<1x1x32xf32>
    %46 = vector.shape_cast %45 : vector<1x1x32xf32> to vector<1x32xf32>
    %47 = vector.broadcast %46 : vector<1x32xf32> to vector<16x32xf32>
    %48 = arith.mulf %22, %47 : vector<16x32xf32>
    %cst_48 = arith.constant dense<0.000000e+00> : vector<16xf32>
    %49 = vector.multi_reduction <add>, %48, %cst_48 [1] : vector<16x32xf32> to vector<16xf32>
    %50 = vector.shape_cast %49 : vector<16xf32> to vector<16x1xf32>
    %c0_49 = arith.constant 0 : index
    %c0_50 = arith.constant 0 : index
    %c0_51 = arith.constant 0 : index
    %51 = vector.load %arg12[%c0_49, %c0_50, %c0_51] : memref<4x1x32xf32, #tpu.memory_space<vmem>>, vector<1x1x32xf32>
    %52 = vector.shape_cast %51 : vector<1x1x32xf32> to vector<1x32xf32>
    %53 = vector.broadcast %52 : vector<1x32xf32> to vector<16x32xf32>
    %54 = arith.mulf %27, %53 : vector<16x32xf32>
    %cst_52 = arith.constant dense<0.000000e+00> : vector<16xf32>
    %55 = vector.multi_reduction <add>, %54, %cst_52 [1] : vector<16x32xf32> to vector<16xf32>
    %56 = vector.shape_cast %55 : vector<16xf32> to vector<16x1xf32>
    %57 = arith.addf %50, %56 : vector<16x1xf32>
    %c0_53 = arith.constant 0 : index
    %c0_54 = arith.constant 0 : index
    %c0_55 = arith.constant 0 : index
    %58 = vector.load %arg13[%c0_53, %c0_54, %c0_55] : memref<4x1x1xf32, #tpu.memory_space<vmem>>, vector<1x1x1xf32>
    %59 = vector.shape_cast %58 : vector<1x1x1xf32> to vector<1x1xf32>
    %60 = vector.broadcast %59 : vector<1x1xf32> to vector<16x1xf32>
    %61 = arith.addf %57, %60 : vector<16x1xf32>
    %cst_56 = arith.constant dense<0xFF800000> : vector<1xf32>
    %62 = vector.multi_reduction <maximumf>, %44, %cst_56 [0] : vector<8x1xf32> to vector<1xf32>
    %63 = vector.shape_cast %62 : vector<1xf32> to vector<1x1xf32>
    %64 = vector.broadcast %63 : vector<1x1xf32> to vector<8x1xf32>
    %65 = arith.subf %44, %64 : vector<8x1xf32>
    %66 = math.exp %65 : vector<8x1xf32>
    %67 = arith.mulf %66, %5 : vector<8x1xf32>
    %cst_57 = arith.constant dense<0.000000e+00> : vector<1xf32>
    %68 = vector.multi_reduction <add>, %67, %cst_57 [0] : vector<8x1xf32> to vector<1xf32>
    %69 = vector.shape_cast %68 : vector<1xf32> to vector<1x1xf32>
    %cst_58 = arith.constant 9.99999997E-7 : f32
    %70 = vector.broadcast %cst_58 : f32 to vector<1x1xf32>
    %71 = arith.addf %69, %70 : vector<1x1xf32>
    %72 = vector.broadcast %71 : vector<1x1xf32> to vector<8x1xf32>
    %73 = arith.divf %67, %72 : vector<8x1xf32>
    %cst_59 = arith.constant dense<0xFF800000> : vector<1xf32>
    %74 = vector.multi_reduction <maximumf>, %61, %cst_59 [0] : vector<16x1xf32> to vector<1xf32>
    %75 = vector.shape_cast %74 : vector<1xf32> to vector<1x1xf32>
    %76 = vector.broadcast %75 : vector<1x1xf32> to vector<16x1xf32>
    %77 = arith.subf %61, %76 : vector<16x1xf32>
    %78 = math.exp %77 : vector<16x1xf32>
    %79 = arith.mulf %78, %9 : vector<16x1xf32>
    %cst_60 = arith.constant dense<0.000000e+00> : vector<1xf32>
    %80 = vector.multi_reduction <add>, %79, %cst_60 [0] : vector<16x1xf32> to vector<1xf32>
    %81 = vector.shape_cast %80 : vector<1xf32> to vector<1x1xf32>
    %cst_61 = arith.constant 9.99999997E-7 : f32
    %82 = vector.broadcast %cst_61 : f32 to vector<1x1xf32>
    %83 = arith.addf %81, %82 : vector<1x1xf32>
    %84 = vector.broadcast %83 : vector<1x1xf32> to vector<16x1xf32>
    %85 = arith.divf %79, %84 : vector<16x1xf32>
    %86 = vector.broadcast %73 : vector<8x1xf32> to vector<8x32xf32>
    %87 = arith.mulf %1, %86 : vector<8x32xf32>
    %cst_62 = arith.constant dense<0.000000e+00> : vector<32xf32>
    %88 = vector.multi_reduction <add>, %87, %cst_62 [0] : vector<8x32xf32> to vector<32xf32>
    %89 = vector.shape_cast %88 : vector<32xf32> to vector<1x32xf32>
    %c0_63 = arith.constant 0 : index
    %c0_64 = arith.constant 0 : index
    %c0_65 = arith.constant 0 : index
    %90 = vector.load %arg14[%c0_63, %c0_64, %c0_65] : memref<1x4x32xf32, #tpu.memory_space<vmem>>, vector<1x1x32xf32>
    %91 = vector.shape_cast %90 : vector<1x1x32xf32> to vector<1x32xf32>
    %92 = vector.shape_cast %89 : vector<1x32xf32> to vector<1x1x32xf32>
    tpu.vector_store %arg14[%c0_63, %c0_64, %c0_65], %92 {strides = array<i32>} : memref<1x4x32xf32, #tpu.memory_space<vmem>>, vector<1x1x32xf32>,
    %93 = vector.broadcast %85 : vector<16x1xf32> to vector<16x32xf32>
    %94 = arith.mulf %3, %93 : vector<16x32xf32>
    %cst_66 = arith.constant dense<0.000000e+00> : vector<32xf32>
    %95 = vector.multi_reduction <add>, %94, %cst_66 [0] : vector<16x32xf32> to vector<32xf32>
    %96 = vector.shape_cast %95 : vector<32xf32> to vector<1x32xf32>
    %c0_67 = arith.constant 0 : index
    %c0_68 = arith.constant 0 : index
    %c0_69 = arith.constant 0 : index
    %97 = vector.load %arg15[%c0_67, %c0_68, %c0_69] : memref<1x4x32xf32, #tpu.memory_space<vmem>>, vector<1x1x32xf32>
    %98 = vector.shape_cast %97 : vector<1x1x32xf32> to vector<1x32xf32>
    %99 = vector.shape_cast %96 : vector<1x32xf32> to vector<1x1x32xf32>
    tpu.vector_store %arg15[%c0_67, %c0_68, %c0_69], %99 {strides = array<i32>} : memref<1x4x32xf32, #tpu.memory_space<vmem>>, vector<1x1x32xf32>,
    %c0_70 = arith.constant 0 : index
    %c1 = arith.constant 1 : index
    %c0_71 = arith.constant 0 : index
    %c0_72 = arith.constant 0 : index
    %100 = vector.load %arg6[%c0_70, %c1, %c0_71, %c0_72] : memref<1x12x8x32xf32, #tpu.memory_space<vmem>>, vector<1x1x8x32xf32>
    %101 = vector.shape_cast %100 : vector<1x1x8x32xf32> to vector<8x32xf32>
    %c0_73 = arith.constant 0 : index
    %c5 = arith.constant 5 : index
    %c0_74 = arith.constant 0 : index
    %c0_75 = arith.constant 0 : index
    %102 = vector.load %arg6[%c0_73, %c5, %c0_74, %c0_75] : memref<1x12x8x32xf32, #tpu.memory_space<vmem>>, vector<1x1x8x32xf32>
    %103 = vector.shape_cast %102 : vector<1x1x8x32xf32> to vector<8x32xf32>
    %c0_76 = arith.constant 0 : index
    %c9 = arith.constant 9 : index
    %c0_77 = arith.constant 0 : index
    %c0_78 = arith.constant 0 : index
    %104 = vector.load %arg6[%c0_76, %c9, %c0_77, %c0_78] : memref<1x12x8x32xf32, #tpu.memory_space<vmem>>, vector<1x1x8x32xf32>
    %105 = vector.shape_cast %104 : vector<1x1x8x32xf32> to vector<8x32xf32>
    %c0_79 = arith.constant 0 : index
    %c1_80 = arith.constant 1 : index
    %c0_81 = arith.constant 0 : index
    %c0_82 = arith.constant 0 : index
    %106 = vector.load %arg7[%c0_79, %c1_80, %c0_81, %c0_82] : memref<1x8x16x32xf32, #tpu.memory_space<vmem>>, vector<1x1x16x32xf32>
    %107 = vector.shape_cast %106 : vector<1x1x16x32xf32> to vector<16x32xf32>
    %c0_83 = arith.constant 0 : index
    %c5_84 = arith.constant 5 : index
    %c0_85 = arith.constant 0 : index
    %c0_86 = arith.constant 0 : index
    %108 = vector.load %arg7[%c0_83, %c5_84, %c0_85, %c0_86] : memref<1x8x16x32xf32, #tpu.memory_space<vmem>>, vector<1x1x16x32xf32>
    %109 = vector.shape_cast %108 : vector<1x1x16x32xf32> to vector<16x32xf32>
    %cst_87 = arith.constant dense<0.000000e+00> : vector<8x16xf32>
    %110 = tpu.matmul %101, %3, %cst_87 {dimension_numbers = #tpu.dot_dimension_numbers<[1], [1], [0], [0], [0, 0, 1, 0], [], []>} : vector<8x32xf32>, vector<16x32xf32>, vector<8x16xf32> -> vector<8x16xf32>
    %111 = math.tanh %110 : vector<8x16xf32>
    %112 = arith.mulf %111, %12 : vector<8x16xf32>
    %cst_88 = arith.constant dense<0.000000e+00> : vector<8x32xf32>
    %113 = tpu.matmul %112, %107, %cst_88 {dimension_numbers = #tpu.dot_dimension_numbers<[1], [0], [0], [1], [0, 0, 1, 1], [], []>} : vector<8x16xf32>, vector<16x32xf32>, vector<8x32xf32> -> vector<8x32xf32>
    %cst_89 = arith.constant dense<0.000000e+00> : vector<16x32xf32>
    %114 = tpu.matmul %112, %103, %cst_89 {dimension_numbers = #tpu.dot_dimension_numbers<[0], [0], [1], [1], [0, 1, 1, 1], [], []>} : vector<8x16xf32>, vector<8x32xf32>, vector<16x32xf32> -> vector<16x32xf32>
    %c1_90 = arith.constant 1 : index
    %c0_91 = arith.constant 0 : index
    %c0_92 = arith.constant 0 : index
    %115 = vector.load %arg8[%c1_90, %c0_91, %c0_92] : memref<4x1x32xf32, #tpu.memory_space<vmem>>, vector<1x1x32xf32>
    %116 = vector.shape_cast %115 : vector<1x1x32xf32> to vector<1x32xf32>
    %117 = vector.broadcast %116 : vector<1x32xf32> to vector<8x32xf32>
    %118 = arith.mulf %105, %117 : vector<8x32xf32>
    %cst_93 = arith.constant dense<0.000000e+00> : vector<8xf32>
    %119 = vector.multi_reduction <add>, %118, %cst_93 [1] : vector<8x32xf32> to vector<8xf32>
    %120 = vector.shape_cast %119 : vector<8xf32> to vector<8x1xf32>
    %c1_94 = arith.constant 1 : index
    %c0_95 = arith.constant 0 : index
    %c0_96 = arith.constant 0 : index
    %121 = vector.load %arg9[%c1_94, %c0_95, %c0_96] : memref<4x1x32xf32, #tpu.memory_space<vmem>>, vector<1x1x32xf32>
    %122 = vector.shape_cast %121 : vector<1x1x32xf32> to vector<1x32xf32>
    %123 = vector.broadcast %122 : vector<1x32xf32> to vector<8x32xf32>
    %124 = arith.mulf %113, %123 : vector<8x32xf32>
    %cst_97 = arith.constant dense<0.000000e+00> : vector<8xf32>
    %125 = vector.multi_reduction <add>, %124, %cst_97 [1] : vector<8x32xf32> to vector<8xf32>
    %126 = vector.shape_cast %125 : vector<8xf32> to vector<8x1xf32>
    %127 = arith.addf %120, %126 : vector<8x1xf32>
    %c1_98 = arith.constant 1 : index
    %c0_99 = arith.constant 0 : index
    %c0_100 = arith.constant 0 : index
    %128 = vector.load %arg10[%c1_98, %c0_99, %c0_100] : memref<4x1x1xf32, #tpu.memory_space<vmem>>, vector<1x1x1xf32>
    %129 = vector.shape_cast %128 : vector<1x1x1xf32> to vector<1x1xf32>
    %130 = vector.broadcast %129 : vector<1x1xf32> to vector<8x1xf32>
    %131 = arith.addf %127, %130 : vector<8x1xf32>
    %c1_101 = arith.constant 1 : index
    %c0_102 = arith.constant 0 : index
    %c0_103 = arith.constant 0 : index
    %132 = vector.load %arg11[%c1_101, %c0_102, %c0_103] : memref<4x1x32xf32, #tpu.memory_space<vmem>>, vector<1x1x32xf32>
    %133 = vector.shape_cast %132 : vector<1x1x32xf32> to vector<1x32xf32>
    %134 = vector.broadcast %133 : vector<1x32xf32> to vector<16x32xf32>
    %135 = arith.mulf %109, %134 : vector<16x32xf32>
    %cst_104 = arith.constant dense<0.000000e+00> : vector<16xf32>
    %136 = vector.multi_reduction <add>, %135, %cst_104 [1] : vector<16x32xf32> to vector<16xf32>
    %137 = vector.shape_cast %136 : vector<16xf32> to vector<16x1xf32>
    %c1_105 = arith.constant 1 : index
    %c0_106 = arith.constant 0 : index
    %c0_107 = arith.constant 0 : index
    %138 = vector.load %arg12[%c1_105, %c0_106, %c0_107] : memref<4x1x32xf32, #tpu.memory_space<vmem>>, vector<1x1x32xf32>
    %139 = vector.shape_cast %138 : vector<1x1x32xf32> to vector<1x32xf32>
    %140 = vector.broadcast %139 : vector<1x32xf32> to vector<16x32xf32>
    %141 = arith.mulf %114, %140 : vector<16x32xf32>
    %cst_108 = arith.constant dense<0.000000e+00> : vector<16xf32>
    %142 = vector.multi_reduction <add>, %141, %cst_108 [1] : vector<16x32xf32> to vector<16xf32>
    %143 = vector.shape_cast %142 : vector<16xf32> to vector<16x1xf32>
    %144 = arith.addf %137, %143 : vector<16x1xf32>
    %c1_109 = arith.constant 1 : index
    %c0_110 = arith.constant 0 : index
    %c0_111 = arith.constant 0 : index
    %145 = vector.load %arg13[%c1_109, %c0_110, %c0_111] : memref<4x1x1xf32, #tpu.memory_space<vmem>>, vector<1x1x1xf32>
    %146 = vector.shape_cast %145 : vector<1x1x1xf32> to vector<1x1xf32>
    %147 = vector.broadcast %146 : vector<1x1xf32> to vector<16x1xf32>
    %148 = arith.addf %144, %147 : vector<16x1xf32>
    %cst_112 = arith.constant dense<0xFF800000> : vector<1xf32>
    %149 = vector.multi_reduction <maximumf>, %131, %cst_112 [0] : vector<8x1xf32> to vector<1xf32>
    %150 = vector.shape_cast %149 : vector<1xf32> to vector<1x1xf32>
    %151 = vector.broadcast %150 : vector<1x1xf32> to vector<8x1xf32>
    %152 = arith.subf %131, %151 : vector<8x1xf32>
    %153 = math.exp %152 : vector<8x1xf32>
    %154 = arith.mulf %153, %5 : vector<8x1xf32>
    %cst_113 = arith.constant dense<0.000000e+00> : vector<1xf32>
    %155 = vector.multi_reduction <add>, %154, %cst_113 [0] : vector<8x1xf32> to vector<1xf32>
    %156 = vector.shape_cast %155 : vector<1xf32> to vector<1x1xf32>
    %cst_114 = arith.constant 9.99999997E-7 : f32
    %157 = vector.broadcast %cst_114 : f32 to vector<1x1xf32>
    %158 = arith.addf %156, %157 : vector<1x1xf32>
    %159 = vector.broadcast %158 : vector<1x1xf32> to vector<8x1xf32>
    %160 = arith.divf %154, %159 : vector<8x1xf32>
    %cst_115 = arith.constant dense<0xFF800000> : vector<1xf32>
    %161 = vector.multi_reduction <maximumf>, %148, %cst_115 [0] : vector<16x1xf32> to vector<1xf32>
    %162 = vector.shape_cast %161 : vector<1xf32> to vector<1x1xf32>
    %163 = vector.broadcast %162 : vector<1x1xf32> to vector<16x1xf32>
    %164 = arith.subf %148, %163 : vector<16x1xf32>
    %165 = math.exp %164 : vector<16x1xf32>
    %166 = arith.mulf %165, %9 : vector<16x1xf32>
    %cst_116 = arith.constant dense<0.000000e+00> : vector<1xf32>
    %167 = vector.multi_reduction <add>, %166, %cst_116 [0] : vector<16x1xf32> to vector<1xf32>
    %168 = vector.shape_cast %167 : vector<1xf32> to vector<1x1xf32>
    %cst_117 = arith.constant 9.99999997E-7 : f32
    %169 = vector.broadcast %cst_117 : f32 to vector<1x1xf32>
    %170 = arith.addf %168, %169 : vector<1x1xf32>
    %171 = vector.broadcast %170 : vector<1x1xf32> to vector<16x1xf32>
    %172 = arith.divf %166, %171 : vector<16x1xf32>
    %173 = vector.broadcast %160 : vector<8x1xf32> to vector<8x32xf32>
    %174 = arith.mulf %1, %173 : vector<8x32xf32>
    %cst_118 = arith.constant dense<0.000000e+00> : vector<32xf32>
    %175 = vector.multi_reduction <add>, %174, %cst_118 [0] : vector<8x32xf32> to vector<32xf32>
    %176 = vector.shape_cast %175 : vector<32xf32> to vector<1x32xf32>
    %c0_119 = arith.constant 0 : index
    %c1_120 = arith.constant 1 : index
    %c0_121 = arith.constant 0 : index
    %177 = vector.load %arg14[%c0_119, %c1_120, %c0_121] : memref<1x4x32xf32, #tpu.memory_space<vmem>>, vector<1x1x32xf32>
    %178 = vector.shape_cast %177 : vector<1x1x32xf32> to vector<1x32xf32>
    %179 = vector.shape_cast %176 : vector<1x32xf32> to vector<1x1x32xf32>
    tpu.vector_store %arg14[%c0_119, %c1_120, %c0_121], %179 {strides = array<i32>} : memref<1x4x32xf32, #tpu.memory_space<vmem>>, vector<1x1x32xf32>,
    %180 = vector.broadcast %172 : vector<16x1xf32> to vector<16x32xf32>
    %181 = arith.mulf %3, %180 : vector<16x32xf32>
    %cst_122 = arith.constant dense<0.000000e+00> : vector<32xf32>
    %182 = vector.multi_reduction <add>, %181, %cst_122 [0] : vector<16x32xf32> to vector<32xf32>
    %183 = vector.shape_cast %182 : vector<32xf32> to vector<1x32xf32>
    %c0_123 = arith.constant 0 : index
    %c1_124 = arith.constant 1 : index
    %c0_125 = arith.constant 0 : index
    %184 = vector.load %arg15[%c0_123, %c1_124, %c0_125] : memref<1x4x32xf32, #tpu.memory_space<vmem>>, vector<1x1x32xf32>
    %185 = vector.shape_cast %184 : vector<1x1x32xf32> to vector<1x32xf32>
    %186 = vector.shape_cast %183 : vector<1x32xf32> to vector<1x1x32xf32>
    tpu.vector_store %arg15[%c0_123, %c1_124, %c0_125], %186 {strides = array<i32>} : memref<1x4x32xf32, #tpu.memory_space<vmem>>, vector<1x1x32xf32>,
    %c0_126 = arith.constant 0 : index
    %c2 = arith.constant 2 : index
    %c0_127 = arith.constant 0 : index
    %c0_128 = arith.constant 0 : index
    %187 = vector.load %arg6[%c0_126, %c2, %c0_127, %c0_128] : memref<1x12x8x32xf32, #tpu.memory_space<vmem>>, vector<1x1x8x32xf32>
    %188 = vector.shape_cast %187 : vector<1x1x8x32xf32> to vector<8x32xf32>
    %c0_129 = arith.constant 0 : index
    %c6 = arith.constant 6 : index
    %c0_130 = arith.constant 0 : index
    %c0_131 = arith.constant 0 : index
    %189 = vector.load %arg6[%c0_129, %c6, %c0_130, %c0_131] : memref<1x12x8x32xf32, #tpu.memory_space<vmem>>, vector<1x1x8x32xf32>
    %190 = vector.shape_cast %189 : vector<1x1x8x32xf32> to vector<8x32xf32>
    %c0_132 = arith.constant 0 : index
    %c10 = arith.constant 10 : index
    %c0_133 = arith.constant 0 : index
    %c0_134 = arith.constant 0 : index
    %191 = vector.load %arg6[%c0_132, %c10, %c0_133, %c0_134] : memref<1x12x8x32xf32, #tpu.memory_space<vmem>>, vector<1x1x8x32xf32>
    %192 = vector.shape_cast %191 : vector<1x1x8x32xf32> to vector<8x32xf32>
    %c0_135 = arith.constant 0 : index
    %c2_136 = arith.constant 2 : index
    %c0_137 = arith.constant 0 : index
    %c0_138 = arith.constant 0 : index
    %193 = vector.load %arg7[%c0_135, %c2_136, %c0_137, %c0_138] : memref<1x8x16x32xf32, #tpu.memory_space<vmem>>, vector<1x1x16x32xf32>
    %194 = vector.shape_cast %193 : vector<1x1x16x32xf32> to vector<16x32xf32>
    %c0_139 = arith.constant 0 : index
    %c6_140 = arith.constant 6 : index
    %c0_141 = arith.constant 0 : index
    %c0_142 = arith.constant 0 : index
    %195 = vector.load %arg7[%c0_139, %c6_140, %c0_141, %c0_142] : memref<1x8x16x32xf32, #tpu.memory_space<vmem>>, vector<1x1x16x32xf32>
    %196 = vector.shape_cast %195 : vector<1x1x16x32xf32> to vector<16x32xf32>
    %cst_143 = arith.constant dense<0.000000e+00> : vector<8x16xf32>
    %197 = tpu.matmul %188, %3, %cst_143 {dimension_numbers = #tpu.dot_dimension_numbers<[1], [1], [0], [0], [0, 0, 1, 0], [], []>} : vector<8x32xf32>, vector<16x32xf32>, vector<8x16xf32> -> vector<8x16xf32>
    %198 = math.tanh %197 : vector<8x16xf32>
    %199 = arith.mulf %198, %12 : vector<8x16xf32>
    %cst_144 = arith.constant dense<0.000000e+00> : vector<8x32xf32>
    %200 = tpu.matmul %199, %194, %cst_144 {dimension_numbers = #tpu.dot_dimension_numbers<[1], [0], [0], [1], [0, 0, 1, 1], [], []>} : vector<8x16xf32>, vector<16x32xf32>, vector<8x32xf32> -> vector<8x32xf32>
    %cst_145 = arith.constant dense<0.000000e+00> : vector<16x32xf32>
    %201 = tpu.matmul %199, %190, %cst_145 {dimension_numbers = #tpu.dot_dimension_numbers<[0], [0], [1], [1], [0, 1, 1, 1], [], []>} : vector<8x16xf32>, vector<8x32xf32>, vector<16x32xf32> -> vector<16x32xf32>
    %c2_146 = arith.constant 2 : index
    %c0_147 = arith.constant 0 : index
    %c0_148 = arith.constant 0 : index
    %202 = vector.load %arg8[%c2_146, %c0_147, %c0_148] : memref<4x1x32xf32, #tpu.memory_space<vmem>>, vector<1x1x32xf32>
    %203 = vector.shape_cast %202 : vector<1x1x32xf32> to vector<1x32xf32>
    %204 = vector.broadcast %203 : vector<1x32xf32> to vector<8x32xf32>
    %205 = arith.mulf %192, %204 : vector<8x32xf32>
    %cst_149 = arith.constant dense<0.000000e+00> : vector<8xf32>
    %206 = vector.multi_reduction <add>, %205, %cst_149 [1] : vector<8x32xf32> to vector<8xf32>
    %207 = vector.shape_cast %206 : vector<8xf32> to vector<8x1xf32>
    %c2_150 = arith.constant 2 : index
    %c0_151 = arith.constant 0 : index
    %c0_152 = arith.constant 0 : index
    %208 = vector.load %arg9[%c2_150, %c0_151, %c0_152] : memref<4x1x32xf32, #tpu.memory_space<vmem>>, vector<1x1x32xf32>
    %209 = vector.shape_cast %208 : vector<1x1x32xf32> to vector<1x32xf32>
    %210 = vector.broadcast %209 : vector<1x32xf32> to vector<8x32xf32>
    %211 = arith.mulf %200, %210 : vector<8x32xf32>
    %cst_153 = arith.constant dense<0.000000e+00> : vector<8xf32>
    %212 = vector.multi_reduction <add>, %211, %cst_153 [1] : vector<8x32xf32> to vector<8xf32>
    %213 = vector.shape_cast %212 : vector<8xf32> to vector<8x1xf32>
    %214 = arith.addf %207, %213 : vector<8x1xf32>
    %c2_154 = arith.constant 2 : index
    %c0_155 = arith.constant 0 : index
    %c0_156 = arith.constant 0 : index
    %215 = vector.load %arg10[%c2_154, %c0_155, %c0_156] : memref<4x1x1xf32, #tpu.memory_space<vmem>>, vector<1x1x1xf32>
    %216 = vector.shape_cast %215 : vector<1x1x1xf32> to vector<1x1xf32>
    %217 = vector.broadcast %216 : vector<1x1xf32> to vector<8x1xf32>
    %218 = arith.addf %214, %217 : vector<8x1xf32>
    %c2_157 = arith.constant 2 : index
    %c0_158 = arith.constant 0 : index
    %c0_159 = arith.constant 0 : index
    %219 = vector.load %arg11[%c2_157, %c0_158, %c0_159] : memref<4x1x32xf32, #tpu.memory_space<vmem>>, vector<1x1x32xf32>
    %220 = vector.shape_cast %219 : vector<1x1x32xf32> to vector<1x32xf32>
    %221 = vector.broadcast %220 : vector<1x32xf32> to vector<16x32xf32>
    %222 = arith.mulf %196, %221 : vector<16x32xf32>
    %cst_160 = arith.constant dense<0.000000e+00> : vector<16xf32>
    %223 = vector.multi_reduction <add>, %222, %cst_160 [1] : vector<16x32xf32> to vector<16xf32>
    %224 = vector.shape_cast %223 : vector<16xf32> to vector<16x1xf32>
    %c2_161 = arith.constant 2 : index
    %c0_162 = arith.constant 0 : index
    %c0_163 = arith.constant 0 : index
    %225 = vector.load %arg12[%c2_161, %c0_162, %c0_163] : memref<4x1x32xf32, #tpu.memory_space<vmem>>, vector<1x1x32xf32>
    %226 = vector.shape_cast %225 : vector<1x1x32xf32> to vector<1x32xf32>
    %227 = vector.broadcast %226 : vector<1x32xf32> to vector<16x32xf32>
    %228 = arith.mulf %201, %227 : vector<16x32xf32>
    %cst_164 = arith.constant dense<0.000000e+00> : vector<16xf32>
    %229 = vector.multi_reduction <add>, %228, %cst_164 [1] : vector<16x32xf32> to vector<16xf32>
    %230 = vector.shape_cast %229 : vector<16xf32> to vector<16x1xf32>
    %231 = arith.addf %224, %230 : vector<16x1xf32>
    %c2_165 = arith.constant 2 : index
    %c0_166 = arith.constant 0 : index
    %c0_167 = arith.constant 0 : index
    %232 = vector.load %arg13[%c2_165, %c0_166, %c0_167] : memref<4x1x1xf32, #tpu.memory_space<vmem>>, vector<1x1x1xf32>
    %233 = vector.shape_cast %232 : vector<1x1x1xf32> to vector<1x1xf32>
    %234 = vector.broadcast %233 : vector<1x1xf32> to vector<16x1xf32>
    %235 = arith.addf %231, %234 : vector<16x1xf32>
    %cst_168 = arith.constant dense<0xFF800000> : vector<1xf32>
    %236 = vector.multi_reduction <maximumf>, %218, %cst_168 [0] : vector<8x1xf32> to vector<1xf32>
    %237 = vector.shape_cast %236 : vector<1xf32> to vector<1x1xf32>
    %238 = vector.broadcast %237 : vector<1x1xf32> to vector<8x1xf32>
    %239 = arith.subf %218, %238 : vector<8x1xf32>
    %240 = math.exp %239 : vector<8x1xf32>
    %241 = arith.mulf %240, %5 : vector<8x1xf32>
    %cst_169 = arith.constant dense<0.000000e+00> : vector<1xf32>
    %242 = vector.multi_reduction <add>, %241, %cst_169 [0] : vector<8x1xf32> to vector<1xf32>
    %243 = vector.shape_cast %242 : vector<1xf32> to vector<1x1xf32>
    %cst_170 = arith.constant 9.99999997E-7 : f32
    %244 = vector.broadcast %cst_170 : f32 to vector<1x1xf32>
    %245 = arith.addf %243, %244 : vector<1x1xf32>
    %246 = vector.broadcast %245 : vector<1x1xf32> to vector<8x1xf32>
    %247 = arith.divf %241, %246 : vector<8x1xf32>
    %cst_171 = arith.constant dense<0xFF800000> : vector<1xf32>
    %248 = vector.multi_reduction <maximumf>, %235, %cst_171 [0] : vector<16x1xf32> to vector<1xf32>
    %249 = vector.shape_cast %248 : vector<1xf32> to vector<1x1xf32>
    %250 = vector.broadcast %249 : vector<1x1xf32> to vector<16x1xf32>
    %251 = arith.subf %235, %250 : vector<16x1xf32>
    %252 = math.exp %251 : vector<16x1xf32>
    %253 = arith.mulf %252, %9 : vector<16x1xf32>
    %cst_172 = arith.constant dense<0.000000e+00> : vector<1xf32>
    %254 = vector.multi_reduction <add>, %253, %cst_172 [0] : vector<16x1xf32> to vector<1xf32>
    %255 = vector.shape_cast %254 : vector<1xf32> to vector<1x1xf32>
    %cst_173 = arith.constant 9.99999997E-7 : f32
    %256 = vector.broadcast %cst_173 : f32 to vector<1x1xf32>
    %257 = arith.addf %255, %256 : vector<1x1xf32>
    %258 = vector.broadcast %257 : vector<1x1xf32> to vector<16x1xf32>
    %259 = arith.divf %253, %258 : vector<16x1xf32>
    %260 = vector.broadcast %247 : vector<8x1xf32> to vector<8x32xf32>
    %261 = arith.mulf %1, %260 : vector<8x32xf32>
    %cst_174 = arith.constant dense<0.000000e+00> : vector<32xf32>
    %262 = vector.multi_reduction <add>, %261, %cst_174 [0] : vector<8x32xf32> to vector<32xf32>
    %263 = vector.shape_cast %262 : vector<32xf32> to vector<1x32xf32>
    %c0_175 = arith.constant 0 : index
    %c2_176 = arith.constant 2 : index
    %c0_177 = arith.constant 0 : index
    %264 = vector.load %arg14[%c0_175, %c2_176, %c0_177] : memref<1x4x32xf32, #tpu.memory_space<vmem>>, vector<1x1x32xf32>
    %265 = vector.shape_cast %264 : vector<1x1x32xf32> to vector<1x32xf32>
    %266 = vector.shape_cast %263 : vector<1x32xf32> to vector<1x1x32xf32>
    tpu.vector_store %arg14[%c0_175, %c2_176, %c0_177], %266 {strides = array<i32>} : memref<1x4x32xf32, #tpu.memory_space<vmem>>, vector<1x1x32xf32>,
    %267 = vector.broadcast %259 : vector<16x1xf32> to vector<16x32xf32>
    %268 = arith.mulf %3, %267 : vector<16x32xf32>
    %cst_178 = arith.constant dense<0.000000e+00> : vector<32xf32>
    %269 = vector.multi_reduction <add>, %268, %cst_178 [0] : vector<16x32xf32> to vector<32xf32>
    %270 = vector.shape_cast %269 : vector<32xf32> to vector<1x32xf32>
    %c0_179 = arith.constant 0 : index
    %c2_180 = arith.constant 2 : index
    %c0_181 = arith.constant 0 : index
    %271 = vector.load %arg15[%c0_179, %c2_180, %c0_181] : memref<1x4x32xf32, #tpu.memory_space<vmem>>, vector<1x1x32xf32>
    %272 = vector.shape_cast %271 : vector<1x1x32xf32> to vector<1x32xf32>
    %273 = vector.shape_cast %270 : vector<1x32xf32> to vector<1x1x32xf32>
    tpu.vector_store %arg15[%c0_179, %c2_180, %c0_181], %273 {strides = array<i32>} : memref<1x4x32xf32, #tpu.memory_space<vmem>>, vector<1x1x32xf32>,
    %c0_182 = arith.constant 0 : index
    %c3 = arith.constant 3 : index
    %c0_183 = arith.constant 0 : index
    %c0_184 = arith.constant 0 : index
    %274 = vector.load %arg6[%c0_182, %c3, %c0_183, %c0_184] : memref<1x12x8x32xf32, #tpu.memory_space<vmem>>, vector<1x1x8x32xf32>
    %275 = vector.shape_cast %274 : vector<1x1x8x32xf32> to vector<8x32xf32>
    %c0_185 = arith.constant 0 : index
    %c7 = arith.constant 7 : index
    %c0_186 = arith.constant 0 : index
    %c0_187 = arith.constant 0 : index
    %276 = vector.load %arg6[%c0_185, %c7, %c0_186, %c0_187] : memref<1x12x8x32xf32, #tpu.memory_space<vmem>>, vector<1x1x8x32xf32>
    %277 = vector.shape_cast %276 : vector<1x1x8x32xf32> to vector<8x32xf32>
    %c0_188 = arith.constant 0 : index
    %c11 = arith.constant 11 : index
    %c0_189 = arith.constant 0 : index
    %c0_190 = arith.constant 0 : index
    %278 = vector.load %arg6[%c0_188, %c11, %c0_189, %c0_190] : memref<1x12x8x32xf32, #tpu.memory_space<vmem>>, vector<1x1x8x32xf32>
    %279 = vector.shape_cast %278 : vector<1x1x8x32xf32> to vector<8x32xf32>
    %c0_191 = arith.constant 0 : index
    %c3_192 = arith.constant 3 : index
    %c0_193 = arith.constant 0 : index
    %c0_194 = arith.constant 0 : index
    %280 = vector.load %arg7[%c0_191, %c3_192, %c0_193, %c0_194] : memref<1x8x16x32xf32, #tpu.memory_space<vmem>>, vector<1x1x16x32xf32>
    %281 = vector.shape_cast %280 : vector<1x1x16x32xf32> to vector<16x32xf32>
    %c0_195 = arith.constant 0 : index
    %c7_196 = arith.constant 7 : index
    %c0_197 = arith.constant 0 : index
    %c0_198 = arith.constant 0 : index
    %282 = vector.load %arg7[%c0_195, %c7_196, %c0_197, %c0_198] : memref<1x8x16x32xf32, #tpu.memory_space<vmem>>, vector<1x1x16x32xf32>
    %283 = vector.shape_cast %282 : vector<1x1x16x32xf32> to vector<16x32xf32>
    %cst_199 = arith.constant dense<0.000000e+00> : vector<8x16xf32>
    %284 = tpu.matmul %275, %3, %cst_199 {dimension_numbers = #tpu.dot_dimension_numbers<[1], [1], [0], [0], [0, 0, 1, 0], [], []>} : vector<8x32xf32>, vector<16x32xf32>, vector<8x16xf32> -> vector<8x16xf32>
    %285 = math.tanh %284 : vector<8x16xf32>
    %286 = arith.mulf %285, %12 : vector<8x16xf32>
    %cst_200 = arith.constant dense<0.000000e+00> : vector<8x32xf32>
    %287 = tpu.matmul %286, %281, %cst_200 {dimension_numbers = #tpu.dot_dimension_numbers<[1], [0], [0], [1], [0, 0, 1, 1], [], []>} : vector<8x16xf32>, vector<16x32xf32>, vector<8x32xf32> -> vector<8x32xf32>
    %cst_201 = arith.constant dense<0.000000e+00> : vector<16x32xf32>
    %288 = tpu.matmul %286, %277, %cst_201 {dimension_numbers = #tpu.dot_dimension_numbers<[0], [0], [1], [1], [0, 1, 1, 1], [], []>} : vector<8x16xf32>, vector<8x32xf32>, vector<16x32xf32> -> vector<16x32xf32>
    %c3_202 = arith.constant 3 : index
    %c0_203 = arith.constant 0 : index
    %c0_204 = arith.constant 0 : index
    %289 = vector.load %arg8[%c3_202, %c0_203, %c0_204] : memref<4x1x32xf32, #tpu.memory_space<vmem>>, vector<1x1x32xf32>
    %290 = vector.shape_cast %289 : vector<1x1x32xf32> to vector<1x32xf32>
    %291 = vector.broadcast %290 : vector<1x32xf32> to vector<8x32xf32>
    %292 = arith.mulf %279, %291 : vector<8x32xf32>
    %cst_205 = arith.constant dense<0.000000e+00> : vector<8xf32>
    %293 = vector.multi_reduction <add>, %292, %cst_205 [1] : vector<8x32xf32> to vector<8xf32>
    %294 = vector.shape_cast %293 : vector<8xf32> to vector<8x1xf32>
    %c3_206 = arith.constant 3 : index
    %c0_207 = arith.constant 0 : index
    %c0_208 = arith.constant 0 : index
    %295 = vector.load %arg9[%c3_206, %c0_207, %c0_208] : memref<4x1x32xf32, #tpu.memory_space<vmem>>, vector<1x1x32xf32>
    %296 = vector.shape_cast %295 : vector<1x1x32xf32> to vector<1x32xf32>
    %297 = vector.broadcast %296 : vector<1x32xf32> to vector<8x32xf32>
    %298 = arith.mulf %287, %297 : vector<8x32xf32>
    %cst_209 = arith.constant dense<0.000000e+00> : vector<8xf32>
    %299 = vector.multi_reduction <add>, %298, %cst_209 [1] : vector<8x32xf32> to vector<8xf32>
    %300 = vector.shape_cast %299 : vector<8xf32> to vector<8x1xf32>
    %301 = arith.addf %294, %300 : vector<8x1xf32>
    %c3_210 = arith.constant 3 : index
    %c0_211 = arith.constant 0 : index
    %c0_212 = arith.constant 0 : index
    %302 = vector.load %arg10[%c3_210, %c0_211, %c0_212] : memref<4x1x1xf32, #tpu.memory_space<vmem>>, vector<1x1x1xf32>
    %303 = vector.shape_cast %302 : vector<1x1x1xf32> to vector<1x1xf32>
    %304 = vector.broadcast %303 : vector<1x1xf32> to vector<8x1xf32>
    %305 = arith.addf %301, %304 : vector<8x1xf32>
    %c3_213 = arith.constant 3 : index
    %c0_214 = arith.constant 0 : index
    %c0_215 = arith.constant 0 : index
    %306 = vector.load %arg11[%c3_213, %c0_214, %c0_215] : memref<4x1x32xf32, #tpu.memory_space<vmem>>, vector<1x1x32xf32>
    %307 = vector.shape_cast %306 : vector<1x1x32xf32> to vector<1x32xf32>
    %308 = vector.broadcast %307 : vector<1x32xf32> to vector<16x32xf32>
    %309 = arith.mulf %283, %308 : vector<16x32xf32>
    %cst_216 = arith.constant dense<0.000000e+00> : vector<16xf32>
    %310 = vector.multi_reduction <add>, %309, %cst_216 [1] : vector<16x32xf32> to vector<16xf32>
    %311 = vector.shape_cast %310 : vector<16xf32> to vector<16x1xf32>
    %c3_217 = arith.constant 3 : index
    %c0_218 = arith.constant 0 : index
    %c0_219 = arith.constant 0 : index
    %312 = vector.load %arg12[%c3_217, %c0_218, %c0_219] : memref<4x1x32xf32, #tpu.memory_space<vmem>>, vector<1x1x32xf32>
    %313 = vector.shape_cast %312 : vector<1x1x32xf32> to vector<1x32xf32>
    %314 = vector.broadcast %313 : vector<1x32xf32> to vector<16x32xf32>
    %315 = arith.mulf %288, %314 : vector<16x32xf32>
    %cst_220 = arith.constant dense<0.000000e+00> : vector<16xf32>
    %316 = vector.multi_reduction <add>, %315, %cst_220 [1] : vector<16x32xf32> to vector<16xf32>
    %317 = vector.shape_cast %316 : vector<16xf32> to vector<16x1xf32>
    %318 = arith.addf %311, %317 : vector<16x1xf32>
    %c3_221 = arith.constant 3 : index
    %c0_222 = arith.constant 0 : index
    %c0_223 = arith.constant 0 : index
    %319 = vector.load %arg13[%c3_221, %c0_222, %c0_223] : memref<4x1x1xf32, #tpu.memory_space<vmem>>, vector<1x1x1xf32>
    %320 = vector.shape_cast %319 : vector<1x1x1xf32> to vector<1x1xf32>
    %321 = vector.broadcast %320 : vector<1x1xf32> to vector<16x1xf32>
    %322 = arith.addf %318, %321 : vector<16x1xf32>
    %cst_224 = arith.constant dense<0xFF800000> : vector<1xf32>
    %323 = vector.multi_reduction <maximumf>, %305, %cst_224 [0] : vector<8x1xf32> to vector<1xf32>
    %324 = vector.shape_cast %323 : vector<1xf32> to vector<1x1xf32>
    %325 = vector.broadcast %324 : vector<1x1xf32> to vector<8x1xf32>
    %326 = arith.subf %305, %325 : vector<8x1xf32>
    %327 = math.exp %326 : vector<8x1xf32>
    %328 = arith.mulf %327, %5 : vector<8x1xf32>
    %cst_225 = arith.constant dense<0.000000e+00> : vector<1xf32>
    %329 = vector.multi_reduction <add>, %328, %cst_225 [0] : vector<8x1xf32> to vector<1xf32>
    %330 = vector.shape_cast %329 : vector<1xf32> to vector<1x1xf32>
    %cst_226 = arith.constant 9.99999997E-7 : f32
    %331 = vector.broadcast %cst_226 : f32 to vector<1x1xf32>
    %332 = arith.addf %330, %331 : vector<1x1xf32>
    %333 = vector.broadcast %332 : vector<1x1xf32> to vector<8x1xf32>
    %334 = arith.divf %328, %333 : vector<8x1xf32>
    %cst_227 = arith.constant dense<0xFF800000> : vector<1xf32>
    %335 = vector.multi_reduction <maximumf>, %322, %cst_227 [0] : vector<16x1xf32> to vector<1xf32>
    %336 = vector.shape_cast %335 : vector<1xf32> to vector<1x1xf32>
    %337 = vector.broadcast %336 : vector<1x1xf32> to vector<16x1xf32>
    %338 = arith.subf %322, %337 : vector<16x1xf32>
    %339 = math.exp %338 : vector<16x1xf32>
    %340 = arith.mulf %339, %9 : vector<16x1xf32>
    %cst_228 = arith.constant dense<0.000000e+00> : vector<1xf32>
    %341 = vector.multi_reduction <add>, %340, %cst_228 [0] : vector<16x1xf32> to vector<1xf32>
    %342 = vector.shape_cast %341 : vector<1xf32> to vector<1x1xf32>
    %cst_229 = arith.constant 9.99999997E-7 : f32
    %343 = vector.broadcast %cst_229 : f32 to vector<1x1xf32>
    %344 = arith.addf %342, %343 : vector<1x1xf32>
    %345 = vector.broadcast %344 : vector<1x1xf32> to vector<16x1xf32>
    %346 = arith.divf %340, %345 : vector<16x1xf32>
    %347 = vector.broadcast %334 : vector<8x1xf32> to vector<8x32xf32>
    %348 = arith.mulf %1, %347 : vector<8x32xf32>
    %cst_230 = arith.constant dense<0.000000e+00> : vector<32xf32>
    %349 = vector.multi_reduction <add>, %348, %cst_230 [0] : vector<8x32xf32> to vector<32xf32>
    %350 = vector.shape_cast %349 : vector<32xf32> to vector<1x32xf32>
    %c0_231 = arith.constant 0 : index
    %c3_232 = arith.constant 3 : index
    %c0_233 = arith.constant 0 : index
    %351 = vector.load %arg14[%c0_231, %c3_232, %c0_233] : memref<1x4x32xf32, #tpu.memory_space<vmem>>, vector<1x1x32xf32>
    %352 = vector.shape_cast %351 : vector<1x1x32xf32> to vector<1x32xf32>
    %353 = vector.shape_cast %350 : vector<1x32xf32> to vector<1x1x32xf32>
    tpu.vector_store %arg14[%c0_231, %c3_232, %c0_233], %353 {strides = array<i32>} : memref<1x4x32xf32, #tpu.memory_space<vmem>>, vector<1x1x32xf32>,
    %354 = vector.broadcast %346 : vector<16x1xf32> to vector<16x32xf32>
    %355 = arith.mulf %3, %354 : vector<16x32xf32>
    %cst_234 = arith.constant dense<0.000000e+00> : vector<32xf32>
    %356 = vector.multi_reduction <add>, %355, %cst_234 [0] : vector<16x32xf32> to vector<32xf32>
    %357 = vector.shape_cast %356 : vector<32xf32> to vector<1x32xf32>
    %c0_235 = arith.constant 0 : index
    %c3_236 = arith.constant 3 : index
    %c0_237 = arith.constant 0 : index
    %358 = vector.load %arg15[%c0_235, %c3_236, %c0_237] : memref<1x4x32xf32, #tpu.memory_space<vmem>>, vector<1x1x32xf32>
    %359 = vector.shape_cast %358 : vector<1x1x32xf32> to vector<1x32xf32>
    %360 = vector.shape_cast %357 : vector<1x32xf32> to vector<1x1x32xf32>
    tpu.vector_store %arg15[%c0_235, %c3_236, %c0_237], %360 {strides = array<i32>} : memref<1x4x32xf32, #tpu.memory_space<vmem>>, vector<1x1x32xf32>,
    return
  }
  func.func @transform_0(%arg0: i32) -> (i32, i32, i32) {
    %c0_i32 = arith.constant 0 : i32
    %c0_i32_0 = arith.constant 0 : i32
    %c0_i32_1 = arith.constant 0 : i32
    return %arg0, %c0_i32, %c0_i32_0 : i32, i32, i32
  }
  func.func @transform_1(%arg0: i32) -> (i32, i32, i32) {
    %c0_i32 = arith.constant 0 : i32
    %c0_i32_0 = arith.constant 0 : i32
    %c0_i32_1 = arith.constant 0 : i32
    return %arg0, %c0_i32, %c0_i32_0 : i32, i32, i32
  }
  func.func @transform_2(%arg0: i32) -> (i32, i32, i32) {
    %c0_i32 = arith.constant 0 : i32
    %c0_i32_0 = arith.constant 0 : i32
    %c0_i32_1 = arith.constant 0 : i32
    return %arg0, %c0_i32, %c0_i32_0 : i32, i32, i32
  }
  func.func @transform_3(%arg0: i32) -> (i32, i32, i32) {
    %c0_i32 = arith.constant 0 : i32
    %c0_i32_0 = arith.constant 0 : i32
    %c0_i32_1 = arith.constant 0 : i32
    return %arg0, %c0_i32, %c0_i32_0 : i32, i32, i32
  }
  func.func @transform_4(%arg0: i32) -> (i32, i32, i32) {
    %c0_i32 = arith.constant 0 : i32
    %c0_i32_0 = arith.constant 0 : i32
    %c0_i32_1 = arith.constant 0 : i32
    return %arg0, %c0_i32, %c0_i32_0 : i32, i32, i32
  }
  func.func @transform_5(%arg0: i32) -> (i32, i32, i32, i32) {
    %c0_i32 = arith.constant 0 : i32
    %c0_i32_0 = arith.constant 0 : i32
    %c0_i32_1 = arith.constant 0 : i32
    %c0_i32_2 = arith.constant 0 : i32
    return %arg0, %c0_i32, %c0_i32_0, %c0_i32_1 : i32, i32, i32, i32
  }
  func.func @transform_6(%arg0: i32) -> (i32, i32, i32, i32) {
    %c0_i32 = arith.constant 0 : i32
    %c0_i32_0 = arith.constant 0 : i32
    %c0_i32_1 = arith.constant 0 : i32
    %c0_i32_2 = arith.constant 0 : i32
    return %arg0, %c0_i32, %c0_i32_0, %c0_i32_1 : i32, i32, i32, i32
  }
  func.func @transform_7(%arg0: i32) -> (i32, i32, i32) {
    %c0_i32 = arith.constant 0 : i32
    %c0_i32_0 = arith.constant 0 : i32
    %c0_i32_1 = arith.constant 0 : i32
    %c0_i32_2 = arith.constant 0 : i32
    return %c0_i32, %c0_i32_0, %c0_i32_1 : i32, i32, i32
  }
  func.func @transform_8(%arg0: i32) -> (i32, i32, i32) {
    %c0_i32 = arith.constant 0 : i32
    %c0_i32_0 = arith.constant 0 : i32
    %c0_i32_1 = arith.constant 0 : i32
    %c0_i32_2 = arith.constant 0 : i32
    return %c0_i32, %c0_i32_0, %c0_i32_1 : i32, i32, i32
  }
  func.func @transform_9(%arg0: i32) -> (i32, i32, i32) {
    %c0_i32 = arith.constant 0 : i32
    %c0_i32_0 = arith.constant 0 : i32
    %c0_i32_1 = arith.constant 0 : i32
    %c0_i32_2 = arith.constant 0 : i32
    return %c0_i32, %c0_i32_0, %c0_i32_1 : i32, i32, i32
  }
  func.func @transform_10(%arg0: i32) -> (i32, i32, i32) {
    %c0_i32 = arith.constant 0 : i32
    %c0_i32_0 = arith.constant 0 : i32
    %c0_i32_1 = arith.constant 0 : i32
    %c0_i32_2 = arith.constant 0 : i32
    return %c0_i32, %c0_i32_0, %c0_i32_1 : i32, i32, i32
  }
  func.func @transform_11(%arg0: i32) -> (i32, i32, i32) {
    %c0_i32 = arith.constant 0 : i32
    %c0_i32_0 = arith.constant 0 : i32
    %c0_i32_1 = arith.constant 0 : i32
    %c0_i32_2 = arith.constant 0 : i32
    return %c0_i32, %c0_i32_0, %c0_i32_1 : i32, i32, i32
  }
  func.func @transform_12(%arg0: i32) -> (i32, i32, i32) {
    %c0_i32 = arith.constant 0 : i32
    %c0_i32_0 = arith.constant 0 : i32
    %c0_i32_1 = arith.constant 0 : i32
    %c0_i32_2 = arith.constant 0 : i32
    return %c0_i32, %c0_i32_0, %c0_i32_1 : i32, i32, i32
  }
  func.func @transform_13(%arg0: i32) -> (i32, i32, i32) {
    %c0_i32 = arith.constant 0 : i32
    %c0_i32_0 = arith.constant 0 : i32
    %c0_i32_1 = arith.constant 0 : i32
    return %arg0, %c0_i32, %c0_i32_0 : i32, i32, i32
  }
  func.func @transform_14(%arg0: i32) -> (i32, i32, i32) {
    %c0_i32 = arith.constant 0 : i32
    %c0_i32_0 = arith.constant 0 : i32
    %c0_i32_1 = arith.constant 0 : i32
    return %arg0, %c0_i32, %c0_i32_0 : i32, i32, i32
  }
}

module attributes {stable_mosaic.version = 11 : i64} {
  func.func @_tail_kernel(%arg0: memref<2x128xf32, #tpu.memory_space<vmem>>, %arg1: memref<2x128xf32, #tpu.memory_space<vmem>>, %arg2: memref<2x1024xf32, #tpu.memory_space<vmem>>, %arg3: memref<2x1xf32, #tpu.memory_space<vmem>>, %arg4: memref<2x1xf32, #tpu.memory_space<vmem>>, %arg5: memref<1024x32xf32, #tpu.memory_space<vmem>>, %arg6: memref<32x32xf32, #tpu.memory_space<vmem>>, %arg7: memref<128x32xf32, #tpu.memory_space<vmem>>, %arg8: memref<1x32xf32, #tpu.memory_space<vmem>>, %arg9: memref<128x32xf32, #tpu.memory_space<vmem>>, %arg10: memref<1x32xf32, #tpu.memory_space<vmem>>, %arg11: memref<32x98xf32, #tpu.memory_space<vmem>>, %arg12: memref<32x98xf32, #tpu.memory_space<vmem>>, %arg13: memref<32x98xf32, #tpu.memory_space<vmem>>, %arg14: memref<1x98xf32, #tpu.memory_space<vmem>>, %arg15: memref<1x98xf32, #tpu.memory_space<vmem>>, %arg16: memref<1x98xf32, #tpu.memory_space<vmem>>, %arg17: memref<98x98xf32, #tpu.memory_space<vmem>>, %arg18: memref<1x98xf32, #tpu.memory_space<vmem>>, %arg19: memref<1x98xf32, #tpu.memory_space<vmem>>, %arg20: memref<1x1xf32, #tpu.memory_space<vmem>>, %arg21: memref<2x1xf32, #tpu.memory_space<vmem>>) attributes {dimension_semantics = [], scalar_prefetch = 0 : i64, scratch_operands = 0 : i64, tpu.core_type = #tpu.core_type<tc>} {
    %c0 = arith.constant 0 : index
    %c0_0 = arith.constant 0 : index
    %0 = vector.load %arg2[%c0, %c0_0] : memref<2x1024xf32, #tpu.memory_space<vmem>>, vector<2x1024xf32>
    %c0_1 = arith.constant 0 : index
    %c0_2 = arith.constant 0 : index
    %1 = vector.load %arg5[%c0_1, %c0_2] : memref<1024x32xf32, #tpu.memory_space<vmem>>, vector<1024x32xf32>
    %cst = arith.constant dense<0.000000e+00> : vector<2x32xf32>
    %2 = tpu.matmul %0, %1, %cst {dimension_numbers = #tpu.dot_dimension_numbers<[1], [0], [0], [1], [0, 0, 1, 1], [], []>} : vector<2x1024xf32>, vector<1024x32xf32>, vector<2x32xf32> -> vector<2x32xf32>
    %cst_3 = arith.constant 0.000000e+00 : f32
    %3 = vector.broadcast %cst_3 : f32 to vector<2x32xf32>
    %4 = arith.cmpf ogt, %2, %3 : vector<2x32xf32>
    %cst_4 = arith.constant 1.000000e-01 : f32
    %5 = vector.broadcast %cst_4 : f32 to vector<2x32xf32>
    %6 = arith.mulf %5, %2 : vector<2x32xf32>
    %7 = arith.select %4, %2, %6 : vector<2x32xi1>, vector<2x32xf32>
    %c0_5 = arith.constant 0 : index
    %c0_6 = arith.constant 0 : index
    %8 = vector.load %arg6[%c0_5, %c0_6] : memref<32x32xf32, #tpu.memory_space<vmem>>, vector<32x32xf32>
    %cst_7 = arith.constant dense<0.000000e+00> : vector<2x32xf32>
    %9 = tpu.matmul %7, %8, %cst_7 {dimension_numbers = #tpu.dot_dimension_numbers<[1], [0], [0], [1], [0, 0, 1, 1], [], []>} : vector<2x32xf32>, vector<32x32xf32>, vector<2x32xf32> -> vector<2x32xf32>
    %cst_8 = arith.constant 0.000000e+00 : f32
    %10 = vector.broadcast %cst_8 : f32 to vector<2x32xf32>
    %11 = arith.cmpf ogt, %9, %10 : vector<2x32xf32>
    %cst_9 = arith.constant 1.000000e-01 : f32
    %12 = vector.broadcast %cst_9 : f32 to vector<2x32xf32>
    %13 = arith.mulf %12, %9 : vector<2x32xf32>
    %14 = arith.select %11, %9, %13 : vector<2x32xi1>, vector<2x32xf32>
    %c0_10 = arith.constant 0 : index
    %c0_11 = arith.constant 0 : index
    %15 = vector.load %arg0[%c0_10, %c0_11] : memref<2x128xf32, #tpu.memory_space<vmem>>, vector<2x128xf32>
    %c0_12 = arith.constant 0 : index
    %c0_13 = arith.constant 0 : index
    %16 = vector.load %arg7[%c0_12, %c0_13] : memref<128x32xf32, #tpu.memory_space<vmem>>, vector<128x32xf32>
    %cst_14 = arith.constant dense<0.000000e+00> : vector<2x32xf32>
    %17 = tpu.matmul %15, %16, %cst_14 {dimension_numbers = #tpu.dot_dimension_numbers<[1], [0], [0], [1], [0, 0, 1, 1], [], []>} : vector<2x128xf32>, vector<128x32xf32>, vector<2x32xf32> -> vector<2x32xf32>
    %c0_15 = arith.constant 0 : index
    %c0_16 = arith.constant 0 : index
    %18 = vector.load %arg8[%c0_15, %c0_16] : memref<1x32xf32, #tpu.memory_space<vmem>>, vector<1x32xf32>
    %19 = vector.broadcast %18 : vector<1x32xf32> to vector<2x32xf32>
    %20 = arith.addf %17, %19 : vector<2x32xf32>
    %c0_17 = arith.constant 0 : index
    %c0_18 = arith.constant 0 : index
    %21 = vector.load %arg1[%c0_17, %c0_18] : memref<2x128xf32, #tpu.memory_space<vmem>>, vector<2x128xf32>
    %c0_19 = arith.constant 0 : index
    %c0_20 = arith.constant 0 : index
    %22 = vector.load %arg9[%c0_19, %c0_20] : memref<128x32xf32, #tpu.memory_space<vmem>>, vector<128x32xf32>
    %cst_21 = arith.constant dense<0.000000e+00> : vector<2x32xf32>
    %23 = tpu.matmul %21, %22, %cst_21 {dimension_numbers = #tpu.dot_dimension_numbers<[1], [0], [0], [1], [0, 0, 1, 1], [], []>} : vector<2x128xf32>, vector<128x32xf32>, vector<2x32xf32> -> vector<2x32xf32>
    %c0_22 = arith.constant 0 : index
    %c0_23 = arith.constant 0 : index
    %24 = vector.load %arg10[%c0_22, %c0_23] : memref<1x32xf32, #tpu.memory_space<vmem>>, vector<1x32xf32>
    %25 = vector.broadcast %24 : vector<1x32xf32> to vector<2x32xf32>
    %26 = arith.addf %23, %25 : vector<2x32xf32>
    %c0_24 = arith.constant 0 : index
    %c0_25 = arith.constant 0 : index
    %27 = vector.load %arg11[%c0_24, %c0_25] : memref<32x98xf32, #tpu.memory_space<vmem>>, vector<32x98xf32>
    %cst_26 = arith.constant dense<0.000000e+00> : vector<2x98xf32>
    %28 = tpu.matmul %20, %27, %cst_26 {dimension_numbers = #tpu.dot_dimension_numbers<[1], [0], [0], [1], [0, 0, 1, 1], [], []>} : vector<2x32xf32>, vector<32x98xf32>, vector<2x98xf32> -> vector<2x98xf32>
    %c0_27 = arith.constant 0 : index
    %c0_28 = arith.constant 0 : index
    %29 = vector.load %arg12[%c0_27, %c0_28] : memref<32x98xf32, #tpu.memory_space<vmem>>, vector<32x98xf32>
    %cst_29 = arith.constant dense<0.000000e+00> : vector<2x98xf32>
    %30 = tpu.matmul %14, %29, %cst_29 {dimension_numbers = #tpu.dot_dimension_numbers<[1], [0], [0], [1], [0, 0, 1, 1], [], []>} : vector<2x32xf32>, vector<32x98xf32>, vector<2x98xf32> -> vector<2x98xf32>
    %31 = arith.addf %28, %30 : vector<2x98xf32>
    %c0_30 = arith.constant 0 : index
    %c0_31 = arith.constant 0 : index
    %32 = vector.load %arg13[%c0_30, %c0_31] : memref<32x98xf32, #tpu.memory_space<vmem>>, vector<32x98xf32>
    %cst_32 = arith.constant dense<0.000000e+00> : vector<2x98xf32>
    %33 = tpu.matmul %26, %32, %cst_32 {dimension_numbers = #tpu.dot_dimension_numbers<[1], [0], [0], [1], [0, 0, 1, 1], [], []>} : vector<2x32xf32>, vector<32x98xf32>, vector<2x98xf32> -> vector<2x98xf32>
    %34 = arith.addf %31, %33 : vector<2x98xf32>
    %c0_33 = arith.constant 0 : index
    %c0_34 = arith.constant 0 : index
    %35 = vector.load %arg3[%c0_33, %c0_34] : memref<2x1xf32, #tpu.memory_space<vmem>>, vector<2x1xf32>
    %c0_35 = arith.constant 0 : index
    %c0_36 = arith.constant 0 : index
    %36 = vector.load %arg14[%c0_35, %c0_36] : memref<1x98xf32, #tpu.memory_space<vmem>>, vector<1x98xf32>
    %37 = vector.broadcast %35 : vector<2x1xf32> to vector<2x98xf32>
    %38 = vector.broadcast %36 : vector<1x98xf32> to vector<2x98xf32>
    %39 = arith.mulf %37, %38 : vector<2x98xf32>
    %40 = arith.addf %34, %39 : vector<2x98xf32>
    %c0_37 = arith.constant 0 : index
    %c0_38 = arith.constant 0 : index
    %41 = vector.load %arg4[%c0_37, %c0_38] : memref<2x1xf32, #tpu.memory_space<vmem>>, vector<2x1xf32>
    %c0_39 = arith.constant 0 : index
    %c0_40 = arith.constant 0 : index
    %42 = vector.load %arg15[%c0_39, %c0_40] : memref<1x98xf32, #tpu.memory_space<vmem>>, vector<1x98xf32>
    %43 = vector.broadcast %41 : vector<2x1xf32> to vector<2x98xf32>
    %44 = vector.broadcast %42 : vector<1x98xf32> to vector<2x98xf32>
    %45 = arith.mulf %43, %44 : vector<2x98xf32>
    %46 = arith.addf %40, %45 : vector<2x98xf32>
    %c0_41 = arith.constant 0 : index
    %c0_42 = arith.constant 0 : index
    %47 = vector.load %arg16[%c0_41, %c0_42] : memref<1x98xf32, #tpu.memory_space<vmem>>, vector<1x98xf32>
    %48 = vector.broadcast %47 : vector<1x98xf32> to vector<2x98xf32>
    %49 = arith.addf %46, %48 : vector<2x98xf32>
    %cst_43 = arith.constant 0.000000e+00 : f32
    %50 = vector.broadcast %cst_43 : f32 to vector<2x98xf32>
    %51 = arith.cmpf ogt, %49, %50 : vector<2x98xf32>
    %cst_44 = arith.constant 2.000000e-01 : f32
    %52 = vector.broadcast %cst_44 : f32 to vector<2x98xf32>
    %53 = arith.mulf %52, %49 : vector<2x98xf32>
    %54 = arith.select %51, %49, %53 : vector<2x98xi1>, vector<2x98xf32>
    %c0_45 = arith.constant 0 : index
    %c0_46 = arith.constant 0 : index
    %55 = vector.load %arg17[%c0_45, %c0_46] : memref<98x98xf32, #tpu.memory_space<vmem>>, vector<98x98xf32>
    %cst_47 = arith.constant dense<0.000000e+00> : vector<2x98xf32>
    %56 = tpu.matmul %54, %55, %cst_47 {dimension_numbers = #tpu.dot_dimension_numbers<[1], [0], [0], [1], [0, 0, 1, 1], [], []>} : vector<2x98xf32>, vector<98x98xf32>, vector<2x98xf32> -> vector<2x98xf32>
    %c0_48 = arith.constant 0 : index
    %c0_49 = arith.constant 0 : index
    %57 = vector.load %arg18[%c0_48, %c0_49] : memref<1x98xf32, #tpu.memory_space<vmem>>, vector<1x98xf32>
    %58 = vector.broadcast %57 : vector<1x98xf32> to vector<2x98xf32>
    %59 = arith.addf %56, %58 : vector<2x98xf32>
    %cst_50 = arith.constant 0.000000e+00 : f32
    %60 = vector.broadcast %cst_50 : f32 to vector<2x98xf32>
    %61 = arith.cmpf ogt, %59, %60 : vector<2x98xf32>
    %cst_51 = arith.constant 2.000000e-01 : f32
    %62 = vector.broadcast %cst_51 : f32 to vector<2x98xf32>
    %63 = arith.mulf %62, %59 : vector<2x98xf32>
    %64 = arith.select %61, %59, %63 : vector<2x98xi1>, vector<2x98xf32>
    %c0_52 = arith.constant 0 : index
    %c0_53 = arith.constant 0 : index
    %65 = vector.load %arg19[%c0_52, %c0_53] : memref<1x98xf32, #tpu.memory_space<vmem>>, vector<1x98xf32>
    %66 = vector.broadcast %65 : vector<1x98xf32> to vector<2x98xf32>
    %67 = arith.mulf %64, %66 : vector<2x98xf32>
    %cst_54 = arith.constant dense<0.000000e+00> : vector<2xf32>
    %68 = vector.multi_reduction <add>, %67, %cst_54 [1] : vector<2x98xf32> to vector<2xf32>
    %69 = vector.shape_cast %68 : vector<2xf32> to vector<2x1xf32>
    %c0_55 = arith.constant 0 : index
    %c0_56 = arith.constant 0 : index
    %70 = vector.load %arg20[%c0_55, %c0_56] : memref<1x1xf32, #tpu.memory_space<vmem>>, vector<1x1xf32>
    %71 = vector.broadcast %70 : vector<1x1xf32> to vector<2x1xf32>
    %72 = arith.addf %69, %71 : vector<2x1xf32>
    %c0_57 = arith.constant 0 : index
    %c0_58 = arith.constant 0 : index
    %73 = vector.load %arg21[%c0_57, %c0_58] : memref<2x1xf32, #tpu.memory_space<vmem>>, vector<2x1xf32>
    tpu.vector_store %arg21[%c0_57, %c0_58], %72 {strides = array<i32>} : memref<2x1xf32, #tpu.memory_space<vmem>>, vector<2x1xf32>,
    return
  }
}

</mosaic_0001>

<bundles_post_ra>
// kernel: dltkcat_forward.11
= control target key start
LH: loop header
LB: loop body
LE: loop exit
PB: predicated region body
PF: predicated region fallthrough
CT: control target
= control target key end

     0   :  { %vm27_vm0 = vcmask 130048   ;;  %vm137_vm1 = vcmask 261120   ;;  %s230_s1 = inlined_call_operand.vmem [shape: f32[16,32], index: 1, kind: input, shape index: {}]   ;;  %s231_s0 = inlined_call_operand.vmem [shape: f32[32,16], index: 0, kind: input, shape index: {}]   ;;  %s232_s2 = inlined_call_operand.vmem [shape: f32[1,32], index: 2, kind: input, shape index: {}]   ;;  %s233_s3 = inlined_call_operand.vmem [shape: f32[32,32], index: 3, kind: output, shape index: {}]  }
   0x1   :  { %v18_v0 = vld [vmem:[%s230_s1] sm:$0xff]  ;;  %v19_v1 = vld [vmem:[%s230_s1 + $0x8] sm:$0xff]  ;;  %v16_v4 = vld [vmem:[%s231_s0 + $0x10] sm:$0xff] }
   0x2   :  { %v14_v2 = vld [vmem:[%s231_s0] sm:$0xff]  ;;  %v167_v3 = vpack.c.bf16 %v19_v1, %v18_v0  ;;  %164 = vmatprep.mubr.msk.f32.mxu1 %vm27_vm0, %v16_v4  ;;  %v15_v5 = vld [vmem:[%s231_s0 + $0x8] sm:$0xff]  ;;  %v17_v6 = vld [vmem:[%s231_s0 + $0x18] sm:$0xff] }
   0x3   :  { %161 = vmatprep.mubr.msk.f32.mxu0 %vm27_vm0, %v14_v2  ;;  %v146_v7 = vld [vmem:[%s232_s2] ss:$0 sm:$0xff] }
   0x4   :  { %168 = vmatprep.subr.bf16.mxu0 %v167_v3  ;;  %171 = vmatprep.subr.bf16.mxu1 %v167_v3 }
   0x5   :  { %170 = vmatpush3.bf16.msra.mxu0 %v167_v3  ;;  %172 = vmatpush3.bf16.msra.mxu1 %v167_v3 }
   0x8   :  { %162 = vmatmul.mubr.msk.f32.vlgmr.msra.gmra.mrb[0].mxu0 %vm27_vm0, %v15_v5  ;;  %165 = vmatmul.mubr.msk.f32.vlgmr.msra.gmra.mrb[0].mxu1 %vm27_vm0, %v17_v6 }
  0xdb   :  { %v163_v8 = vpop.f32.mrb[0].mxu0  ;;  %v166_v9 = vpop.f32.mrb[0].mxu1 }
  0xdc   :  { %v112_v10 = vadd.f32 %v163_v8, %v146_v7  ;;  %v122_v11 = vadd.f32 %v166_v9, %v146_v7  ;;  %v106_v12 = vpop.f32.mrb[1].mxu0  ;;  %v116_v13 = vpop.f32.mrb[1].mxu1 }
  0xdd   :  { %v107_v14 = vadd.f32 %v146_v7, %v106_v12  ;;  %v117_v15 = vadd.f32 %v146_v7, %v116_v13 }
  0xde   :  { %vm126_vm2 = vcmp.gt.f32.partialorder %v112_v10, 0.0  ;;  %v130_v16 = vmul.f32 0.2, %v112_v10  ;;  %vm128_vm3 = vcmp.gt.f32.partialorder %v122_v11, 0.0  ;;  %v132_v17 = vmul.f32 0.2, %v122_v11 }
  0xdf   :  { %vm125_vm4 = vcmp.gt.f32.partialorder %v107_v14, 0.0  ;;  %v129_v18 = vmul.f32 0.2, %v107_v14  ;;  %vm127_vm5 = vcmp.gt.f32.partialorder %v117_v15, 0.0  ;;  %v131_v19 = vmul.f32 0.2, %v117_v15 }
  0xe0   :  { %v134_v20 = vsel %vm126_vm2, %v112_v10, %v130_v16  ;;  %v136_v21 = vsel %vm128_vm3, %v122_v11, %v132_v17 }
  0xe1   :  { %139 = vst.msk [vmem:[%s233_s3 + $0x8] sm:$0xff] %vm137_vm1, %v134_v20  ;;  %141 = vst.msk [vmem:[%s233_s3 + $0x18] sm:$0xff] %vm137_vm1, %v136_v21  ;;  %v133_v22 = vsel %vm125_vm4, %v107_v14, %v129_v18  ;;  %v135_v23 = vsel %vm127_vm5, %v117_v15, %v131_v19 }
  0xe2   :  { %138 = vst.msk [vmem:[%s233_s3] sm:$0xff] %vm137_vm1, %v133_v22  ;;  %140 = vst.msk [vmem:[%s233_s3 + $0x10] sm:$0xff] %vm137_vm1, %v135_v23 }

// kernel: dltkcat_forward.13
= control target key start
LH: loop header
LB: loop body
LE: loop exit
PB: predicated region body
PF: predicated region fallthrough
CT: control target
= control target key end

     0   :  { %v193_v3 = vmov 0.0   ;;  %vm38_vm0 = vcmask 261120   ;;  %v28_v17 = vlaneseq  ;;  %s277_s1 = inlined_call_operand.vmem [shape: f32[32,256], index: 1, kind: input, shape index: {}]   ;;  %s278_s0 = inlined_call_operand.vmem [shape: f32[32,32], index: 0, kind: input, shape index: {}]   ;;  %s279_s2 = inlined_call_operand.vmem [shape: f32[1,256], index: 2, kind: input, shape index: {}]   ;;  %s280_s3 = inlined_call_operand.vmem [shape: f32[32,256], index: 3, kind: output, shape index: {}]  }
   0x1   :  { %v19_v0 = vld [vmem:[%s277_s1 + $0x8] sm:$0xff]  ;;  %v21_v1 = vld [vmem:[%s277_s1 + $0x18] sm:$0xff]  ;;  %v18_v2 = vld [vmem:[%s277_s1] sm:$0xff]  ;;  %115 = vmatprep.mubr.f32.mxu0 %v193_v3  ;;  %127 = vmatprep.mubr.f32.mxu1 %v193_v3 }
   0x2   :  { %v164_v4 = vpack.c.bf16 %v21_v1, %v19_v0  ;;  %v20_v5 = vld [vmem:[%s277_s1 + $0x10] sm:$0xff]  ;;  %v23_v6 = vld [vmem:[%s277_s1 + $0x28] sm:$0xff]  ;;  %v25_v7 = vld [vmem:[%s277_s1 + $0x38] sm:$0xff]  ;;  %v29_v18 = vshrl.u32 %v28_v17, 7 }
   0x3   :  { %v166_v8 = vpack.c.bf16 %v20_v5, %v18_v2  ;;  %v168_v9 = vpack.c.bf16 %v25_v7, %v23_v6  ;;  %v22_v10 = vld [vmem:[%s277_s1 + $0x20] sm:$0xff]  ;;  %v24_v11 = vld [vmem:[%s277_s1 + $0x30] sm:$0xff]  ;;  %v15_v15 = vld [vmem:[%s278_s0 + $0x8] sm:$0xff] }
   0x4   :  { %165 = vmatprep.subr.bf16.mxu0 %v164_v4  ;;  %172 = vmatprep.subr.bf16.mxu1 %v164_v4  ;;  %v170_v12 = vpack.c.bf16 %v24_v11, %v22_v10  ;;  %v14_v13 = vld [vmem:[%s278_s0] sm:$0xff]  ;;  %v16_v14 = vld [vmem:[%s278_s0 + $0x10] sm:$0xff]  ;;  %v17_v16 = vld [vmem:[%s278_s0 + $0x18] sm:$0xff]  ;;  %v30_v19 = vsub.s32 0, %v29_v18  ;;  %v34_v21 = vsub.s32 1, %v29_v18 }
   0x5   :  { %167 = vmatpush1.bf16.msra.mxu0 %v166_v8  ;;  %174 = vmatpush1.bf16.msra.mxu1 %v166_v8  ;;  %v26_v20 = vld [vmem:[%s279_s2] sm:$0x3] }
   0x6   :  { %169 = vmatprep.subr.bf16.mxu0 %v168_v9  ;;  %173 = vmatprep.subr.bf16.mxu1 %v168_v9  ;;  %v31_v22 = vrot.slane %v26_v20, %v30_v19  ;;  %v35_v23 = vrot.slane %v26_v20, %v34_v21 }
   0x9   :  { %171 = vmatpush1.bf16.msra.mxu0 %v170_v12  ;;  %175 = vmatpush1.bf16.msra.mxu1 %v170_v12 }
   0xc   :  { %160 = vmatmul.mubr.msk.f32.vlgmr.msra.gmra.mrb[0].mxu0 %vm38_vm0, %v14_v13  ;;  %162 = vmatmul.mubr.msk.f32.vlgmr.msra.gmra.mrb[0].mxu1 %vm38_vm0, %v16_v14 }
   0xd   :  { %121 = vmatprep.mubr.f32.mxu0 %v193_v3  ;;  %133 = vmatprep.mubr.f32.mxu1 %v193_v3 }
  0x10   :  { %161 = vmatmul.mubr.msk.f32.gmra.mrb[2].mxu0 %vm38_vm0, %v15_v15  ;;  %163 = vmatmul.mubr.msk.f32.gmra.mrb[2].mxu1 %vm38_vm0, %v17_v16 }
  0xdf   :  { %v117_v24 = vpop.f32.mrb[0].mxu0  ;;  %v129_v25 = vpop.f32.mrb[0].mxu1 }
  0xe0   :  { %v118_v26 = vadd.f32 %v117_v24, %v31_v22  ;;  %v130_v27 = vadd.f32 %v129_v25, %v31_v22  ;;  %v119_v28 = vpop.f32.mrb[1].mxu0  ;;  %v131_v29 = vpop.f32.mrb[1].mxu1 }
  0xe1   :  { %v120_v30 = vadd.f32 %v119_v28, %v35_v23  ;;  %v132_v31 = vadd.f32 %v131_v29, %v35_v23 }
  0xe2   :  { %177 = vtanh.f32 %v118_v26 }
  0xe3   :  { %179 = vtanh.f32 %v130_v27  ;;  %v123_v32 = vpop.f32.mrb[2].mxu0  ;;  %v135_v33 = vpop.f32.mrb[2].mxu1 }
  0xe4   :  { %181 = vtanh.f32 %v120_v30  ;;  %v124_v34 = vadd.f32 %v123_v32, %v31_v22  ;;  %v136_v35 = vadd.f32 %v135_v33, %v31_v22  ;;  %v125_v36 = vpop.f32.mrb[3].mxu0  ;;  %v137_v37 = vpop.f32.mrb[3].mxu1 }
  0xe5   :  { %183 = vtanh.f32 %v132_v31  ;;  %v126_v38 = vadd.f32 %v125_v36, %v35_v23  ;;  %v138_v39 = vadd.f32 %v137_v37, %v35_v23 }
  0xe6   :  { %185 = vtanh.f32 %v124_v34 }
  0xe7   :  { %187 = vtanh.f32 %v136_v35 }
  0xe8   :  { %189 = vtanh.f32 %v126_v38 }
  0xe9   :  { %191 = vtanh.f32 %v138_v39 }
  0xec   :  { %v178_v40 = vpop.eup %177 }
  0xed   :  { %v180_v41 = vpop.eup %179  ;;  %148 = vst [vmem:[%s280_s3] sm:$0xff] %v178_v40 }
  0xee   :  { %v182_v42 = vpop.eup %181  ;;  %152 = vst [vmem:[%s280_s3 + $0x20] sm:$0xff] %v180_v41 }
  0xef   :  { %v184_v43 = vpop.eup %183  ;;  %149 = vst [vmem:[%s280_s3 + $0x8] sm:$0xff] %v182_v42 }
  0xf0   :  { %v186_v44 = vpop.eup %185  ;;  %153 = vst [vmem:[%s280_s3 + $0x28] sm:$0xff] %v184_v43 }
  0xf1   :  { %v188_v45 = vpop.eup %187  ;;  %150 = vst [vmem:[%s280_s3 + $0x10] sm:$0xff] %v186_v44 }
  0xf2   :  { %v190_v46 = vpop.eup %189  ;;  %154 = vst [vmem:[%s280_s3 + $0x30] sm:$0xff] %v188_v45 }
  0xf3   :  { %v192_v47 = vpop.eup %191  ;;  %151 = vst [vmem:[%s280_s3 + $0x18] sm:$0xff] %v190_v46 }
  0xf4   :  { %155 = vst [vmem:[%s280_s3 + $0x38] sm:$0xff] %v192_v47 }

// kernel: dltkcat_forward.8
= control target key start
LH: loop header
LB: loop body
LE: loop exit
PB: predicated region body
PF: predicated region fallthrough
CT: control target
= control target key end

     0   :  { %s1525_s13 = smov 0   ;;  %s1650_s0 = inlined_call_operand.vmem [shape: f32[2,8,16], index: 0, kind: input, shape index: {}]   ;;  %s1651_s1 = inlined_call_operand.vmem [shape: f32[2,8,8], index: 1, kind: input, shape index: {}]   ;;  %s1652_s2 = inlined_call_operand.vmem [shape: f32[16,16], index: 2, kind: input, shape index: {}]   ;;  %s1653_s3 = inlined_call_operand.vmem [shape: f32[1,16], index: 3, kind: input, shape index: {}]   ;;  %s1654_s4 = inlined_call_operand.vmem [shape: f32[1,16], index: 4, kind: input, shape index: {}]   ;;  %s1655_s5 = inlined_call_operand.vmem [shape: f32[16,16], index: 5, kind: input, shape index: {}]   ;;  %s1656_s6 = inlined_call_operand.vmem [shape: f32[1,16], index: 6, kind: input, shape index: {}]   ;;  %s1657_s7 = inlined_call_operand.vmem [shape: f32[1,16], index: 7, kind: input, shape index: {}]   ;;  %s1658_s8 = inlined_call_operand.vmem [shape: f32[16,32], index: 8, kind: input, shape index: {}]   ;;  %s1659_s9 = inlined_call_operand.vmem [shape: f32[1,32], index: 9, kind: input, shape index: {}]   ;;  %s1660_s10 = inlined_call_operand.vmem [shape: f32[2,8,32], index: 10, kind: output, shape index: {}]  }
   0x1 LB: > { %s1315_s14 = sadd.s32 4294967295, %s1464_s13   ;;  %p1319_p0 = scmp.ge.s32.totalorder %s1464_s13, 1  ;;  %s1464_s13 = sphi %s1525_s13, %s20_s13  }
   0x2   : > { %p320_p1 = scmp.lt.s32.totalorder %s1464_s13, 3 }
   0x4   : > { %p321_p2 = pnand %p1319_p0, %p320_p1 }
   0x5   : > { %v374_v0 = vld [vmem:[%s1652_s2] sm:$0xff] (!%p321_p2)  ;;  %v375_v1 = vld [vmem:[%s1652_s2 + $0x8] sm:$0xff] (!%p321_p2)  ;;  %p360_p3 = scmp.lt.s32.totalorder (!%p321_p2), %s1315_s14, 1  ;;  %v1466_v2 = vmov (!%p321_p2), 0.0|0.0   ;;  %vm1467_vm0 = vmmov (!%p321_p2), 0   ;;  %v1468_v4 = vmov (!%p321_p2), 0.0   ;;  %v541_v6 = vlaneseq (!%p321_p2) }
   0x6   : > { %324 = sbr.rel (%p321_p2) target bundleno = 2317 (0x90d), region = 60  ;;  %1420 = vmatprep.subr.bf16.mxu0 (!%p321_p2), %v1466_v2  ;;  %v1421_v3 = vpack.c.bf16 (!%p321_p2), %v375_v1, %v374_v0  ;;  %1370 = vmatprep.mubr.msk.f32.mxu0 (!%p321_p2), %vm1467_vm0, %v1468_v4  ;;  %vm376_vm1 = vcmask (!%p321_p2), 130048   ;;  %vm461_vm2 = vcmask (!%p321_p2), 64512   ;;  %v1324_v9 = vld [vmem:[%s1653_s3] ss:$0 sm:$0xff] (!%p321_p2)  ;;  %s1469_s27 = smov (!%p321_p2), 120  }
   0x7   : > { %1373 = vmatprep.subr.mxu1 (!%p321_p2), %v1468_v4  ;;  %1375 = vmatprep.mubr.msk.f32.mxu1 (!%p321_p2), %vm1467_vm0, %v1468_v4  ;;  %v542_v7 = vshrl.u32 (!%p321_p2), %v541_v6, 7  ;;  %v451_v10 = vld [vmem:[%s1654_s4] sm:$0x1] (!%p321_p2)  ;;  %v453_v57 = vld [vmem:[%s1655_s5 + $0x8] sm:$0xff] (!%p321_p2)  ;;  %vm1248_vm11 = vcmask (!%p321_p2), 261120  }
   0x8   : > { %1422 = vmatpush3.bf16.msra.mxu0 (!%p321_p2), %v1421_v3  ;;  %v452_v3 = vld [vmem:[%s1655_s5] sm:$0xff] (!%p321_p2) }
   0x9   : > { %1378 = vmatprep.subr.mxu0 (!%p321_p2), %v1468_v4  ;;  %v1555_v8 = vsub.s32 (!%p321_p2), 0, %v542_v7 }
   0xb   : > { %v651_v14 = vrot.slane (!%p321_p2), %v451_v10, %v1555_v8 }
   0xd   : > { %s1662_s14 = smov (!%p360_p3, %s1315_s14), 1 }
   0xe   : > { %s1545_s19 = sshll.u32 %s1662_s14, 3 }
   0xf   : > { %s363_s22 = scalar_lea.vmem %s1650_s0, %s1545_s19  ;;  %s367_s30 = scalar_lea.vmem %s1651_s1, %s1545_s19 }
  0x10   : > { %v372_v5 = vld [vmem:[%s363_s22] sm:$0xff]  ;;  %s371_s29 = scalar_lea.vmem %s1660_s10, %s1545_s19 }
  0x11   : > { %1371 = vmatmul.mubr.msk.f32.vlgmr.msra.gmra.mrb[0].mxu0 %vm376_vm1, %v372_v5  ;;  %v1582_v24 = vld [vmem:[%s367_s30] sm:$0xff] }
  0x12   : > { %1380 = vmatprep.mubr.msk.f32.mxu0 %vm1467_vm0, %v1468_v4  ;;  %vm549_vm4 = vcmp.gt.f32.partialorder %v1582_v24, 0.0  ;;  %v1163_v24 = vld [vmem:[%s1658_s8] sm:$0xff] }
  0xe4   : > { %v446_v11 = vpop.f32.mrb[0].mxu0 }
  0xe5   : > { %654 = vrot.lane.b32.xlu0 %v446_v11, %s1469_s27  ;;  %v1372_v12 = vpop.f32.mrb[1].mxu0  ;;  %1374 = vmatpush3.xpose.msk.msra.mxu1 %vm461_vm2, %v446_v11  ;;  %v460_v13 = vmul.f32 %v1324_v9, %v446_v11 }
  0xe6   : > { %1379 = vmatpush3.msra.mxu0 %v446_v11  ;;  %1383 = vmatprep.subr.mxu1 %v1468_v4 }
  0xe7   : > { %642 = vrot.lane.b32.xlu1 %v460_v13, %s1469_s27  ;;  %1388 = vmatprep.subr.mxu0 %v1468_v4  ;;  %v462_v15 = vsel %vm461_vm2, %v460_v13, 0.0 }
  0xe8   : > { %1376 = vmatmul.mubr.msk.f32.vlgmr.msra.gmra.mrb[0].mxu1 %vm461_vm2, %v451_v10  ;;  %v1335_v10 = vld [vmem:[%s1656_s6] ss:$0 sm:$0xff] }
  0xe9   : > { %652 = vrot.lane.b32.xlu0 %v651_v14, %s1469_s27  ;;  %1385 = vmatprep.mubr.msk.f32.mxu1 %vm1467_vm0, %v1468_v4 }
 0x10b   : > { %463 = vadd.xlane.f32.xlu1 %v462_v15 }
 0x157   : > { %v655_v16 = vpop.permute.xlu0 %654 }
 0x158   : > { %1384 = vmatpush3.xpose.msk.msra.mxu1 %vm461_vm2, %v655_v16 }
 0x159   : > { %v643_v17 = vpop.permute.xlu1 %642  ;;  %1393 = vmatprep.subr.mxu1 %v1468_v4 }
 0x15a   : > { %v645_v18 = vsel %vm461_vm2, %v643_v17, 0.0 }
 0x15b   : > { %v653_v19 = vpop.permute.xlu0 %652  ;;  %646 = vadd.xlane.f32.xlu0 %v645_v18 }
 0x15c   : > { %1386 = vmatmul.mubr.msk.f32.vlgmr.msra.gmra.mrb[2].mxu1 %vm461_vm2, %v653_v19 }
 0x15d   : > { %1395 = vmatprep.mubr.msk.f32.mxu1 %vm1467_vm0, %v1468_v4  ;;  %1394 = vmatpush3.msra.mxu1 %v453_v57 }
 0x15e   : > { %1398 = vmatprep.subr.mxu1 %v1468_v4 }
 0x198   : > { %v464_v23 = vpop.xlane.xlu1 %463 }
 0x1bb   : > { %v537_v20 = vpop.f32.mrb[0].mxu1 }
 0x1bc   : > { %v544_v21 = vrot.slane %v537_v20, %v1555_v8  ;;  %v1377_v22 = vpop.f32.mrb[1].mxu1 }
 0x1be   : > { %v545_v25 = vadd.f32 %v544_v21, %v464_v23 }
 0x1c0   : > { %vm546_vm3 = vcmp.gt.f32.partialorder %v545_v25, 0.0  ;;  %v547_v26 = vmul.f32 0.2, %v545_v25 }
 0x1c2   : > { %v548_v27 = vsel %vm546_vm3, %v545_v25, %v547_v26 }
 0x1c3   : > { %v550_v28 = vsel %vm549_vm4, %v548_v27, -9e+15 }
 0x1c4   : > { %v551_v29 = vsel %vm461_vm2, %v550_v28, -inf }
 0x1c5   : > { %552 = vmax.xlane.f32.xlu0 %v551_v29 }
 0x1e8   : > { %v647_v33 = vpop.xlane.xlu0 %646 }
 0x22f   : > { %v726_v30 = vpop.f32.mrb[2].mxu1 }
 0x230   : > { %v733_v31 = vrot.slane %v726_v30, %v1555_v8  ;;  %v1387_v32 = vpop.f32.mrb[3].mxu1 }
 0x232   : > { %v734_v34 = vadd.f32 %v733_v31, %v647_v33  ;;  %v1164_v31 = vld [vmem:[%s1658_s8 + $0x8] sm:$0xff] }
 0x233   : > { %v1424_v32 = vpack.c.bf16 %v1164_v31, %v1163_v24 }
 0x234   : > { %vm735_vm5 = vcmp.gt.f32.partialorder %v734_v34, 0.0  ;;  %v736_v35 = vmul.f32 0.2, %v734_v34 }
 0x236   : > { %v737_v36 = vsel %vm735_vm5, %v734_v34, %v736_v35 }
 0x237   : > { %v738_v37 = vsel %vm549_vm4, %v737_v36, -9e+15 }
 0x238   : > { %v739_v38 = vsel %vm461_vm2, %v738_v37, -inf }
 0x239   : > { %740 = vmax.xlane.f32.xlu1 %v739_v38 }
 0x252   : > { %v553_v39 = vpop.xlane.xlu0 %552 }
 0x253   : > { %v554_v40 = vsub.f32 %v550_v28, %v553_v39 }
 0x255   : > { %v555_v41 = vmul.f32 1.442695, %v554_v40  ;;  %v1340_v40 = vld [vmem:[%s1659_s9] ss:$0 sm:$0xff] }
 0x257   : > { %1440 = vpow2.f32 %v555_v41 }
 0x261   : > { %v1441_v42 = vpop.eup %1440 }
 0x262   : > { %v557_v43 = vsel %vm461_vm2, %v1441_v42, 0.0 }
 0x263   : > { %558 = vadd.xlane.f32.xlu0 %v557_v43 }
 0x2c6   : > { %v741_v44 = vpop.xlane.xlu1 %740 }
 0x2c7   : > { %v742_v45 = vsub.f32 %v738_v37, %v741_v44 }
 0x2c9   : > { %v743_v46 = vmul.f32 1.442695, %v742_v45 }
 0x2cb   : > { %1442 = vpow2.f32 %v743_v46 }
 0x2d5   : > { %v1443_v47 = vpop.eup %1442 }
 0x2d6   : > { %v745_v48 = vsel %vm461_vm2, %v1443_v47, 0.0 }
 0x2d7   : > { %746 = vadd.xlane.f32.xlu1 %v745_v48 }
 0x2f0   : > { %v559_v49 = vpop.xlane.xlu0 %558 }
 0x2f1   : > { %1444 = vrcp.f32 %v559_v49 }
 0x2fb   : > { %v1445_v50 = vpop.eup %1444 }
 0x2fc   : > { %v561_v51 = vmul.f32 %v1445_v50, %v1441_v42 }
 0x2fe   : > { %1381 = vmatmul.mubr.msk.f32.vlgmr.msra.gmra.mrb[2].mxu0 %vm461_vm2, %v561_v51 }
 0x2ff   : > { %1389 = vmatpush3.msra.mxu0 %v655_v16  ;;  %1390 = vmatprep.mubr.msk.f32.mxu0 %vm1467_vm0, %v1468_v4 }
 0x300   : > { %1403 = vmatprep.subr.mxu0 %v1468_v4 }
 0x364   : > { %v747_v52 = vpop.xlane.xlu1 %746 }
 0x365   : > { %1446 = vrcp.f32 %v747_v52 }
 0x36f   : > { %v1447_v53 = vpop.eup %1446 }
 0x370   : > { %v749_v54 = vmul.f32 %v1447_v53, %v1443_v47 }
 0x372   : > { %1391 = vmatmul.mubr.msk.f32.vlgmr.msra.gmra.mrb[4].mxu0 %vm461_vm2, %v749_v54 }
 0x373   : > { %1405 = vmatprep.mubr.msk.f32.mxu0 %vm1467_vm0, %v1468_v4 }
 0x3d1   : > { %v631_v55 = vpop.f32.mrb[2].mxu0 }
 0x3d2   : > { %v1382_v56 = vpop.f32.mrb[3].mxu0  ;;  %v636_v59 = vmin.f32 %v631_v55, 0.0  ;;  %vm635_vm7 = vcmp.gt.f32.partialorder %v631_v55, 0.0 }
 0x3d4   : > { %v637_v63 = vmul.f32 1.442695, %v636_v59 }
 0x445   : > { %v820_v58 = vpop.f32.mrb[4].mxu0 }
 0x446   : > { %v825_v60 = vmin.f32 %v820_v58, 0.0  ;;  %v1392_v61 = vpop.f32.mrb[5].mxu0  ;;  %vm824_vm6 = vcmp.gt.f32.partialorder %v820_v58, 0.0 }
 0x448   : > { %v826_v62 = vmul.f32 1.442695, %v825_v60 }
 0x44a   : > { %1448 = vpow2.f32 %v826_v62 }
 0x44b   : > { %1450 = vpow2.f32 %v637_v63 }
 0x454   : > { %v1449_v0 = vpop.eup %1448 }
 0x455   : > { %v1332_v1 = vadd.f32 -1.0, %v1449_v0  ;;  %v1451_v6 = vpop.eup %1450 }
 0x456   : > { %v1328_v7 = vadd.f32 -1.0, %v1451_v6 }
 0x457   : > { %v829_v5 = vsel %vm824_vm6, %v820_v58, %v1332_v1 }
 0x458   : > { %1396 = vmatmul.mubr.msk.f32.vlgmr.msra.gmra.mrb[4].mxu1 %vm461_vm2, %v829_v5  ;;  %v640_v9 = vsel %vm635_vm7, %v631_v55, %v1328_v7 }
 0x459   : > { %1399 = vmatpush3.msra.mxu1 %v452_v3  ;;  %1400 = vmatprep.mubr.msk.f32.mxu1 %vm1467_vm0, %v1468_v4 }
 0x45a   : > { %1423 = vmatprep.subr.bf16.mxu1 %v1466_v2  ;;  %v977_v2 = vld [vmem:[%s1657_s7] sm:$0x1] }
 0x460   : > { %1401 = vmatmul.mubr.msk.f32.vlgmr.msra.gmra.mrb[4].mxu1 %vm461_vm2, %v640_v9 }
 0x461   : > { %1417 = vmatprep.mubr.msk.f32.mxu1 %vm1467_vm0, %v1468_v4  ;;  %1425 = vmatpush3.bf16.msra.mxu1 %v1424_v32 }
 0x533   : > { %v972_v11 = vpop.f32.mrb[4].mxu1 }
 0x534   : > { %v1402_v12 = vpop.f32.mrb[5].mxu1  ;;  %1404 = vmatpush3.xpose.msk.msra.mxu0 %vm376_vm1, %v972_v11  ;;  %v984_v13 = vmul.f32 %v1335_v10, %v972_v11 }
 0x535   : > { %1408 = vmatprep.subr.mxu0 %v1468_v4 }
 0x536   : > { %v985_v14 = vsel %vm376_vm1, %v984_v13, 0.0 }
 0x537   : > { %1406 = vmatmul.mubr.msk.f32.vlgmr.msra.gmra.mrb[6].mxu0 %vm376_vm1, %v977_v2  ;;  %986 = vadd.xlane.f32.xlu0 %v985_v14 }
 0x538   : > { %1409 = vmatpush3.msra.mxu0 %v972_v11  ;;  %1410 = vmatprep.mubr.msk.f32.mxu0 %vm1467_vm0, %v1468_v4 }
 0x5c4   : > { %v987_v18 = vpop.xlane.xlu0 %986 }
 0x60a   : > { %v1060_v15 = vpop.f32.mrb[6].mxu0 }
 0x60b   : > { %v1067_v16 = vrot.slane %v1060_v15, %v1555_v8  ;;  %v1407_v17 = vpop.f32.mrb[7].mxu0 }
 0x60d   : > { %v1068_v19 = vadd.f32 %v1067_v16, %v987_v18 }
 0x60f   : > { %vm1069_vm8 = vcmp.gt.f32.partialorder %v1068_v19, 0.0  ;;  %v1070_v20 = vmul.f32 0.2, %v1068_v19 }
 0x611   : > { %v1071_v21 = vsel %vm1069_vm8, %v1068_v19, %v1070_v20 }
 0x612   : > { %v1072_v22 = vsel %vm549_vm4, %v1071_v21, -9e+15 }
 0x613   : > { %v1073_v23 = vsel %vm461_vm2, %v1072_v22, -inf }
 0x614   : > { %1074 = vmax.xlane.f32.xlu1 %v1073_v23 }
 0x6a1   : > { %v1075_v25 = vpop.xlane.xlu1 %1074 }
 0x6a2   : > { %v1076_v26 = vsub.f32 %v1072_v22, %v1075_v25 }
 0x6a4   : > { %v1077_v27 = vmul.f32 1.442695, %v1076_v26 }
 0x6a6   : > { %1452 = vpow2.f32 %v1077_v27 }
 0x6b0   : > { %v1453_v4 = vpop.eup %1452 }
 0x6b1   : > { %v1079_v28 = vsel %vm461_vm2, %v1453_v4, 0.0 }
 0x6b2   : > { %1080 = vadd.xlane.f32.xlu0 %v1079_v28 }
 0x73f   : > { %v1081_v8 = vpop.xlane.xlu0 %1080 }
 0x740   : > { %1454 = vrcp.f32 %v1081_v8 }
 0x74a   : > { %v1455_v29 = vpop.eup %1454 }
 0x74b   : > { %v1083_v30 = vmul.f32 %v1455_v29, %v1453_v4 }
 0x74d   : > { %1411 = vmatmul.mubr.msk.f32.vlgmr.msra.gmra.mrb[8].mxu0 %vm461_vm2, %v1083_v30 }
 0x820   : > { %v1153_v33 = vpop.f32.mrb[8].mxu0 }
 0x821   : > { %v1158_v34 = vmin.f32 %v1153_v33, 0.0  ;;  %v1412_v35 = vpop.f32.mrb[9].mxu0  ;;  %vm1157_vm9 = vcmp.gt.f32.partialorder %v1153_v33, 0.0 }
 0x823   : > { %v1159_v36 = vmul.f32 1.442695, %v1158_v34 }
 0x825   : > { %1456 = vpow2.f32 %v1159_v36 }
 0x82f   : > { %v1457_v37 = vpop.eup %1456 }
 0x830   : > { %v1339_v38 = vadd.f32 -1.0, %v1457_v37 }
 0x832   : > { %v1162_v39 = vsel %vm1157_vm9, %v1153_v33, %v1339_v38 }
 0x833   : > { %1418 = vmatmul.mubr.msk.f32.vlgmr.msra.gmra.mrb[6].mxu1 %vm376_vm1, %v1162_v39 }
 0x906   : > { %v1241_v41 = vpop.f32.mrb[6].mxu1 }
 0x907   : > { %v1242_v42 = vadd.f32 %v1340_v40, %v1241_v41  ;;  %v1419_v43 = vpop.f32.mrb[7].mxu1 }
 0x909   : > { %vm1245_vm10 = vcmp.gt.f32.partialorder %v1242_v42, 0.0  ;;  %v1246_v44 = vmul.f32 0.2, %v1242_v42 }
 0x90b   : > { %v1247_v45 = vsel %vm1245_vm10, %v1242_v42, %v1246_v44 }
 0x90c   : > { %1249 = vst.msk [vmem:[%s371_s29] sm:$0xff] %vm1248_vm11, %v1247_v45 }
 0x90d PF: > { %s20_s13 = sadd.s32 1, %s1464_s13  }
 0x90e   : > { %p17_p4 = scmp.ge.s32.totalorder %s20_s13, 4  }
 0x910   :  { %19 = sbr.rel (!%p17_p4) target bundleno = 1 (0x1), region = 93 }

// kernel: dltkcat_forward.9
= control target key start
LH: loop header
LB: loop body
LE: loop exit
PB: predicated region body
PF: predicated region fallthrough
CT: control target
= control target key end

     0   :  { %9 = vsyncpa [#allocation4], 0  ;;  %s1398_s0 = inlined_call_operand.vmem [shape: f32[2,20,20], index: 0, kind: input, shape index: {}]   ;;  %s1399_s1 = inlined_call_operand.vmem [shape: f32[5,5], index: 1, kind: input, shape index: {}]   ;;  %s1400_s2 = inlined_call_operand.<no memory space> [shape: f32[1,1], index: 2, kind: input, shape index: {}]   ;;  %s1401_s3 = inlined_call_operand.vmem [shape: f32[2,16,16], index: 3, kind: output, shape index: {}]  }
   0x1   :  { %s18_s14 = sshll.u32 %s1399_s1, 4  ;;  %s19_s14 = int_to_ptr.vmem [resolvable:$true] %s18_s14 }
   0x2   :  { %s983_s15 = scalar_lea.vmem %s19_s14, 128  ;;  %p988_p1 = scmp.lt.s32.totalorder %s19_s14, %s19_s14 }
   0x3   :  { %p984_p0 = scmp.ne.s32.totalorder %s19_s14, %s983_s15  ;;  %p989_p2 = scmp.lt.s32.totalorder %s983_s15, %s983_s15 }
   0x5   :  { %p990_p3 = por %p989_p2, %p988_p1 }
   0x7   :  { %p991_p4 = pnand %p990_p3, %p984_p0 }
   0x9   :  { %994 = shalt.err (!%p991_p4)
}
   0xa   :  { %s997_s16 = smov [#allocation3]  }
   0xb   :  { %21 = dma.vmem_to_smem %s19_s14, 128, %s997_s16, [#allocation4]  }
   0xc   :  { %995 = dma.done.wait [#allocation4], 128  }
   0xd   :  { %996 = vsyncadd [#allocation4], 4294967168 }
   0xe   :  { %27 = sfence }
   0xf   :  { %s948_s17 = sld [smem:[#allocation3 + $0x1]]  ;;  %s949_s18 = sld [smem:[#allocation3 + $0x2]]  ;;  %v1028_v0 = vld [vmem:[%s1398_s0 + $0x18] sm:$0xff]  ;;  %v1033_v1 = vld [vmem:[%s1398_s0] sm:$0xff]  ;;  %v1043_v4 = vld [vmem:[%s1398_s0 + $0x8] sm:$0xff]  ;;  %vm162_vm0 = vcmask 1046528  }
  0x10   :  { %v1038_v3 = vld [vmem:[%s1398_s0 + $0x20] sm:$0xff]  ;;  %s998_s26 = smov 127   ;;  %s950_s27 = sld [smem:[#allocation3 + $0x3]]  ;;  %v1070_v20 = vld [vmem:[%s1398_s0 + $0x10] sm:$0xf]  ;;  %vm355_vm1 = vcmask 1045504  }
  0x11   :  { %s999_s28 = smov 126   ;;  %s951_s29 = sld [smem:[#allocation3 + $0x4]]  ;;  %v1082_v27 = vld [vmem:[%s1398_s0 + $0x28] sm:$0xf]  ;;  %vm548_vm2 = vcmask 1044480   ;;  %vm741_vm3 = vcmask 1043456  }
  0x12   :  { %s953_s30 = sld [smem:[#allocation3 + $0x81]]  ;;  %s1000_s4 = smov 125   ;;  %vm938_vm4 = vcmask 130048  }
  0x13   :  { %s954_s5 = sld [smem:[#allocation3 + $0x82]]  ;;  %s955_s10 = sld [smem:[#allocation3 + $0x83]] }
  0x14   :  { %s1001_s11 = smov 124   ;;  %s956_s12 = sld [smem:[#allocation3 + $0x84]] }
  0x15   :  { %v45_v2 = vstv %s948_s17  ;;  %v71_v9 = vstv %s949_s18  ;;  %s958_s13 = sld [smem:[#allocation3 + $0x101]]  ;;  %s959_s14 = sld [smem:[#allocation3 + $0x102]] }
  0x16   :  { %v48_v5 = vmul.f32 %v45_v2, %v1028_v0  ;;  %v46_v6 = vmul.f32 %v45_v2, %v1033_v1  ;;  %v49_v7 = vmul.f32 %v45_v2, %v1038_v3  ;;  %v47_v8 = vmul.f32 %v45_v2, %v1043_v4  ;;  %s960_s15 = sld [smem:[#allocation3 + $0x103]]  ;;  %s961_s16 = sld [smem:[#allocation3 + $0x104]] }
  0x17   :  { %v73_v10 = vmul.f32 %v71_v9, %v1043_v4  ;;  %v72_v11 = vmul.f32 %v71_v9, %v1033_v1  ;;  %v75_v12 = vmul.f32 %v71_v9, %v1038_v3  ;;  %v74_v13 = vmul.f32 %v71_v9, %v1028_v0  ;;  %s963_s17 = sld [smem:[#allocation3 + $0x181]]  ;;  %s964_s18 = sld [smem:[#allocation3 + $0x182]] }
  0x18   :  { %58 = vrot.lane.b32.xlu1 %v48_v5, %s998_s26  ;;  %54 = vrot.lane.b32.xlu0 %v46_v6, %s998_s26  ;;  %v97_v14 = vstv %s950_s27  ;;  %v123_v19 = vstv %s951_s29  ;;  %s965_s19 = sld [smem:[#allocation3 + $0x183]]  ;;  %s966_s20 = sld [smem:[#allocation3 + $0x184]] }
  0x19   :  { %v99_v15 = vmul.f32 %v97_v14, %v1043_v4  ;;  %v98_v16 = vmul.f32 %v97_v14, %v1033_v1  ;;  %v101_v17 = vmul.f32 %v97_v14, %v1038_v3  ;;  %v100_v18 = vmul.f32 %v97_v14, %v1028_v0  ;;  %s34_s1 = sld [smem:[#allocation3]]  ;;  %s968_s21 = sld [smem:[#allocation3 + $0x201]] }
  0x1a   :  { %v182_v21 = vstv %s953_s30  ;;  %v125_v22 = vmul.f32 %v123_v19, %v1043_v4  ;;  %v124_v23 = vmul.f32 %v123_v19, %v1033_v1  ;;  %v127_v28 = vmul.f32 %v123_v19, %v1038_v3  ;;  %s1245_s22 = sld [smem:[#allocation3 + $0x202]]  ;;  %s1264_s23 = sld [smem:[#allocation3 + $0x203]] }
  0x1b   :  { %v184_v24 = vmul.f32 %v182_v21, %v1043_v4  ;;  %v185_v25 = vmul.f32 %v182_v21, %v1070_v20  ;;  %v183_v26 = vmul.f32 %v182_v21, %v1033_v1  ;;  %v126_v29 = vmul.f32 %v123_v19, %v1028_v0  ;;  %s1268_s24 = sld [smem:[#allocation3 + $0x80]]  ;;  %s1285_s25 = sld [smem:[#allocation3 + $0x204]] }
  0x1c   :  { %60 = vrot.lane.b32.xlu1 %v49_v7, %s998_s26  ;;  %56 = vrot.lane.b32.xlu0 %v47_v8, %s998_s26  ;;  %v187_v30 = vmul.f32 %v182_v21, %v1038_v3  ;;  %v188_v31 = vmul.f32 %v182_v21, %v1082_v27  ;;  %v222_v32 = vstv %s954_s5  ;;  %v186_v36 = vmul.f32 %v182_v21, %v1028_v0  ;;  %s962_s27 = sld [smem:[#allocation3 + $0x180]] }
  0x1d   :  { %v196_v33 = vrot.slane %v184_v24, 1  ;;  %v198_v34 = vrot.slane %v185_v25, 1  ;;  %v195_v35 = vrot.slane %v183_v26, 1  ;;  %v224_v39 = vmul.f32 %v222_v32, %v1043_v4  ;;  %s967_s9 = sld [smem:[#allocation3 + $0x200]] }
  0x1e   :  { %v201_v37 = vrot.slane %v187_v30, 1  ;;  %v203_v38 = vrot.slane %v188_v31, 1  ;;  %v225_v40 = vmul.f32 %v222_v32, %v1070_v20  ;;  %v200_v43 = vrot.slane %v186_v36, 1 }
  0x1f   :  { %v199_v41 = vsel %vm162_vm0, %v196_v33, %v198_v34  ;;  %v197_v42 = vsel %vm162_vm0, %v195_v35, %v196_v33  ;;  %v223_v44 = vmul.f32 %v222_v32, %v1033_v1  ;;  %v262_v45 = vstv %s955_s10 }
  0x20   :  { %82 = vrot.lane.b32.xlu1 %v73_v10, %s999_s28  ;;  %80 = vrot.lane.b32.xlu0 %v72_v11, %s999_s28  ;;  %v236_v46 = vrot.slane %v224_v39, 1  ;;  %v238_v47 = vrot.slane %v225_v40, 1  ;;  %v227_v48 = vmul.f32 %v222_v32, %v1038_v3  ;;  %v228_v49 = vmul.f32 %v222_v32, %v1082_v27 }
  0x21   :  { %v204_v50 = vsel %vm162_vm0, %v201_v37, %v203_v38  ;;  %v202_v51 = vsel %vm162_vm0, %v200_v43, %v201_v37  ;;  %v235_v52 = vrot.slane %v223_v44, 1  ;;  %v226_v53 = vmul.f32 %v222_v32, %v1028_v0 }
  0x22   :  { %v241_v54 = vrot.slane %v227_v48, 1  ;;  %v243_v55 = vrot.slane %v228_v49, 1  ;;  %v264_v56 = vmul.f32 %v262_v45, %v1043_v4  ;;  %v265_v57 = vmul.f32 %v262_v45, %v1070_v20 }
  0x23   :  { %v239_v58 = vsel %vm162_vm0, %v236_v46, %v238_v47  ;;  %v237_v59 = vsel %vm162_vm0, %v235_v52, %v236_v46  ;;  %v240_v60 = vrot.slane %v226_v53, 1  ;;  %v263_v61 = vmul.f32 %v262_v45, %v1033_v1 }
  0x24   :  { %86 = vrot.lane.b32.xlu1 %v75_v12, %s999_s28  ;;  %84 = vrot.lane.b32.xlu0 %v74_v13, %s999_s28  ;;  %v302_v62 = vstv %s956_s12  ;;  %v244_v63 = vsel %vm162_vm0, %v241_v54, %v243_v55  ;;  %v276_v2 = vrot.slane %v264_v56, 1  ;;  %v278_v5 = vrot.slane %v265_v57, 1 }
  0x25   :  { %v267_v6 = vmul.f32 %v262_v45, %v1038_v3  ;;  %v242_v7 = vsel %vm162_vm0, %v240_v60, %v241_v54  ;;  %v275_v8 = vrot.slane %v263_v61, 1  ;;  %v268_v9 = vmul.f32 %v262_v45, %v1082_v27 }
  0x26   :  { %v266_v10 = vmul.f32 %v262_v45, %v1028_v0  ;;  %v279_v11 = vsel %vm162_vm0, %v276_v2, %v278_v5  ;;  %v304_v13 = vmul.f32 %v302_v62, %v1043_v4  ;;  %v305_v14 = vmul.f32 %v302_v62, %v1070_v20 }
  0x27   :  { %v281_v12 = vrot.slane %v267_v6, 1  ;;  %v307_v19 = vmul.f32 %v302_v62, %v1038_v3  ;;  %v308_v21 = vmul.f32 %v302_v62, %v1082_v27  ;;  %v306_v24 = vmul.f32 %v302_v62, %v1028_v0 }
  0x28   :  { %108 = vrot.lane.b32.xlu1 %v99_v15, %s1000_s4  ;;  %106 = vrot.lane.b32.xlu0 %v98_v16, %s1000_s4  ;;  %v277_v15 = vsel %vm162_vm0, %v275_v8, %v276_v2  ;;  %v283_v16 = vrot.slane %v268_v9, 1 }
  0x29   :  { %v321_v30 = vrot.slane %v307_v19, 1  ;;  %v323_v31 = vrot.slane %v308_v21, 1  ;;  %v320_v33 = vrot.slane %v306_v24, 1  ;;  %v495_v21 = vstv %s961_s16 }
  0x2a   :  { %v284_v25 = vsel %vm162_vm0, %v281_v12, %v283_v16 }
  0x2b   :  { %v324_v38 = vsel %vm162_vm0, %v321_v30, %v323_v31  ;;  %v322_v39 = vsel %vm162_vm0, %v320_v33, %v321_v30  ;;  %v496_v30 = vmul.f32 %v495_v21, %v1033_v1  ;;  %v500_v33 = vmul.f32 %v495_v21, %v1038_v3 }
  0x2c   :  { %112 = vrot.lane.b32.xlu1 %v101_v17, %s1000_s4  ;;  %110 = vrot.lane.b32.xlu0 %v100_v18, %s1000_s4  ;;  %v280_v17 = vrot.slane %v266_v10, 1  ;;  %v303_v18 = vmul.f32 %v302_v62, %v1033_v1 }
  0x2e   :  { %v282_v26 = vsel %vm162_vm0, %v280_v17, %v281_v12 }
  0x30   :  { %134 = vrot.lane.b32.xlu1 %v125_v22, %s1001_s11  ;;  %132 = vrot.lane.b32.xlu0 %v124_v23, %s1001_s11  ;;  %v316_v22 = vrot.slane %v304_v13, 1  ;;  %v318_v23 = vrot.slane %v305_v14, 1 }
  0x32   :  { %v319_v32 = vsel %vm162_vm0, %v316_v22, %v318_v23 }
  0x34   :  { %138 = vrot.lane.b32.xlu1 %v127_v28, %s1001_s11  ;;  %136 = vrot.lane.b32.xlu0 %v126_v29, %s1001_s11  ;;  %v315_v28 = vrot.slane %v303_v18, 1  ;;  %v375_v29 = vstv %s958_s13 }
  0x35   :  { %v377_v35 = vmul.f32 %v375_v29, %v1043_v4  ;;  %v378_v36 = vmul.f32 %v375_v29, %v1070_v20  ;;  %v376_v37 = vmul.f32 %v375_v29, %v1033_v1  ;;  %v380_v40 = vmul.f32 %v375_v29, %v1038_v3 }
  0x36   :  { %v317_v34 = vsel %vm162_vm0, %v315_v28, %v316_v22  ;;  %v379_v46 = vmul.f32 %v375_v29, %v1028_v0  ;;  %v497_v28 = vmul.f32 %v495_v21, %v1043_v4 }
  0x37   :  { %v389_v43 = vrot.slane %v377_v35, 2  ;;  %v391_v44 = vrot.slane %v378_v36, 2  ;;  %v388_v45 = vrot.slane %v376_v37, 2  ;;  %v394_v49 = vrot.slane %v380_v40, 2 }
  0x38   :  { %207 = vrot.lane.b32.xlu1 %v199_v41, %s998_s26  ;;  %205 = vrot.lane.b32.xlu0 %v197_v42, %s998_s26  ;;  %v381_v41 = vmul.f32 %v375_v29, %v1082_v27  ;;  %v415_v42 = vstv %s959_s14  ;;  %v393_v54 = vrot.slane %v379_v46, 2  ;;  %v498_v29 = vmul.f32 %v495_v21, %v1070_v20 }
  0x39   :  { %v417_v47 = vmul.f32 %v415_v42, %v1043_v4  ;;  %v418_v48 = vmul.f32 %v415_v42, %v1070_v20  ;;  %v392_v52 = vsel %vm355_vm1, %v389_v43, %v391_v44  ;;  %v390_v53 = vsel %vm355_vm1, %v388_v45, %v389_v43 }
  0x3a   :  { %v395_v60 = vsel %vm355_vm1, %v393_v54, %v394_v49  ;;  %v421_v61 = vmul.f32 %v415_v42, %v1082_v27  ;;  %v419_v62 = vmul.f32 %v415_v42, %v1028_v0  ;;  %v568_v35 = vstv %s963_s17 }
  0x3b   :  { %v429_v55 = vrot.slane %v417_v47, 2  ;;  %v431_v56 = vrot.slane %v418_v48, 2  ;;  %v509_v36 = vrot.slane %v497_v28, 2  ;;  %v511_v37 = vrot.slane %v498_v29, 2 }
  0x3c   :  { %211 = vrot.lane.b32.xlu1 %v204_v50, %s998_s26  ;;  %209 = vrot.lane.b32.xlu0 %v202_v51, %s998_s26  ;;  %v396_v50 = vrot.slane %v381_v41, 2  ;;  %v416_v51 = vmul.f32 %v415_v42, %v1033_v1  ;;  %v436_v9 = vrot.slane %v421_v61, 2  ;;  %v433_v10 = vrot.slane %v419_v62, 2 }
  0x3d   :  { %v432_v2 = vsel %vm355_vm1, %v429_v55, %v431_v56  ;;  %v570_v40 = vmul.f32 %v568_v35, %v1043_v4  ;;  %v514_v41 = vrot.slane %v500_v33, 2  ;;  %v571_v43 = vmul.f32 %v568_v35, %v1070_v20 }
  0x3e   :  { %v397_v57 = vsel %vm355_vm1, %v394_v49, %v396_v50  ;;  %v512_v44 = vsel %vm355_vm1, %v509_v36, %v511_v37  ;;  %v569_v47 = vmul.f32 %v568_v35, %v1033_v1  ;;  %v608_v56 = vstv %s964_s18 }
  0x3f   :  { %v582_v48 = vrot.slane %v570_v40, 3  ;;  %v584_v50 = vrot.slane %v571_v43, 3 }
  0x40   :  { %247 = vrot.lane.b32.xlu1 %v239_v58, %s999_s28  ;;  %245 = vrot.lane.b32.xlu0 %v237_v59, %s999_s28  ;;  %v428_v58 = vrot.slane %v416_v51, 2  ;;  %v420_v59 = vmul.f32 %v415_v42, %v1038_v3  ;;  %v573_v51 = vmul.f32 %v568_v35, %v1038_v3  ;;  %v581_v54 = vrot.slane %v569_v47, 3 }
  0x42   :  { %v430_v5 = vsel %vm355_vm1, %v428_v58, %v429_v55  ;;  %v434_v8 = vrot.slane %v420_v59, 2  ;;  %v572_v55 = vmul.f32 %v568_v35, %v1028_v0  ;;  %v587_v58 = vrot.slane %v573_v51, 3 }
  0x43   :  { %v583_v61 = vsel %vm548_vm2, %v581_v54, %v582_v48 }
  0x44   :  { %251 = vrot.lane.b32.xlu1 %v244_v63, %s999_s28  ;;  %249 = vrot.lane.b32.xlu0 %v242_v7, %s999_s28  ;;  %v455_v63 = vstv %s960_s15  ;;  %v437_v17 = vsel %vm355_vm1, %v434_v8, %v436_v9  ;;  %v435_v18 = vsel %vm355_vm1, %v433_v10, %v434_v8  ;;  %v586_v62 = vrot.slane %v572_v55, 3 }
  0x45   :  { %v457_v6 = vmul.f32 %v455_v63, %v1043_v4  ;;  %v458_v7 = vmul.f32 %v455_v63, %v1070_v20  ;;  %v460_v12 = vmul.f32 %v455_v63, %v1038_v3  ;;  %v461_v13 = vmul.f32 %v455_v63, %v1082_v27 }
  0x46   :  { %v459_v16 = vmul.f32 %v455_v63, %v1028_v0  ;;  %v613_v8 = vmul.f32 %v608_v56, %v1038_v3  ;;  %v614_v9 = vmul.f32 %v608_v56, %v1082_v27  ;;  %v588_v10 = vsel %vm548_vm2, %v586_v62, %v587_v58 }
  0x47   :  { %v469_v14 = vrot.slane %v457_v6, 2  ;;  %v474_v22 = vrot.slane %v460_v12, 2  ;;  %v476_v23 = vrot.slane %v461_v13, 2  ;;  %v612_v13 = vmul.f32 %v608_v56, %v1028_v0 }
  0x48   :  { %287 = vrot.lane.b32.xlu1 %v279_v11, %s1000_s4  ;;  %285 = vrot.lane.b32.xlu0 %v277_v15, %s1000_s4  ;;  %v456_v11 = vmul.f32 %v455_v63, %v1033_v1  ;;  %v471_v15 = vrot.slane %v458_v7, 2  ;;  %v611_v63 = vmul.f32 %v608_v56, %v1070_v20 }
  0x49   :  { %v477_v31 = vsel %vm355_vm1, %v474_v22, %v476_v23 }
  0x4a   :  { %v468_v19 = vrot.slane %v456_v11, 2  ;;  %v472_v24 = vsel %vm355_vm1, %v469_v14, %v471_v15  ;;  %v624_v11 = vrot.slane %v611_v63, 3  ;;  %v629_v15 = vrot.slane %v614_v9, 3 }
  0x4c   :  { %291 = vrot.lane.b32.xlu1 %v284_v25, %s1000_s4  ;;  %289 = vrot.lane.b32.xlu0 %v282_v26, %s1000_s4  ;;  %v473_v25 = vrot.slane %v459_v16, 2  ;;  %v470_v26 = vsel %vm355_vm1, %v468_v19, %v469_v14  ;;  %v627_v14 = vrot.slane %v613_v8, 3 }
  0x4e   :  { %v630_v29 = vsel %vm548_vm2, %v627_v14, %v629_v15 }
  0x50   :  { %327 = vrot.lane.b32.xlu1 %v319_v32, %s1001_s11  ;;  %325 = vrot.lane.b32.xlu0 %v317_v34, %s1001_s11  ;;  %v475_v32 = vsel %vm355_vm1, %v473_v25, %v474_v22  ;;  %v501_v34 = vmul.f32 %v495_v21, %v1082_v27 }
  0x52   :  { %v516_v42 = vrot.slane %v501_v34, 2 }
  0x54   :  { %331 = vrot.lane.b32.xlu1 %v324_v38, %s1001_s11  ;;  %329 = vrot.lane.b32.xlu0 %v322_v39, %s1001_s11  ;;  %v508_v38 = vrot.slane %v496_v30, 2  ;;  %v499_v39 = vmul.f32 %v495_v21, %v1028_v0  ;;  %v517_v49 = vsel %vm355_vm1, %v514_v41, %v516_v42  ;;  %v626_v21 = vrot.slane %v612_v13, 3 }
  0x56   :  { %v510_v45 = vsel %vm355_vm1, %v508_v38, %v509_v36  ;;  %v513_v46 = vrot.slane %v499_v39, 2  ;;  %v628_v30 = vsel %vm548_vm2, %v626_v21, %v627_v14 }
  0x58   :  { %400 = vrot.lane.b32.xlu1 %v392_v52, %s998_s26  ;;  %398 = vrot.lane.b32.xlu0 %v390_v53, %s998_s26  ;;  %v574_v52 = vmul.f32 %v568_v35, %v1082_v27  ;;  %v515_v53 = vsel %vm355_vm1, %v513_v46, %v514_v41  ;;  %v35_v41 = vstv %s34_s1  ;;  %v761_v46 = vstv %s968_s21 }
  0x59   :  { %v764_v54 = vmul.f32 %v761_v46, %v1070_v20  ;;  %v36_v55 = vmul.f32 %v35_v41, %v1033_v1  ;;  %v38_v63 = vmul.f32 %v35_v41, %v1028_v0  ;;  %v766_v9 = vmul.f32 %v761_v46, %v1038_v3 }
  0x5a   :  { %v589_v59 = vrot.slane %v574_v52, 3  ;;  %v765_v13 = vmul.f32 %v761_v46, %v1028_v0 }
  0x5b   :  { %v777_v8 = vrot.slane %v764_v54, 4 }
  0x5c   :  { %404 = vrot.lane.b32.xlu1 %v397_v57, %s998_s26  ;;  %402 = vrot.lane.b32.xlu0 %v395_v60, %s998_s26  ;;  %v585_v57 = vsel %vm548_vm2, %v582_v48, %v584_v50  ;;  %v610_v60 = vmul.f32 %v608_v56, %v1043_v4  ;;  %v590_v6 = vsel %vm548_vm2, %v587_v58, %v589_v59 }
  0x5d   :  { %v762_v58 = vmul.f32 %v761_v46, %v1033_v1  ;;  %v37_v59 = vmul.f32 %v35_v41, %v1043_v4 }
  0x5e   :  { %v622_v7 = vrot.slane %v610_v60, 3 }
  0x60   :  { %440 = vrot.lane.b32.xlu1 %v432_v2, %s999_s28  ;;  %438 = vrot.lane.b32.xlu0 %v430_v5, %s999_s28  ;;  %v609_v2 = vmul.f32 %v608_v56, %v1033_v1  ;;  %v648_v5 = vstv %s965_s19 }
  0x61   :  { %v650_v16 = vmul.f32 %v648_v5, %v1043_v4  ;;  %v649_v22 = vmul.f32 %v648_v5, %v1033_v1  ;;  %v653_v23 = vmul.f32 %v648_v5, %v1038_v3  ;;  %v652_v28 = vmul.f32 %v648_v5, %v1028_v0 }
  0x62   :  { %v621_v12 = vrot.slane %v609_v2, 3 }
  0x63   :  { %v662_v25 = vrot.slane %v650_v16, 3  ;;  %v667_v33 = vrot.slane %v653_v23, 3  ;;  %v666_v36 = vrot.slane %v652_v28, 3 }
  0x64   :  { %444 = vrot.lane.b32.xlu1 %v437_v17, %s999_s28  ;;  %442 = vrot.lane.b32.xlu0 %v435_v18, %s999_s28  ;;  %v651_v17 = vmul.f32 %v648_v5, %v1070_v20  ;;  %v625_v18 = vsel %vm548_vm2, %v622_v7, %v624_v11  ;;  %v623_v19 = vsel %vm548_vm2, %v621_v12, %v622_v7  ;;  %v774_v11 = vrot.slane %v762_v58, 4 }
  0x65   :  { %v668_v43 = vsel %vm548_vm2, %v666_v36, %v667_v33  ;;  %v767_v12 = vmul.f32 %v761_v46, %v1082_v27 }
  0x68   :  { %480 = vrot.lane.b32.xlu1 %v472_v24, %s1000_s4  ;;  %478 = vrot.lane.b32.xlu0 %v470_v26, %s1000_s4  ;;  %v654_v24 = vmul.f32 %v648_v5, %v1082_v27  ;;  %v664_v26 = vrot.slane %v651_v17, 3  ;;  %v801_v17 = vstv %s1245_s22 }
  0x69   :  { %v803_v28 = vmul.f32 %v801_v17, %v1043_v4  ;;  %v806_v36 = vmul.f32 %v801_v17, %v1038_v3 }
  0x6a   :  { %v669_v34 = vrot.slane %v654_v24, 3  ;;  %v665_v35 = vsel %vm548_vm2, %v662_v25, %v664_v26  ;;  %v780_v24 = vrot.slane %v766_v9, 4  ;;  %v782_v26 = vrot.slane %v767_v12, 4 }
  0x6c   :  { %484 = vrot.lane.b32.xlu1 %v477_v31, %s1000_s4  ;;  %482 = vrot.lane.b32.xlu0 %v475_v32, %s1000_s4  ;;  %v661_v31 = vrot.slane %v649_v22, 3  ;;  %v688_v32 = vstv %s966_s20  ;;  %v670_v42 = vsel %vm548_vm2, %v667_v33, %v669_v34  ;;  %v802_v33 = vmul.f32 %v801_v17, %v1033_v1 }
  0x6d   :  { %v690_v38 = vmul.f32 %v688_v32, %v1043_v4  ;;  %v691_v39 = vmul.f32 %v688_v32, %v1070_v20  ;;  %v689_v40 = vmul.f32 %v688_v32, %v1033_v1  ;;  %v692_v50 = vmul.f32 %v688_v32, %v1028_v0 }
  0x6e   :  { %v663_v37 = vsel %vm548_vm2, %v661_v31, %v662_v25 }
  0x6f   :  { %v702_v47 = vrot.slane %v690_v38, 3  ;;  %v704_v48 = vrot.slane %v691_v39, 3  ;;  %v706_v62 = vrot.slane %v692_v50, 3 }
  0x70   :  { %520 = vrot.lane.b32.xlu1 %v512_v44, %s1001_s11  ;;  %518 = vrot.lane.b32.xlu0 %v510_v45, %s1001_s11  ;;  %v693_v44 = vmul.f32 %v688_v32, %v1038_v3  ;;  %v694_v45 = vmul.f32 %v688_v32, %v1082_v27  ;;  %v779_v32 = vrot.slane %v765_v13, 4 }
  0x71   :  { %v705_v60 = vsel %vm548_vm2, %v702_v47, %v704_v48 }
  0x72   :  { %v707_v56 = vrot.slane %v693_v44, 3  ;;  %v783_v44 = vsel %vm741_vm3, %v780_v24, %v782_v26 }
  0x74   :  { %524 = vrot.lane.b32.xlu1 %v517_v49, %s1001_s11  ;;  %522 = vrot.lane.b32.xlu0 %v515_v53, %s1001_s11  ;;  %v701_v49 = vrot.slane %v689_v40, 3  ;;  %v763_v53 = vmul.f32 %v761_v46, %v1043_v4  ;;  %v708_v16 = vsel %vm548_vm2, %v706_v62, %v707_v56  ;;  %v815_v40 = vrot.slane %v803_v28, 4 }
  0x75   :  { %v814_v46 = vrot.slane %v802_v33, 4 }
  0x76   :  { %v775_v7 = vrot.slane %v763_v53, 4 }
  0x78   :  { %593 = vrot.lane.b32.xlu1 %v585_v57, %s998_s26  ;;  %591 = vrot.lane.b32.xlu0 %v583_v61, %s998_s26  ;;  %v709_v57 = vrot.slane %v694_v45, 3  ;;  %v703_v61 = vsel %vm548_vm2, %v701_v49, %v702_v47  ;;  %v778_v23 = vsel %vm741_vm3, %v775_v7, %v777_v8  ;;  %v776_v25 = vsel %vm741_vm3, %v774_v11, %v775_v7 }
  0x79   :  { %v781_v45 = vsel %vm741_vm3, %v779_v32, %v780_v24  ;;  %v820_v49 = vrot.slane %v806_v36, 4 }
  0x7c   :  { %597 = vrot.lane.b32.xlu1 %v590_v6, %s998_s26  ;;  %595 = vrot.lane.b32.xlu0 %v588_v10, %s998_s26  ;;  %v39_v6 = vmul.f32 %v35_v41, %v1038_v3  ;;  %v710_v10 = vsel %vm548_vm2, %v707_v56, %v709_v57 }
  0x80   :  { %633 = vrot.lane.b32.xlu1 %v625_v18, %s999_s28  ;;  %631 = vrot.lane.b32.xlu0 %v623_v19, %s999_s28 }
  0x84   :  { %637 = vrot.lane.b32.xlu1 %v630_v29, %s999_s28  ;;  %635 = vrot.lane.b32.xlu0 %v628_v30, %s999_s28  ;;  %v804_v29 = vmul.f32 %v801_v17, %v1070_v20 }
  0x86   :  { %v817_v41 = vrot.slane %v804_v29, 4 }
  0x88   :  { %673 = vrot.lane.b32.xlu1 %v665_v35, %s1000_s4  ;;  %671 = vrot.lane.b32.xlu0 %v663_v37, %s1000_s4  ;;  %v807_v37 = vmul.f32 %v801_v17, %v1082_v27 }
  0x8a   :  { %v59_v51 = vpop.permute.xlu1 %58  ;;  %v55_v52 = vpop.permute.xlu0 %54  ;;  %v822_v50 = vrot.slane %v807_v37, 4 }
  0x8b   :  { %v66_v14 = vadd.f32 %v55_v52, %v36_v55  ;;  %v68_v30 = vadd.f32 %v59_v51, %v38_v63  ;;  %v149_v51 = vstv %s1268_s24  ;;  %v818_v55 = vsel %vm741_vm3, %v815_v40, %v817_v41 }
  0x8c   :  { %677 = vrot.lane.b32.xlu1 %v670_v42, %s1000_s4  ;;  %675 = vrot.lane.b32.xlu0 %v668_v43, %s1000_s4  ;;  %v805_v42 = vmul.f32 %v801_v17, %v1028_v0  ;;  %v841_v43 = vstv %s1264_s23  ;;  %v150_v62 = vmul.f32 %v149_v51, %v1033_v1  ;;  %v155_v24 = vmul.f32 %v149_v51, %v1082_v27 }
  0x8d   :  { %v843_v54 = vmul.f32 %v841_v43, %v1043_v4  ;;  %v844_v57 = vmul.f32 %v841_v43, %v1070_v20  ;;  %v842_v58 = vmul.f32 %v841_v43, %v1033_v1  ;;  %v847_v9 = vmul.f32 %v841_v43, %v1082_v27 }
  0x8e   :  { %v61_v2 = vpop.permute.xlu1 %60  ;;  %v57_v5 = vpop.permute.xlu0 %56  ;;  %v819_v56 = vrot.slane %v805_v42, 4  ;;  %v163_v17 = vrot.slane %v150_v62, 1  ;;  %v171_v41 = vrot.slane %v155_v24, 1 }
  0x8f   :  { %v67_v15 = vadd.f32 %v57_v5, %v37_v59  ;;  %v69_v31 = vadd.f32 %v61_v2, %v39_v6  ;;  %v816_v59 = vsel %vm741_vm3, %v814_v46, %v815_v40  ;;  %v823_v5 = vsel %vm741_vm3, %v820_v49, %v822_v50 }
  0x90   :  { %713 = vrot.lane.b32.xlu1 %v705_v60, %s1001_s11  ;;  %711 = vrot.lane.b32.xlu0 %v703_v61, %s1001_s11  ;;  %v151_v60 = vmul.f32 %v149_v51, %v1043_v4  ;;  %v152_v61 = vmul.f32 %v149_v51, %v1070_v20  ;;  %v846_v6 = vmul.f32 %v841_v43, %v1038_v3  ;;  %v855_v12 = vrot.slane %v843_v54, 4 }
  0x91   :  { %v821_v11 = vsel %vm741_vm3, %v819_v56, %v820_v49  ;;  %v857_v13 = vrot.slane %v844_v57, 4  ;;  %v862_v29 = vrot.slane %v847_v9, 4 }
  0x92   :  { %v83_v18 = vpop.permute.xlu1 %82  ;;  %v81_v19 = vpop.permute.xlu0 %80 }
  0x93   :  { %v93_v21 = vadd.f32 %v83_v18, %v67_v15  ;;  %v92_v22 = vadd.f32 %v81_v19, %v66_v14  ;;  %v854_v14 = vrot.slane %v842_v58, 4  ;;  %v164_v15 = vrot.slane %v151_v60, 1 }
  0x94   :  { %717 = vrot.lane.b32.xlu1 %v710_v10, %s1001_s11  ;;  %715 = vrot.lane.b32.xlu0 %v708_v16, %s1001_s11  ;;  %v845_v10 = vmul.f32 %v841_v43, %v1028_v0  ;;  %v166_v16 = vrot.slane %v152_v61, 1  ;;  %v881_v18 = vstv %s1285_s25  ;;  %v858_v33 = vsel %vm741_vm3, %v855_v12, %v857_v13 }
  0x95   :  { %v884_v32 = vmul.f32 %v881_v18, %v1070_v20  ;;  %v882_v36 = vmul.f32 %v881_v18, %v1033_v1  ;;  %v886_v49 = vmul.f32 %v881_v18, %v1038_v3  ;;  %v887_v50 = vmul.f32 %v881_v18, %v1082_v27 }
  0x96   :  { %v87_v34 = vpop.permute.xlu1 %86  ;;  %v85_v35 = vpop.permute.xlu0 %84  ;;  %v885_v54 = vmul.f32 %v881_v18, %v1028_v0 }
  0x97   :  { %v95_v38 = vadd.f32 %v87_v34, %v69_v31  ;;  %v94_v39 = vadd.f32 %v85_v35, %v68_v30  ;;  %v859_v30 = vrot.slane %v845_v10, 4  ;;  %v883_v31 = vmul.f32 %v881_v18, %v1043_v4 }
  0x98   :  { %786 = vrot.lane.b32.xlu1 %v778_v23, %s998_s26  ;;  %784 = vrot.lane.b32.xlu0 %v776_v25, %s998_s26  ;;  %v154_v23 = vmul.f32 %v149_v51, %v1038_v3  ;;  %v153_v25 = vmul.f32 %v149_v51, %v1028_v0  ;;  %v856_v34 = vsel %vm741_vm3, %v854_v14, %v855_v12  ;;  %v900_v62 = vrot.slane %v886_v49, 4 }
  0x99   :  { %v167_v35 = vsel %vm162_vm0, %v164_v15, %v166_v16 }
  0x9a   :  { %v109_v47 = vpop.permute.xlu1 %108  ;;  %v107_v48 = vpop.permute.xlu0 %106  ;;  %v169_v40 = vrot.slane %v154_v23, 1  ;;  %v168_v42 = vrot.slane %v153_v25, 1 }
  0x9b   :  { %v119_v52 = vadd.f32 %v109_v47, %v93_v21  ;;  %v118_v53 = vadd.f32 %v107_v48, %v92_v22  ;;  %v860_v22 = vrot.slane %v846_v6, 4  ;;  %v895_v47 = vrot.slane %v883_v31, 4 }
  0x9c   :  { %790 = vrot.lane.b32.xlu1 %v783_v44, %s998_s26  ;;  %788 = vrot.lane.b32.xlu0 %v781_v45, %s998_s26  ;;  %v897_v48 = vrot.slane %v884_v32, 4  ;;  %v172_v57 = vsel %vm162_vm0, %v169_v40, %v171_v41  ;;  %v170_v58 = vsel %vm162_vm0, %v168_v42, %v169_v40  ;;  %s957_s26 = sld [smem:[#allocation3 + $0x100]] }
  0x9d   :  { %v863_v45 = vsel %vm741_vm3, %v860_v22, %v862_v29  ;;  %v861_v46 = vsel %vm741_vm3, %v859_v30, %v860_v22 }
  0x9e   :  { %v113_v63 = vpop.permute.xlu1 %112  ;;  %v111_v2 = vpop.permute.xlu0 %110  ;;  %v898_v61 = vsel %vm741_vm3, %v895_v47, %v897_v48 }
  0x9f   :  { %v121_v7 = vadd.f32 %v113_v63, %v95_v38  ;;  %v120_v8 = vadd.f32 %v111_v2, %v94_v39  ;;  %v165_v39 = vsel %vm162_vm0, %v163_v17, %v164_v15  ;;  %v902_v63 = vrot.slane %v887_v50, 4 }
  0xa0   :  { %826 = vrot.lane.b32.xlu1 %v818_v55, %s999_s28  ;;  %824 = vrot.lane.b32.xlu0 %v816_v59, %s999_s28 }
  0xa1   :  { %v903_v12 = vsel %vm741_vm3, %v900_v62, %v902_v63 }
  0xa2   :  { %v135_v19 = vpop.permute.xlu1 %134  ;;  %v133_v21 = vpop.permute.xlu0 %132 }
  0xa3   :  { %v145_v26 = vadd.f32 %v135_v19, %v119_v52  ;;  %v144_v28 = vadd.f32 %v133_v21, %v118_v53  ;;  %v894_v53 = vrot.slane %v882_v36, 4  ;;  %v342_v21 = vstv %s957_s26 }
  0xa4   :  { %830 = vrot.lane.b32.xlu1 %v823_v5, %s999_s28  ;;  %828 = vrot.lane.b32.xlu0 %v821_v11, %s999_s28  ;;  %v344_v24 = vmul.f32 %v342_v21, %v1043_v4  ;;  %v343_v29 = vmul.f32 %v342_v21, %v1033_v1 }
  0xa5   :  { %v178_v51 = vadd.f32 %v167_v35, %v145_v26  ;;  %v177_v52 = vadd.f32 %v165_v39, %v144_v28  ;;  %v896_v6 = vsel %vm741_vm3, %v894_v53, %v895_v47  ;;  %v345_v28 = vmul.f32 %v342_v21, %v1070_v20 }
  0xa6   :  { %v139_v37 = vpop.permute.xlu1 %138  ;;  %v137_v38 = vpop.permute.xlu0 %136  ;;  %v357_v32 = vrot.slane %v344_v24, 2  ;;  %v346_v39 = vmul.f32 %v342_v21, %v1028_v0 }
  0xa7   :  { %v147_v43 = vadd.f32 %v139_v37, %v121_v7  ;;  %v146_v44 = vadd.f32 %v137_v38, %v120_v8  ;;  %v899_v7 = vrot.slane %v885_v54, 4  ;;  %v359_v36 = vrot.slane %v345_v28, 2 }
  0xa8   :  { %866 = vrot.lane.b32.xlu1 %v858_v33, %s1000_s4  ;;  %864 = vrot.lane.b32.xlu0 %v856_v34, %s1000_s4  ;;  %v347_v33 = vmul.f32 %v342_v21, %v1038_v3  ;;  %v356_v37 = vrot.slane %v343_v29, 2  ;;  %v348_v38 = vmul.f32 %v342_v21, %v1082_v27 }
  0xa9   :  { %v180_v2 = vadd.f32 %v172_v57, %v147_v43  ;;  %v179_v5 = vadd.f32 %v170_v58, %v146_v44  ;;  %v901_v13 = vsel %vm741_vm3, %v899_v7, %v900_v62  ;;  %v360_v1 = vsel %vm355_vm1, %v357_v32, %v359_v36 }
  0xaa   :  { %v208_v55 = vpop.permute.xlu1 %207  ;;  %v206_v56 = vpop.permute.xlu0 %205  ;;  %v362_v41 = vrot.slane %v347_v33, 2  ;;  %v358_v44 = vsel %vm355_vm1, %v356_v37, %v357_v32 }
  0xab   :  { %v218_v59 = vadd.f32 %v208_v55, %v178_v51  ;;  %v217_v60 = vadd.f32 %v206_v56, %v177_v52 }
  0xac   :  { %870 = vrot.lane.b32.xlu1 %v863_v45, %s1000_s4  ;;  %868 = vrot.lane.b32.xlu0 %v861_v46, %s1000_s4  ;;  %v364_v45 = vrot.slane %v348_v38, 2  ;;  %v361_v46 = vrot.slane %v346_v39, 2 }
  0xae   :  { %v212_v8 = vpop.permute.xlu1 %211  ;;  %v210_v9 = vpop.permute.xlu0 %209  ;;  %v365_v52 = vsel %vm355_vm1, %v362_v41, %v364_v45  ;;  %v363_v0 = vsel %vm355_vm1, %v361_v46, %v362_v41 }
  0xaf   :  { %v220_v10 = vadd.f32 %v212_v8, %v180_v2  ;;  %v219_v11 = vadd.f32 %v210_v9, %v179_v5  ;;  %v535_v5 = vstv %s962_s27 }
  0xb0   :  { %906 = vrot.lane.b32.xlu1 %v898_v61, %s1001_s11  ;;  %904 = vrot.lane.b32.xlu0 %v896_v6, %s1001_s11  ;;  %v977_v6 = vld [vmem:[%s1398_s0 + $0x8] sm:$0xff] }
  0xb1   :  { %v537_v7 = vmul.f32 %v977_v6, %v535_v5 }
  0xb2   :  { %v248_v14 = vpop.permute.xlu1 %247  ;;  %v246_v15 = vpop.permute.xlu0 %245 }
  0xb3   :  { %v258_v16 = vadd.f32 %v248_v14, %v218_v59  ;;  %v257_v17 = vadd.f32 %v246_v15, %v217_v60 }
  0xb4   :  { %910 = vrot.lane.b32.xlu1 %v903_v12, %s1001_s11  ;;  %908 = vrot.lane.b32.xlu0 %v901_v13, %s1001_s11  ;;  %v1357_v13 = vld [vmem:[%s1398_s0 + $0x20] sm:$0xff] }
  0xb5   :  { %v540_v14 = vmul.f32 %v1357_v13, %v535_v5 }
  0xb6   :  { %v252_v18 = vpop.permute.xlu1 %251  ;;  %v250_v19 = vpop.permute.xlu0 %249 }
  0xb7   :  { %v260_v22 = vadd.f32 %v252_v18, %v220_v10  ;;  %v259_v23 = vadd.f32 %v250_v19, %v219_v11  ;;  %v538_v10 = vmul.f32 %v535_v5, %v1070_v20  ;;  %v978_v11 = vld [vmem:[%s1398_s0] sm:$0xff]  ;;  %v541_v20 = vmul.f32 %v535_v5, %v1082_v27 }
  0xb8   :  { %v536_v12 = vmul.f32 %v978_v11, %v535_v5  ;;  %v555_v28 = vrot.slane %v540_v14, 3 }
  0xb9   :  { %v552_v21 = vrot.slane %v538_v10, 3  ;;  %v557_v37 = vrot.slane %v541_v20, 3 }
  0xba   :  { %v288_v25 = vpop.permute.xlu1 %287  ;;  %v286_v26 = vpop.permute.xlu0 %285 }
  0xbb   :  { %v298_v30 = vadd.f32 %v288_v25, %v258_v16  ;;  %v297_v31 = vadd.f32 %v286_v26, %v257_v17  ;;  %v550_v17 = vrot.slane %v537_v7, 3  ;;  %v558_v46 = vsel %vm548_vm2, %v555_v28, %v557_v37 }
  0xbe   :  { %v292_v34 = vpop.permute.xlu1 %291  ;;  %v290_v35 = vpop.permute.xlu0 %289 }
  0xbf   :  { %v300_v4 = vadd.f32 %v292_v34, %v260_v22  ;;  %v299_v40 = vadd.f32 %v290_v35, %v259_v23  ;;  %v549_v22 = vrot.slane %v536_v12, 3  ;;  %v980_v23 = vld [vmem:[%s1398_s0 + $0x18] sm:$0xff]  ;;  %v553_v35 = vsel %vm548_vm2, %v550_v17, %v552_v21 }
  0xc0   :  { %v539_v24 = vmul.f32 %v980_v23, %v535_v5 }
  0xc1   :  { %v551_v36 = vsel %vm548_vm2, %v549_v22, %v550_v17 }
  0xc2   :  { %v328_v42 = vpop.permute.xlu1 %327  ;;  %v326_v43 = vpop.permute.xlu0 %325  ;;  %v554_v27 = vrot.slane %v539_v24, 3 }
  0xc3   :  { %v338_v3 = vadd.f32 %v328_v42, %v298_v30  ;;  %v337_v47 = vadd.f32 %v326_v43, %v297_v31 }
  0xc5   :  { %v371_v48 = vadd.f32 %v360_v1, %v338_v3  ;;  %v370_v49 = vadd.f32 %v358_v44, %v337_v47  ;;  %v556_v3 = vsel %vm548_vm2, %v554_v27, %v555_v28 }
  0xc6   :  { %v332_v50 = vpop.permute.xlu1 %331  ;;  %v330_v51 = vpop.permute.xlu0 %329 }
  0xc7   :  { %v340_v53 = vadd.f32 %v332_v50, %v300_v4  ;;  %v339_v54 = vadd.f32 %v330_v51, %v299_v40 }
  0xc9   :  { %v373_v55 = vadd.f32 %v365_v52, %v340_v53  ;;  %v372_v56 = vadd.f32 %v363_v0, %v339_v54 }
  0xca   :  { %v401_v57 = vpop.permute.xlu1 %400  ;;  %v399_v58 = vpop.permute.xlu0 %398 }
  0xcb   :  { %v411_v15 = vadd.f32 %v401_v57, %v371_v48  ;;  %v410_v16 = vadd.f32 %v399_v58, %v370_v49 }
  0xce   :  { %v405_v59 = vpop.permute.xlu1 %404  ;;  %v403_v60 = vpop.permute.xlu0 %402 }
  0xcf   :  { %v413_v29 = vadd.f32 %v405_v59, %v373_v55  ;;  %v412_v30 = vadd.f32 %v403_v60, %v372_v56  ;;  %v728_v56 = vstv %s967_s9  ;;  %v981_v60 = vld [vmem:[%s1398_s0 + $0x10] sm:$0xf] }
  0xd0   :  { %v730_v59 = vmul.f32 %v977_v6, %v728_v56  ;;  %v982_v6 = vld [vmem:[%s1398_s0 + $0x28] sm:$0xf]  ;;  %v732_v17 = vmul.f32 %v980_v23, %v728_v56 }
  0xd2   :  { %v441_v61 = vpop.permute.xlu1 %440  ;;  %v439_v62 = vpop.permute.xlu0 %438  ;;  %v743_v5 = vrot.slane %v730_v59, 4 }
  0xd3   :  { %v451_v25 = vadd.f32 %v441_v61, %v411_v15  ;;  %v450_v26 = vadd.f32 %v439_v62, %v410_v16  ;;  %v731_v61 = vmul.f32 %v981_v60, %v728_v56  ;;  %v733_v15 = vmul.f32 %v1357_v13, %v728_v56 }
  0xd4   :  { %v734_v16 = vmul.f32 %v982_v6, %v728_v56 }
  0xd5   :  { %v745_v7 = vrot.slane %v731_v61, 4  ;;  %v921_v61 = vstv %s1400_s2 }
  0xd6   :  { %v445_v63 = vpop.permute.xlu1 %444  ;;  %v443_v2 = vpop.permute.xlu0 %442  ;;  %v750_v13 = vrot.slane %v734_v16, 4 }
  0xd7   :  { %v453_v38 = vadd.f32 %v445_v63, %v413_v29  ;;  %v452_v39 = vadd.f32 %v443_v2, %v412_v30  ;;  %v729_v2 = vmul.f32 %v978_v11, %v728_v56  ;;  %v746_v21 = vsel %vm741_vm3, %v743_v5, %v745_v7 }
  0xd8   :  { %v748_v29 = vrot.slane %v733_v15, 4  ;;  %v747_v30 = vrot.slane %v732_v17, 4 }
  0xd9   :  { %v742_v14 = vrot.slane %v729_v2, 4 }
  0xda   :  { %v481_v8 = vpop.permute.xlu1 %480  ;;  %v479_v9 = vpop.permute.xlu0 %478 }
  0xdb   :  { %v491_v31 = vadd.f32 %v481_v8, %v451_v25  ;;  %v490_v32 = vadd.f32 %v479_v9, %v450_v26  ;;  %v744_v28 = vsel %vm741_vm3, %v742_v14, %v743_v5 }
  0xde   :  { %v485_v18 = vpop.permute.xlu1 %484  ;;  %v483_v19 = vpop.permute.xlu0 %482 }
  0xdf   :  { %v493_v41 = vadd.f32 %v485_v18, %v453_v38  ;;  %v492_v42 = vadd.f32 %v483_v19, %v452_v39  ;;  %v751_v39 = vsel %vm741_vm3, %v748_v29, %v750_v13 }
  0xe2   :  { %v521_v33 = vpop.permute.xlu1 %520  ;;  %v519_v34 = vpop.permute.xlu0 %518 }
  0xe3   :  { %v531_v4 = vadd.f32 %v521_v33, %v491_v31  ;;  %v530_v40 = vadd.f32 %v519_v34, %v490_v32 }
  0xe5   :  { %v564_v43 = vadd.f32 %v553_v35, %v531_v4  ;;  %v563_v1 = vadd.f32 %v551_v36, %v530_v40  ;;  %v749_v4 = vsel %vm741_vm3, %v747_v30, %v748_v29 }
  0xe6   :  { %v525_v44 = vpop.permute.xlu1 %524  ;;  %v523_v45 = vpop.permute.xlu0 %522 }
  0xe7   :  { %v533_v47 = vadd.f32 %v525_v44, %v493_v41  ;;  %v532_v48 = vadd.f32 %v523_v45, %v492_v42 }
  0xe9   :  { %v566_v49 = vadd.f32 %v558_v46, %v533_v47  ;;  %v565_v50 = vadd.f32 %v556_v3, %v532_v48 }
  0xea   :  { %v594_v51 = vpop.permute.xlu1 %593  ;;  %v592_v52 = vpop.permute.xlu0 %591 }
  0xeb   :  { %v604_v8 = vadd.f32 %v594_v51, %v564_v43  ;;  %v603_v9 = vadd.f32 %v592_v52, %v563_v1 }
  0xee   :  { %v598_v0 = vpop.permute.xlu1 %597  ;;  %v596_v53 = vpop.permute.xlu0 %595 }
  0xef   :  { %v606_v11 = vadd.f32 %v598_v0, %v566_v49  ;;  %v605_v22 = vadd.f32 %v596_v53, %v565_v50 }
  0xf2   :  { %v634_v54 = vpop.permute.xlu1 %633  ;;  %v632_v55 = vpop.permute.xlu0 %631 }
  0xf3   :  { %v644_v18 = vadd.f32 %v634_v54, %v604_v8  ;;  %v643_v19 = vadd.f32 %v632_v55, %v603_v9 }
  0xf6   :  { %v638_v57 = vpop.permute.xlu1 %637  ;;  %v636_v58 = vpop.permute.xlu0 %635 }
  0xf7   :  { %v646_v31 = vadd.f32 %v638_v57, %v606_v11  ;;  %v645_v32 = vadd.f32 %v636_v58, %v605_v22 }
  0xfa   :  { %v674_v62 = vpop.permute.xlu1 %673  ;;  %v672_v63 = vpop.permute.xlu0 %671 }
  0xfb   :  { %v684_v20 = vadd.f32 %v674_v62, %v644_v18  ;;  %v683_v24 = vadd.f32 %v672_v63, %v643_v19 }
  0xfe   :  { %v678_v10 = vpop.permute.xlu1 %677  ;;  %v676_v12 = vpop.permute.xlu0 %675 }
  0xff   :  { %v686_v23 = vadd.f32 %v678_v10, %v646_v31  ;;  %v685_v35 = vadd.f32 %v676_v12, %v645_v32 }
 0x102   :  { %v714_v25 = vpop.permute.xlu1 %713  ;;  %v712_v26 = vpop.permute.xlu0 %711 }
 0x103   :  { %v724_v33 = vadd.f32 %v714_v25, %v684_v20  ;;  %v723_v34 = vadd.f32 %v712_v26, %v683_v24 }
 0x105   :  { %v757_v36 = vadd.f32 %v746_v21, %v724_v33  ;;  %v756_v37 = vadd.f32 %v744_v28, %v723_v34 }
 0x106   :  { %v718_v27 = vpop.permute.xlu1 %717  ;;  %v716_v38 = vpop.permute.xlu0 %715 }
 0x107   :  { %v726_v40 = vadd.f32 %v718_v27, %v686_v23  ;;  %v725_v41 = vadd.f32 %v716_v38, %v685_v35 }
 0x109   :  { %v759_v42 = vadd.f32 %v751_v39, %v726_v40  ;;  %v758_v43 = vadd.f32 %v749_v4, %v725_v41 }
 0x10a   :  { %v787_v1 = vpop.permute.xlu1 %786  ;;  %v785_v44 = vpop.permute.xlu0 %784 }
 0x10b   :  { %v797_v52 = vadd.f32 %v787_v1, %v757_v36  ;;  %v796_v0 = vadd.f32 %v785_v44, %v756_v37 }
 0x10e   :  { %v791_v45 = vpop.permute.xlu1 %790  ;;  %v789_v46 = vpop.permute.xlu0 %788 }
 0x10f   :  { %v799_v59 = vadd.f32 %v791_v45, %v759_v42  ;;  %v798_v60 = vadd.f32 %v789_v46, %v758_v43 }
 0x112   :  { %v827_v3 = vpop.permute.xlu1 %826  ;;  %v825_v47 = vpop.permute.xlu0 %824 }
 0x113   :  { %v837_v55 = vadd.f32 %v827_v3, %v797_v52  ;;  %v836_v56 = vadd.f32 %v825_v47, %v796_v0 }
 0x116   :  { %v831_v48 = vpop.permute.xlu1 %830  ;;  %v829_v49 = vpop.permute.xlu0 %828 }
 0x117   :  { %v839_v7 = vadd.f32 %v831_v48, %v799_v59  ;;  %v838_v8 = vadd.f32 %v829_v49, %v798_v60 }
 0x11a   :  { %v867_v50 = vpop.permute.xlu1 %866  ;;  %v865_v51 = vpop.permute.xlu0 %864 }
 0x11b   :  { %v877_v57 = vadd.f32 %v867_v50, %v837_v55  ;;  %v876_v58 = vadd.f32 %v865_v51, %v836_v56 }
 0x11e   :  { %v871_v53 = vpop.permute.xlu1 %870  ;;  %v869_v54 = vpop.permute.xlu0 %868 }
 0x11f   :  { %v879_v12 = vadd.f32 %v871_v53, %v839_v7  ;;  %v878_v14 = vadd.f32 %v869_v54, %v838_v8 }
 0x122   :  { %v907_v62 = vpop.permute.xlu1 %906  ;;  %v905_v63 = vpop.permute.xlu0 %904 }
 0x123   :  { %v917_v2 = vadd.f32 %v907_v62, %v877_v57  ;;  %v916_v5 = vadd.f32 %v905_v63, %v876_v58 }
 0x125   :  { %v923_v9 = vadd.f32 %v921_v61, %v917_v2  ;;  %v922_v10 = vadd.f32 %v921_v61, %v916_v5 }
 0x126   :  { %v911_v15 = vpop.permute.xlu1 %910  ;;  %v909_v6 = vpop.permute.xlu0 %908 }
 0x127   :  { %vm927_vm5 = vcmp.gt.f32.partialorder %v923_v9, 0.0  ;;  %v931_v16 = vmul.f32 0.2, %v923_v9  ;;  %vm926_vm6 = vcmp.gt.f32.partialorder %v922_v10, 0.0  ;;  %v930_v17 = vmul.f32 0.2, %v922_v10 }
 0x128   :  { %v919_v18 = vadd.f32 %v911_v15, %v879_v12  ;;  %v918_v19 = vadd.f32 %v909_v6, %v878_v14 }
 0x129   :  { %v935_v21 = vsel %vm927_vm5, %v923_v9, %v931_v16  ;;  %v934_v11 = vsel %vm926_vm6, %v922_v10, %v930_v17 }
 0x12a   :  { %940 = vst.msk [vmem:[%s1401_s3 + $0x8] sm:$0xff] %vm938_vm4, %v935_v21  ;;  %939 = vst.msk [vmem:[%s1401_s3] sm:$0xff] %vm938_vm4, %v934_v11  ;;  %v925_v22 = vadd.f32 %v921_v61, %v919_v18  ;;  %v924_v20 = vadd.f32 %v921_v61, %v918_v19 }
 0x12c   :  { %vm929_vm7 = vcmp.gt.f32.partialorder %v925_v22, 0.0  ;;  %v933_v24 = vmul.f32 0.2, %v925_v22  ;;  %vm928_vm8 = vcmp.gt.f32.partialorder %v924_v20, 0.0  ;;  %v932_v25 = vmul.f32 0.2, %v924_v20 }
 0x12e   :  { %v937_v26 = vsel %vm929_vm7, %v925_v22, %v933_v24  ;;  %v936_v28 = vsel %vm928_vm8, %v924_v20, %v932_v25 }
 0x12f   :  { %942 = vst.msk [vmem:[%s1401_s3 + $0x18] sm:$0xff] %vm938_vm4, %v937_v26  ;;  %941 = vst.msk [vmem:[%s1401_s3 + $0x10] sm:$0xff] %vm938_vm4, %v936_v28 }
 0x130   :  { %947 = vsyncpa [#allocation4], 1 }

// kernel: dltkcat_forward.12
= control target key start
LH: loop header
LB: loop body
LE: loop exit
PB: predicated region body
PF: predicated region fallthrough
CT: control target
= control target key end

     0   :  { %v279_v3 = vmov 0.0   ;;  %vm45_vm0 = vcmask 261120   ;;  %v30_v21 = vlaneseq  ;;  %s363_s1 = inlined_call_operand.vmem [shape: f32[32,384], index: 1, kind: input, shape index: {}]   ;;  %s364_s0 = inlined_call_operand.vmem [shape: f32[16,32], index: 0, kind: input, shape index: {}]   ;;  %s365_s2 = inlined_call_operand.vmem [shape: f32[1,384], index: 2, kind: input, shape index: {}]   ;;  %s366_s3 = inlined_call_operand.vmem [shape: f32[16,384], index: 3, kind: output, shape index: {}]  }
   0x1   :  { %v17_v0 = vld [vmem:[%s363_s1 + $0x8] sm:$0xff]  ;;  %v20_v1 = vld [vmem:[%s363_s1 + $0x20] sm:$0xff]  ;;  %116 = vmatprep.mubr.f32.mxu0 %v279_v3  ;;  %v19_v5 = vld [vmem:[%s363_s1 + $0x18] sm:$0xff] }
   0x2   :  { %v16_v2 = vld [vmem:[%s363_s1] sm:$0xff]  ;;  %v254_v4 = vpack.c.bf16 %v20_v1, %v17_v0  ;;  %v18_v6 = vld [vmem:[%s363_s1 + $0x10] sm:$0xff]  ;;  %v21_v7 = vld [vmem:[%s363_s1 + $0x28] sm:$0xff]  ;;  %v31_v22 = vshrl.u32 %v30_v21, 7 }
   0x3   :  { %v256_v8 = vpack.c.bf16 %v19_v5, %v16_v2  ;;  %v262_v9 = vpack.c.bf16 %v21_v7, %v18_v6  ;;  %v23_v10 = vld [vmem:[%s363_s1 + $0x38] sm:$0xff]  ;;  %v26_v11 = vld [vmem:[%s363_s1 + $0x50] sm:$0xff]  ;;  %v25_v14 = vld [vmem:[%s363_s1 + $0x48] sm:$0xff] }
   0x4   :  { %v22_v12 = vld [vmem:[%s363_s1 + $0x30] sm:$0xff]  ;;  %255 = vmatprep.subr.bf16.mxu0 %v254_v4  ;;  %v258_v13 = vpack.c.bf16 %v26_v11, %v23_v10  ;;  %v24_v15 = vld [vmem:[%s363_s1 + $0x40] sm:$0xff]  ;;  %v27_v16 = vld [vmem:[%s363_s1 + $0x58] sm:$0xff]  ;;  %v32_v23 = vsub.s32 0, %v31_v22  ;;  %v36_v25 = vsub.s32 1, %v31_v22  ;;  %v40_v26 = vsub.s32 2, %v31_v22 }
   0x5   :  { %257 = vmatpush1.bf16.msra.mxu0 %v256_v8  ;;  %263 = vmatprep.subr.bf16.mxu1 %v262_v9  ;;  %v260_v17 = vpack.c.bf16 %v25_v14, %v22_v12  ;;  %v266_v18 = vpack.c.bf16 %v27_v16, %v24_v15  ;;  %v14_v19 = vld [vmem:[%s364_s0] sm:$0xff]  ;;  %v15_v20 = vld [vmem:[%s364_s0 + $0x8] sm:$0xff] }
   0x6   :  { %259 = vmatprep.subr.bf16.mxu0 %v258_v13  ;;  %265 = vmatpush3.bf16.msra.mxu1 %v262_v9  ;;  %v28_v24 = vld [vmem:[%s365_s2] sm:$0x7] }
   0x7   :  { %267 = vmatprep.subr.bf16.mxu1 %v266_v18  ;;  %251 = vmatprep.mubr.msk.f32.mxu1 %vm45_vm0, %v14_v19  ;;  %v33_v27 = vrot.slane %v28_v24, %v32_v23  ;;  %v37_v28 = vrot.slane %v28_v24, %v36_v25  ;;  %v41_v29 = vrot.slane %v28_v24, %v40_v26 }
   0x9   :  { %261 = vmatpush1.bf16.msra.mxu0 %v260_v17 }
   0xa   :  { %269 = vmatpush3.bf16.msra.mxu1 %v266_v18 }
   0xc   :  { %233 = vmatmul.mubr.msk.f32.vlgmr.msra.gmra.mrb[0].mxu0 %vm45_vm0, %v14_v19 }
   0xd   :  { %122 = vmatprep.mubr.f32.mxu0 %v279_v3  ;;  %252 = vmatmul.mubr.msk.f32.vlgmr.msra.gmra.mrb[0].mxu1 %vm45_vm0, %v15_v20 }
  0x10   :  { %234 = vmatmul.mubr.msk.f32.gmra.mrb[2].mxu0 %vm45_vm0, %v15_v20 }
  0xdf   :  { %v118_v30 = vpop.f32.mrb[0].mxu0 }
  0xe0   :  { %v119_v31 = vadd.f32 %v118_v30, %v33_v27  ;;  %v120_v32 = vpop.f32.mrb[1].mxu0  ;;  %v253_v33 = vpop.f32.mrb[0].mxu1 }
  0xe1   :  { %v121_v34 = vadd.f32 %v120_v32, %v37_v28  ;;  %v201_v35 = vadd.f32 %v253_v33, %v41_v29  ;;  %v195_v36 = vpop.f32.mrb[1].mxu1 }
  0xe2   :  { %223 = vst [vmem:[%s366_s3] sm:$0xff] %v119_v31  ;;  %v196_v37 = vadd.f32 %v195_v36, %v41_v29 }
  0xe3   :  { %271 = vtanh.f32 %v121_v34  ;;  %v124_v38 = vpop.f32.mrb[2].mxu0 }
  0xe4   :  { %273 = vtanh.f32 %v201_v35  ;;  %v125_v39 = vadd.f32 %v124_v38, %v33_v27  ;;  %v126_v40 = vpop.f32.mrb[3].mxu0 }
  0xe5   :  { %275 = vtanh.f32 %v196_v37  ;;  %v127_v41 = vadd.f32 %v126_v40, %v37_v28 }
  0xe6   :  { %226 = vst [vmem:[%s366_s3 + $0x18] sm:$0xff] %v125_v39 }
  0xe7   :  { %277 = vtanh.f32 %v127_v41 }
  0xed   :  { %v272_v42 = vpop.eup %271 }
  0xee   :  { %v274_v43 = vpop.eup %273  ;;  %224 = vst [vmem:[%s366_s3 + $0x8] sm:$0xff] %v272_v42 }
  0xef   :  { %v276_v44 = vpop.eup %275  ;;  %228 = vst [vmem:[%s366_s3 + $0x28] sm:$0xff] %v274_v43 }
  0xf0   :  { %225 = vst [vmem:[%s366_s3 + $0x10] sm:$0xff] %v276_v44 }
  0xf1   :  { %v278_v45 = vpop.eup %277 }
  0xf2   :  { %227 = vst [vmem:[%s366_s3 + $0x20] sm:$0xff] %v278_v45 }

// kernel: dltkcat_forward.15
= control target key start
LH: loop header
LB: loop body
LE: loop exit
PB: predicated region body
PF: predicated region fallthrough
CT: control target
= control target key end

     0   :  { %v1787_v47 = vmov 1983009808   ;;  %v206_v49 = vlaneseq  ;;  %vm1789_vm0 = vmmov 0   ;;  %vm531_vm2 = vcmask 261120   ;;  %s2573_s5 = inlined_call_operand.vmem [shape: f32[1024,32], index: 5, kind: input, shape index: {}]   ;;  %s2574_s2 = inlined_call_operand.vmem [shape: f32[2,1024], index: 2, kind: input, shape index: {}]   ;;  %s2575_s6 = inlined_call_operand.vmem [shape: f32[32,32], index: 6, kind: input, shape index: {}]   ;;  %s2576_s9 = inlined_call_operand.vmem [shape: f32[128,32], index: 9, kind: input, shape index: {}]   ;;  %s2577_s1 = inlined_call_operand.vmem [shape: f32[2,128], index: 1, kind: input, shape index: {}]   ;;  %s2578_s7 = inlined_call_operand.vmem [shape: f32[128,32], index: 7, kind: input, shape index: {}]   ;;  %s2579_s12 = inlined_call_operand.vmem [shape: f32[32,98], index: 12, kind: input, shape index: {}]   ;;  %s2580_s0 = inlined_call_operand.vmem [shape: f32[2,128], index: 0, kind: input, shape index: {}]   ;;  %s2581_s3 = inlined_call_operand.vmem [shape: f32[2,1], index: 3, kind: input, shape index: {}]   ;;  %s2582_s4 = inlined_call_operand.vmem [shape: f32[2,1], index: 4, kind: input, shape index: {}]   ;;  %s2583_s11 = inlined_call_operand.vmem [shape: f32[32,98], index: 11, kind: input, shape index: {}]   ;;  %s2584_s13 = inlined_call_operand.vmem [shape: f32[32,98], index: 13, kind: input, shape index: {}]   ;;  %s2585_s8 = inlined_call_operand.vmem [shape: f32[1,32], index: 8, kind: input, shape index: {}]   ;;  %s2586_s10 = inlined_call_operand.vmem [shape: f32[1,32], index: 10, kind: input, shape index: {}]   ;;  %s2587_s17 = inlined_call_operand.vmem [shape: f32[98,98], index: 17, kind: input, shape index: {}]   ;;  %s2588_s14 = inlined_call_operand.vmem [shape: f32[1,98], index: 14, kind: input, shape index: {}]   ;;  %s2589_s15 = inlined_call_operand.vmem [shape: f32[1,98], index: 15, kind: input, shape index: {}]   ;;  %s2590_s16 = inlined_call_operand.vmem [shape: f32[1,98], index: 16, kind: input, shape index: {}]   ;;  %s2591_s20 = inlined_call_operand.<no memory space> [shape: f32[1,1], index: 20, kind: input, shape index: {}]   ;;  %s2592_s18 = inlined_call_operand.vmem [shape: f32[1,98], index: 18, kind: input, shape index: {}]   ;;  %s2593_s19 = inlined_call_operand.vmem [shape: f32[1,98], index: 19, kind: input, shape index: {}]   ;;  %s2594_s21 = inlined_call_operand.vmem [shape: f32[2,1], index: 21, kind: output, shape index: {}]  }
   0x1   :  { %2600 = sst [smem:[#allocation3_spill]] %s2573_s5  ;;  %v204_v48 = vunpack.c.l.s4 %v1787_v47  ;;  %vm1093_vm4 = vcmask 1041408   ;;  %vm1089_vm6 = vcmask 801792   ;;  %vm1178_vm8 = vcmask 795648  }
   0x2   :  { %2601 = sst [smem:[#allocation4_spill]] %s2574_s2  ;;  %s2606_s26 = sld [smem:[#allocation3_spill]]  ;;  %vm1190_vm9 = vcmask 1024  }
   0x3   :  { %2602 = sst [smem:[#allocation5_spill]] %s2575_s6  ;;  %v205_v63 = vunpack.c.0.s8 %v204_v48  ;;  %s2607_s6 = sld [smem:[#allocation4_spill]] }
   0x4   :  { %2603 = sst [smem:[#allocation6_spill]] %s2576_s9  ;;  %s2608_s23 = sld [smem:[#allocation5_spill]] }
   0x5   :  { %2604 = sst [smem:[#allocation7_spill]] %s2577_s1 }
   0x6   :  { %2605 = sst [smem:[#allocation8_spill]] %s2578_s7  ;;  %s2610_s22 = sld [smem:[#allocation7_spill]] }
   0x7   :  { %s2611_s2 = sld [smem:[#allocation8_spill]] }
   0x8   :  { %v88_v0 = vld [vmem:[%s2606_s26 + $0x80] sm:$0xff]  ;;  %v89_v1 = vld [vmem:[%s2606_s26 + $0x88] sm:$0xff]  ;;  %v90_v11 = vld [vmem:[%s2606_s26 + $0x90] sm:$0xff] }
   0x9   :  { %v120_v2 = vld [vmem:[%s2606_s26 + $0x180] sm:$0xff]  ;;  %v1561_v3 = vpack.c.bf16 %v89_v1, %v88_v0  ;;  %v121_v4 = vld [vmem:[%s2606_s26 + $0x188] sm:$0xff]  ;;  %v91_v13 = vld [vmem:[%s2606_s26 + $0x98] sm:$0xff]  ;;  %v207_v0 = vshrl.u32 %v206_v49, 7 }
   0xa   :  { %v72_v5 = vld [vmem:[%s2606_s26] sm:$0xff]  ;;  %v73_v6 = vld [vmem:[%s2606_s26 + $0x8] sm:$0xff]  ;;  %v1593_v7 = vpack.c.bf16 %v121_v4, %v120_v2  ;;  %v122_v14 = vld [vmem:[%s2606_s26 + $0x190] sm:$0xff]  ;;  %v1565_v16 = vpack.c.bf16 %v91_v13, %v90_v11 }
   0xb   :  { %v1563_v8 = vpack.c.bf16 %v73_v6, %v72_v5  ;;  %v104_v9 = vld [vmem:[%s2606_s26 + $0x100] sm:$0xff]  ;;  %v105_v10 = vld [vmem:[%s2606_s26 + $0x108] sm:$0xff]  ;;  %1562 = vmatprep.subr.bf16.mxu0 %v1561_v3  ;;  %v123_v15 = vld [vmem:[%s2606_s26 + $0x198] sm:$0xff]  ;;  %v208_v13 = vsub.s32 %v205_v63, %v207_v0 }
   0xc   :  { %v1595_v12 = vpack.c.bf16 %v105_v10, %v104_v9  ;;  %1594 = vmatprep.subr.bf16.mxu1 %v1593_v7  ;;  %v1597_v17 = vpack.c.bf16 %v123_v15, %v122_v14  ;;  %v74_v18 = vld [vmem:[%s2606_s26 + $0x10] sm:$0xff]  ;;  %v75_v19 = vld [vmem:[%s2606_s26 + $0x18] sm:$0xff]  ;;  %v92_v23 = vld [vmem:[%s2606_s26 + $0xa0] sm:$0xff] }
   0xd   :  { %1564 = vmatpush3.bf16.msra.mxu0 %v1563_v8  ;;  %v106_v20 = vld [vmem:[%s2606_s26 + $0x110] sm:$0xff]  ;;  %v1567_v21 = vpack.c.bf16 %v75_v19, %v74_v18  ;;  %v107_v22 = vld [vmem:[%s2606_s26 + $0x118] sm:$0xff]  ;;  %v93_v24 = vld [vmem:[%s2606_s26 + $0xa8] sm:$0xff] }
   0xe   :  { %1596 = vmatpush3.bf16.msra.mxu1 %v1595_v12  ;;  %1566 = vmatprep.subr.bf16.mxu0 %v1565_v16  ;;  %v1599_v25 = vpack.c.bf16 %v107_v22, %v106_v20  ;;  %v1569_v26 = vpack.c.bf16 %v93_v24, %v92_v23  ;;  %v124_v27 = vld [vmem:[%s2606_s26 + $0x1a0] sm:$0xff]  ;;  %v125_v28 = vld [vmem:[%s2606_s26 + $0x1a8] sm:$0xff]  ;;  %v94_v35 = vld [vmem:[%s2606_s26 + $0xb0] sm:$0xff] }
   0xf   :  { %1598 = vmatprep.subr.bf16.mxu1 %v1597_v17  ;;  %v76_v29 = vld [vmem:[%s2606_s26 + $0x20] sm:$0xff]  ;;  %v1601_v30 = vpack.c.bf16 %v125_v28, %v124_v27  ;;  %v77_v31 = vld [vmem:[%s2606_s26 + $0x28] sm:$0xff]  ;;  %v95_v36 = vld [vmem:[%s2606_s26 + $0xb8] sm:$0xff] }
  0x10   :  { %v108_v32 = vld [vmem:[%s2606_s26 + $0x120] sm:$0xff]  ;;  %v109_v33 = vld [vmem:[%s2606_s26 + $0x128] sm:$0xff]  ;;  %v1571_v34 = vpack.c.bf16 %v77_v31, %v76_v29  ;;  %v126_v37 = vld [vmem:[%s2606_s26 + $0x1b0] sm:$0xff]  ;;  %v1573_v39 = vpack.c.bf16 %v95_v36, %v94_v35 }
  0x11   :  { %1568 = vmatpush3.bf16.msra.mxu0 %v1567_v21  ;;  %v1603_v38 = vpack.c.bf16 %v109_v33, %v108_v32  ;;  %v127_v40 = vld [vmem:[%s2606_s26 + $0x1b8] sm:$0xff]  ;;  %v78_v41 = vld [vmem:[%s2606_s26 + $0x30] sm:$0xff]  ;;  %v96_v46 = vld [vmem:[%s2606_s26 + $0xc0] sm:$0xff] }
  0x12   :  { %1600 = vmatpush3.bf16.msra.mxu1 %v1599_v25  ;;  %1570 = vmatprep.subr.bf16.mxu0 %v1569_v26  ;;  %v79_v42 = vld [vmem:[%s2606_s26 + $0x38] sm:$0xff]  ;;  %v1605_v43 = vpack.c.bf16 %v127_v40, %v126_v37  ;;  %v110_v44 = vld [vmem:[%s2606_s26 + $0x130] sm:$0xff]  ;;  %v97_v50 = vld [vmem:[%s2606_s26 + $0xc8] sm:$0xff] }
  0x13   :  { %1602 = vmatprep.subr.bf16.mxu1 %v1601_v30  ;;  %v111_v45 = vld [vmem:[%s2606_s26 + $0x138] sm:$0xff]  ;;  %v128_v51 = vld [vmem:[%s2606_s26 + $0x1c0] sm:$0xff]  ;;  %v129_v52 = vld [vmem:[%s2606_s26 + $0x1c8] sm:$0xff]  ;;  %v1575_v53 = vpack.c.bf16 %v79_v42, %v78_v41  ;;  %v1577_v55 = vpack.c.bf16 %v97_v50, %v96_v46 }
  0x14   :  { %v1607_v54 = vpack.c.bf16 %v111_v45, %v110_v44  ;;  %v80_v56 = vld [vmem:[%s2606_s26 + $0x40] sm:$0xff]  ;;  %v81_v57 = vld [vmem:[%s2606_s26 + $0x48] sm:$0xff]  ;;  %v1609_v59 = vpack.c.bf16 %v129_v52, %v128_v51  ;;  %v98_v61 = vld [vmem:[%s2606_s26 + $0xd0] sm:$0xff] }
  0x15   :  { %1572 = vmatpush3.bf16.msra.mxu0 %v1571_v34  ;;  %v112_v58 = vld [vmem:[%s2606_s26 + $0x140] sm:$0xff]  ;;  %v113_v60 = vld [vmem:[%s2606_s26 + $0x148] sm:$0xff]  ;;  %v99_v62 = vld [vmem:[%s2606_s26 + $0xd8] sm:$0xff]  ;;  %v1579_v3 = vpack.c.bf16 %v81_v57, %v80_v56 }
  0x16   :  { %1604 = vmatpush3.bf16.msra.mxu1 %v1603_v38  ;;  %1574 = vmatprep.subr.bf16.mxu0 %v1573_v39  ;;  %v130_v1 = vld [vmem:[%s2606_s26 + $0x1d0] sm:$0xff]  ;;  %v131_v2 = vld [vmem:[%s2606_s26 + $0x1d8] sm:$0xff]  ;;  %v1611_v4 = vpack.c.bf16 %v113_v60, %v112_v58  ;;  %v1581_v5 = vpack.c.bf16 %v99_v62, %v98_v61  ;;  %v100_v11 = vld [vmem:[%s2606_s26 + $0xe0] sm:$0xff] }
  0x17   :  { %1606 = vmatprep.subr.bf16.mxu1 %v1605_v43  ;;  %v82_v6 = vld [vmem:[%s2606_s26 + $0x50] sm:$0xff]  ;;  %v83_v7 = vld [vmem:[%s2606_s26 + $0x58] sm:$0xff]  ;;  %v1613_v9 = vpack.c.bf16 %v131_v2, %v130_v1  ;;  %v101_v12 = vld [vmem:[%s2606_s26 + $0xe8] sm:$0xff] }
  0x18   :  { %v114_v8 = vld [vmem:[%s2606_s26 + $0x150] sm:$0xff]  ;;  %v115_v10 = vld [vmem:[%s2606_s26 + $0x158] sm:$0xff]  ;;  %v132_v14 = vld [vmem:[%s2606_s26 + $0x1e0] sm:$0xff]  ;;  %v1583_v16 = vpack.c.bf16 %v83_v7, %v82_v6  ;;  %v1585_v19 = vpack.c.bf16 %v101_v12, %v100_v11 }
  0x19   :  { %1576 = vmatpush3.bf16.msra.mxu0 %v1575_v53  ;;  %v133_v15 = vld [vmem:[%s2606_s26 + $0x1e8] sm:$0xff]  ;;  %v84_v17 = vld [vmem:[%s2606_s26 + $0x60] sm:$0xff]  ;;  %v1615_v18 = vpack.c.bf16 %v115_v10, %v114_v8  ;;  %v102_v25 = vld [vmem:[%s2606_s26 + $0xf0] sm:$0xff] }
  0x1a   :  { %1608 = vmatpush3.bf16.msra.mxu1 %v1607_v54  ;;  %1578 = vmatprep.subr.bf16.mxu0 %v1577_v55  ;;  %v85_v20 = vld [vmem:[%s2606_s26 + $0x68] sm:$0xff]  ;;  %v116_v21 = vld [vmem:[%s2606_s26 + $0x160] sm:$0xff]  ;;  %v1617_v23 = vpack.c.bf16 %v133_v15, %v132_v14  ;;  %v103_v26 = vld [vmem:[%s2606_s26 + $0xf8] sm:$0xff] }
  0x1b   :  { %1610 = vmatprep.subr.bf16.mxu1 %v1609_v59  ;;  %v70_v22 = vld [vmem:[%s2607_s6] sm:$0xff]  ;;  %v117_v24 = vld [vmem:[%s2606_s26 + $0x168] sm:$0xff]  ;;  %v134_v29 = vld [vmem:[%s2606_s26 + $0x1f0] sm:$0xff]  ;;  %v1587_v31 = vpack.c.bf16 %v85_v20, %v84_v17  ;;  %v1589_v36 = vpack.c.bf16 %v103_v26, %v102_v25 }
  0x1c   :  { %v209_v27 = vrot.slane %v70_v22, %v208_v13  ;;  %v202_v28 = vcombine.high %v70_v22, %v70_v22  ;;  %v135_v30 = vld [vmem:[%s2606_s26 + $0x1f8] sm:$0xff]  ;;  %v71_v32 = vld [vmem:[%s2607_s6 + $0x8] sm:$0xff]  ;;  %v1619_v35 = vpack.c.bf16 %v117_v24, %v116_v21  ;;  %v86_v37 = vld [vmem:[%s2606_s26 + $0x70] sm:$0xff]  ;;  %s2609_s6 = sld [smem:[#allocation6_spill]] }
  0x1d   :  { %1580 = vmatpush3.bf16.msra.mxu0 %v1579_v3  ;;  %v87_v38 = vld [vmem:[%s2606_s26 + $0x78] sm:$0xff]  ;;  %v118_v39 = vld [vmem:[%s2606_s26 + $0x170] sm:$0xff]  ;;  %v1621_v40 = vpack.c.bf16 %v135_v30, %v134_v29  ;;  %v152_v43 = vld [vmem:[%s2606_s26 + $0x280] sm:$0xff]  ;;  %v219_v45 = vcombine.high %v71_v32, %v71_v32  ;;  %v2130_v58 = vrot.slane %v71_v32, %v208_v13 }
  0x1e   :  { %1612 = vmatpush3.bf16.msra.mxu1 %v1611_v4  ;;  %1582 = vmatprep.subr.bf16.mxu0 %v1581_v5  ;;  %v217_v33 = vcombine.high %v209_v27, %v209_v27  ;;  %v216_v34 = vrot.slane %v202_v28, %v208_v13  ;;  %v119_v41 = vld [vmem:[%s2606_s26 + $0x178] sm:$0xff]  ;;  %v153_v44 = vld [vmem:[%s2606_s26 + $0x288] sm:$0xff]  ;;  %v184_v46 = vld [vmem:[%s2606_s26 + $0x380] sm:$0xff]  ;;  %v1591_v48 = vpack.c.bf16 %v87_v38, %v86_v37 }
  0x1f   :  { %1614 = vmatprep.subr.bf16.mxu1 %v1613_v9  ;;  %v185_v47 = vld [vmem:[%s2606_s26 + $0x388] sm:$0xff]  ;;  %v1623_v49 = vpack.c.bf16 %v119_v41, %v118_v39  ;;  %v1625_v50 = vpack.c.bf16 %v153_v44, %v152_v43  ;;  %v136_v51 = vld [vmem:[%s2606_s26 + $0x200] sm:$0xff]  ;;  %v154_v56 = vld [vmem:[%s2606_s26 + $0x290] sm:$0xff]  ;;  %v2138_v61 = vrot.slane %v219_v45, %v208_v13  ;;  %v234_v8 = vcombine.high %v2130_v58, %v2130_v58 }
  0x20   :  { %308 = vmatprep.mubr.f32.mxu0 %v217_v33  ;;  %v218_v42 = vcombine.high %v216_v34, %v216_v34  ;;  %v137_v52 = vld [vmem:[%s2606_s26 + $0x208] sm:$0xff]  ;;  %v168_v53 = vld [vmem:[%s2606_s26 + $0x300] sm:$0xff]  ;;  %v1657_v54 = vpack.c.bf16 %v185_v47, %v184_v46  ;;  %v155_v57 = vld [vmem:[%s2606_s26 + $0x298] sm:$0xff] }
  0x21   :  { %1584 = vmatpush3.bf16.msra.mxu0 %v1583_v16  ;;  %v169_v55 = vld [vmem:[%s2606_s26 + $0x308] sm:$0xff]  ;;  %v186_v59 = vld [vmem:[%s2606_s26 + $0x390] sm:$0xff]  ;;  %v187_v60 = vld [vmem:[%s2606_s26 + $0x398] sm:$0xff]  ;;  %v1627_v62 = vpack.c.bf16 %v137_v52, %v136_v51  ;;  %v1629_v0 = vpack.c.bf16 %v155_v57, %v154_v56  ;;  %v235_v11 = vcombine.high %v2138_v61, %v2138_v61 }
  0x22   :  { %1616 = vmatpush3.bf16.msra.mxu1 %v1615_v18  ;;  %1586 = vmatprep.subr.bf16.mxu0 %v1585_v19  ;;  %v1659_v63 = vpack.c.bf16 %v169_v55, %v168_v53  ;;  %v138_v1 = vld [vmem:[%s2606_s26 + $0x210] sm:$0xff]  ;;  %v139_v2 = vld [vmem:[%s2606_s26 + $0x218] sm:$0xff]  ;;  %v1661_v4 = vpack.c.bf16 %v187_v60, %v186_v59  ;;  %v156_v6 = vld [vmem:[%s2606_s26 + $0x2a0] sm:$0xff] }
  0x23   :  { %1618 = vmatprep.subr.bf16.mxu1 %v1617_v23  ;;  %378 = vmatprep.mubr.f32.mxu1 %v218_v42  ;;  %v170_v3 = vld [vmem:[%s2606_s26 + $0x310] sm:$0xff]  ;;  %v171_v5 = vld [vmem:[%s2606_s26 + $0x318] sm:$0xff]  ;;  %v157_v7 = vld [vmem:[%s2606_s26 + $0x2a8] sm:$0xff]  ;;  %v1631_v12 = vpack.c.bf16 %v139_v2, %v138_v1 }
  0x24   :  { %v188_v9 = vld [vmem:[%s2606_s26 + $0x3a0] sm:$0xff]  ;;  %v189_v10 = vld [vmem:[%s2606_s26 + $0x3a8] sm:$0xff]  ;;  %v1663_v13 = vpack.c.bf16 %v171_v5, %v170_v3  ;;  %v1633_v14 = vpack.c.bf16 %v157_v7, %v156_v6  ;;  %v158_v20 = vld [vmem:[%s2606_s26 + $0x2b0] sm:$0xff] }
  0x25   :  { %1588 = vmatpush3.bf16.msra.mxu0 %v1587_v31  ;;  %v140_v15 = vld [vmem:[%s2606_s26 + $0x220] sm:$0xff]  ;;  %v141_v16 = vld [vmem:[%s2606_s26 + $0x228] sm:$0xff]  ;;  %v1665_v18 = vpack.c.bf16 %v189_v10, %v188_v9  ;;  %v159_v21 = vld [vmem:[%s2606_s26 + $0x2b8] sm:$0xff] }
  0x26   :  { %1620 = vmatpush3.bf16.msra.mxu1 %v1619_v35  ;;  %1590 = vmatprep.subr.bf16.mxu0 %v1589_v36  ;;  %v172_v17 = vld [vmem:[%s2606_s26 + $0x320] sm:$0xff]  ;;  %v173_v19 = vld [vmem:[%s2606_s26 + $0x328] sm:$0xff]  ;;  %v190_v22 = vld [vmem:[%s2606_s26 + $0x3b0] sm:$0xff]  ;;  %v1635_v24 = vpack.c.bf16 %v141_v16, %v140_v15  ;;  %v1637_v26 = vpack.c.bf16 %v159_v21, %v158_v20 }
  0x27   :  { %1622 = vmatprep.subr.bf16.mxu1 %v1621_v40  ;;  %v191_v23 = vld [vmem:[%s2606_s26 + $0x3b8] sm:$0xff]  ;;  %v1667_v25 = vpack.c.bf16 %v173_v19, %v172_v17  ;;  %v174_v29 = vld [vmem:[%s2606_s26 + $0x330] sm:$0xff]  ;;  %v160_v32 = vld [vmem:[%s2606_s26 + $0x2c0] sm:$0xff] }
  0x28   :  { %v143_v28 = vld [vmem:[%s2606_s26 + $0x238] sm:$0xff]  ;;  %v1669_v30 = vpack.c.bf16 %v191_v23, %v190_v22  ;;  %v161_v33 = vld [vmem:[%s2606_s26 + $0x2c8] sm:$0xff]  ;;  %v144_v39 = vld [vmem:[%s2606_s26 + $0x240] sm:$0xff]  ;;  %v1788_v23 = vmov 0.0|0.0  }
  0x29   :  { %1592 = vmatpush3.bf16.msra.mxu0 %v1591_v48  ;;  %v175_v31 = vld [vmem:[%s2606_s26 + $0x338] sm:$0xff]  ;;  %v193_v35 = vld [vmem:[%s2606_s26 + $0x3c8] sm:$0xff]  ;;  %v1641_v38 = vpack.c.bf16 %v161_v33, %v160_v32  ;;  %v176_v41 = vld [vmem:[%s2606_s26 + $0x340] sm:$0xff] }
  0x2a   :  { %1624 = vmatpush3.bf16.msra.mxu1 %v1623_v49  ;;  %1626 = vmatprep.subr.bf16.mxu0 %v1625_v50  ;;  %v1671_v37 = vpack.c.bf16 %v175_v31, %v174_v29  ;;  %v145_v40 = vld [vmem:[%s2606_s26 + $0x248] sm:$0xff]  ;;  %v162_v44 = vld [vmem:[%s2606_s26 + $0x2d0] sm:$0xff]  ;;  %v163_v45 = vld [vmem:[%s2606_s26 + $0x2d8] sm:$0xff] }
  0x2b   :  { %1658 = vmatprep.subr.bf16.mxu1 %v1657_v54  ;;  %v177_v43 = vld [vmem:[%s2606_s26 + $0x348] sm:$0xff]  ;;  %v194_v46 = vld [vmem:[%s2606_s26 + $0x3d0] sm:$0xff]  ;;  %v195_v47 = vld [vmem:[%s2606_s26 + $0x3d8] sm:$0xff]  ;;  %v1643_v48 = vpack.c.bf16 %v145_v40, %v144_v39  ;;  %v1645_v50 = vpack.c.bf16 %v163_v45, %v162_v44 }
  0x2c   :  { %309 = vmatmul.mubr.f32.vlgmr.msra.gmra.mrb[0].mxu0 %v209_v27  ;;  %v142_v27 = vld [vmem:[%s2606_s26 + $0x230] sm:$0xff]  ;;  %v1675_v49 = vpack.c.bf16 %v177_v43, %v176_v41  ;;  %v147_v52 = vld [vmem:[%s2606_s26 + $0x258] sm:$0xff]  ;;  %v1677_v54 = vpack.c.bf16 %v195_v47, %v194_v46  ;;  %v164_v56 = vld [vmem:[%s2606_s26 + $0x2e0] sm:$0xff] }
  0x2d   :  { %379 = vmatmul.mubr.f32.vlgmr.msra.gmra.mrb[0].mxu1 %v216_v34  ;;  %1628 = vmatpush3.bf16.msra.mxu0 %v1627_v62  ;;  %v192_v34 = vld [vmem:[%s2606_s26 + $0x3c0] sm:$0xff]  ;;  %v1639_v36 = vpack.c.bf16 %v143_v28, %v142_v27  ;;  %v146_v51 = vld [vmem:[%s2606_s26 + $0x250] sm:$0xff]  ;;  %v179_v55 = vld [vmem:[%s2606_s26 + $0x358] sm:$0xff] }
  0x2e   :  { %1660 = vmatpush3.bf16.msra.mxu1 %v1659_v63  ;;  %1630 = vmatprep.subr.bf16.mxu0 %v1629_v0  ;;  %v1673_v42 = vpack.c.bf16 %v193_v35, %v192_v34  ;;  %v178_v53 = vld [vmem:[%s2606_s26 + $0x350] sm:$0xff]  ;;  %v165_v57 = vld [vmem:[%s2606_s26 + $0x2e8] sm:$0xff]  ;;  %v196_v59 = vld [vmem:[%s2606_s26 + $0x3e0] sm:$0xff]  ;;  %v1647_v62 = vpack.c.bf16 %v147_v52, %v146_v51 }
  0x2f   :  { %1662 = vmatprep.subr.bf16.mxu1 %v1661_v4  ;;  %448 = vmatprep.mubr.f32.mxu0 %v234_v8  ;;  %v197_v60 = vld [vmem:[%s2606_s26 + $0x3e8] sm:$0xff]  ;;  %v1679_v63 = vpack.c.bf16 %v179_v55, %v178_v53  ;;  %v1649_v0 = vpack.c.bf16 %v165_v57, %v164_v56  ;;  %v148_v1 = vld [vmem:[%s2606_s26 + $0x260] sm:$0xff]  ;;  %v166_v6 = vld [vmem:[%s2606_s26 + $0x2f0] sm:$0xff] }
  0x30   :  { %518 = vmatprep.mubr.f32.mxu1 %v235_v11  ;;  %v149_v2 = vld [vmem:[%s2606_s26 + $0x268] sm:$0xff]  ;;  %v180_v3 = vld [vmem:[%s2606_s26 + $0x360] sm:$0xff]  ;;  %v1681_v4 = vpack.c.bf16 %v197_v60, %v196_v59  ;;  %v167_v7 = vld [vmem:[%s2606_s26 + $0x2f8] sm:$0xff] }
  0x31   :  { %1632 = vmatpush3.bf16.msra.mxu0 %v1631_v12  ;;  %v181_v5 = vld [vmem:[%s2606_s26 + $0x368] sm:$0xff]  ;;  %v198_v8 = vld [vmem:[%s2606_s26 + $0x3f0] sm:$0xff]  ;;  %v199_v9 = vld [vmem:[%s2606_s26 + $0x3f8] sm:$0xff]  ;;  %v1651_v10 = vpack.c.bf16 %v149_v2, %v148_v1  ;;  %v1653_v12 = vpack.c.bf16 %v167_v7, %v166_v6 }
  0x32   :  { %1664 = vmatpush3.bf16.msra.mxu1 %v1663_v13  ;;  %1634 = vmatprep.subr.bf16.mxu0 %v1633_v14  ;;  %v1683_v11 = vpack.c.bf16 %v181_v5, %v180_v3  ;;  %v150_v13 = vld [vmem:[%s2606_s26 + $0x270] sm:$0xff]  ;;  %v151_v14 = vld [vmem:[%s2606_s26 + $0x278] sm:$0xff]  ;;  %v1685_v15 = vpack.c.bf16 %v199_v9, %v198_v8  ;;  %v527_v20 = vld [vmem:[%s2608_s23] sm:$0xff] }
  0x33   :  { %1666 = vmatprep.subr.bf16.mxu1 %v1665_v18  ;;  %v182_v16 = vld [vmem:[%s2606_s26 + $0x370] sm:$0xff]  ;;  %v183_v17 = vld [vmem:[%s2606_s26 + $0x378] sm:$0xff]  ;;  %v1655_v18 = vpack.c.bf16 %v151_v14, %v150_v13  ;;  %v528_v21 = vld [vmem:[%s2608_s23 + $0x8] sm:$0xff] }
  0x34   :  { %v1687_v19 = vpack.c.bf16 %v183_v17, %v182_v16  ;;  %v1690_v22 = vpack.c.bf16 %v528_v21, %v527_v20  ;;  %v704_v27 = vld [vmem:[%s2609_s6 + $0x8] sm:$0xff]  ;;  %v705_v29 = vld [vmem:[%s2609_s6 + $0x10] sm:$0xff]  ;;  %v707_v32 = vld [vmem:[%s2609_s6 + $0x20] sm:$0xff] }
  0x35   :  { %1636 = vmatpush3.bf16.msra.mxu0 %v1635_v24  ;;  %v708_v33 = vld [vmem:[%s2609_s6 + $0x28] sm:$0xff]  ;;  %v709_v35 = vld [vmem:[%s2609_s6 + $0x30] sm:$0xff]  ;;  %v715_v44 = vld [vmem:[%s2609_s6 + $0x60] sm:$0xff] }
  0x36   :  { %1668 = vmatpush3.bf16.msra.mxu1 %v1667_v25  ;;  %1638 = vmatprep.subr.bf16.mxu0 %v1637_v26  ;;  %v1790_v25 = vmov 0.0   ;;  %v703_v26 = vld [vmem:[%s2609_s6] sm:$0xff]  ;;  %v1726_v34 = vpack.c.bf16 %v708_v33, %v707_v32  ;;  %v712_v39 = vld [vmem:[%s2609_s6 + $0x48] sm:$0xff]  ;;  %v713_v41 = vld [vmem:[%s2609_s6 + $0x50] sm:$0xff] }
  0x37   :  { %1670 = vmatprep.subr.bf16.mxu1 %v1669_v30  ;;  %v1720_v28 = vpack.c.bf16 %v704_v27, %v703_v26  ;;  %v706_v30 = vld [vmem:[%s2609_s6 + $0x18] sm:$0xff]  ;;  %v716_v45 = vld [vmem:[%s2609_s6 + $0x68] sm:$0xff]  ;;  %v717_v47 = vld [vmem:[%s2609_s6 + $0x70] sm:$0xff] }
  0x38   :  { %v1723_v31 = vpack.c.bf16 %v706_v30, %v705_v29  ;;  %v1738_v46 = vpack.c.bf16 %v716_v45, %v715_v44  ;;  %v609_v3 = vld [vmem:[%s2611_s2] sm:$0xff]  ;;  %v611_v8 = vld [vmem:[%s2611_s2 + $0x10] sm:$0xff]  ;;  %v612_v9 = vld [vmem:[%s2611_s2 + $0x18] sm:$0xff] }
  0x39   :  { %1640 = vmatpush3.bf16.msra.mxu0 %v1639_v36  ;;  %v710_v36 = vld [vmem:[%s2609_s6 + $0x38] sm:$0xff]  ;;  %v614_v13 = vld [vmem:[%s2611_s2 + $0x28] sm:$0xff]  ;;  %v619_v21 = vld [vmem:[%s2611_s2 + $0x50] sm:$0xff] }
  0x3a   :  { %1672 = vmatpush3.bf16.msra.mxu1 %v1671_v37  ;;  %1642 = vmatprep.subr.bf16.mxu0 %v1641_v38  ;;  %v1729_v37 = vpack.c.bf16 %v710_v36, %v709_v35  ;;  %v711_v38 = vld [vmem:[%s2609_s6 + $0x40] sm:$0xff]  ;;  %v616_v16 = vld [vmem:[%s2611_s2 + $0x38] sm:$0xff]  ;;  %v623_v27 = vld [vmem:[%s2611_s2 + $0x70] sm:$0xff] }
  0x3b   :  { %1674 = vmatprep.subr.bf16.mxu1 %v1673_v42  ;;  %v1732_v40 = vpack.c.bf16 %v712_v39, %v711_v38  ;;  %v714_v42 = vld [vmem:[%s2609_s6 + $0x58] sm:$0xff]  ;;  %v800_v30 = vld [vmem:[%s2579_s12] sm:$0xff]  ;;  %v1791_v39 = vmov 0  }
  0x3c   :  { %v1735_v43 = vpack.c.bf16 %v714_v42, %v713_v41  ;;  %v608_v32 = vld [vmem:[%s2580_s0] sm:$0x3]  ;;  %v803_v35 = vld [vmem:[%s2579_s12 + $0x18] sm:$0xff]  ;;  %1784 = vset.pattern.permute.xlu0 %v1791_v39  ;;  %v26_v39 = vstv %s2591_s20 }
  0x3d   :  { %1644 = vmatpush3.bf16.msra.mxu0 %v1643_v48  ;;  %v718_v48 = vld [vmem:[%s2609_s6 + $0x78] sm:$0xff]  ;;  %v1043_v41 = vld [vmem:[%s2582_s4] sm:$0x3]  ;;  %27 = vst [vmem:[#allocation2] sm:$0x1] %v26_v39 }
  0x3e   :  { %1676 = vmatpush3.bf16.msra.mxu1 %v1675_v49  ;;  %1646 = vmatprep.subr.bf16.mxu0 %v1645_v50  ;;  %v1741_v49 = vpack.c.bf16 %v718_v48, %v717_v47  ;;  %v702_v50 = vld [vmem:[%s2610_s22] sm:$0x3]  ;;  %v798_v48 = vld [vmem:[%s2583_s11 + $0x10] sm:$0xff] }
  0x3f   :  { %1678 = vmatprep.subr.bf16.mxu1 %v1677_v54  ;;  %v796_v42 = vld [vmem:[%s2583_s11] sm:$0xff] }
  0x41   :  { %1648 = vmatpush3.bf16.msra.mxu0 %v1647_v62 }
  0x42   :  { %1680 = vmatpush3.bf16.msra.mxu1 %v1679_v63  ;;  %1650 = vmatprep.subr.bf16.mxu0 %v1649_v0 }
  0x43   :  { %1682 = vmatprep.subr.bf16.mxu1 %v1681_v4  ;;  %v610_v4 = vld [vmem:[%s2611_s2 + $0x8] sm:$0xff] }
  0x44   :  { %v1696_v7 = vpack.c.bf16 %v610_v4, %v609_v3  ;;  %v1070_v3 = vld [vmem:[%s2587_s17 + $0x8] sm:$0xff]  ;;  %v1071_v4 = vld [vmem:[%s2587_s17 + $0x10] sm:$0xff] }
  0x45   :  { %1652 = vmatpush3.bf16.msra.mxu0 %v1651_v10 }
  0x46   :  { %1684 = vmatpush3.bf16.msra.mxu1 %v1683_v11  ;;  %1654 = vmatprep.subr.bf16.mxu0 %v1653_v12  ;;  %v1699_v11 = vpack.c.bf16 %v612_v9, %v611_v8  ;;  %v613_v12 = vld [vmem:[%s2611_s2 + $0x20] sm:$0xff]  ;;  %v1074_v9 = vld [vmem:[%s2587_s17 + $0x28] sm:$0xff] }
  0x47   :  { %1686 = vmatprep.subr.bf16.mxu1 %v1685_v15  ;;  %v1702_v14 = vpack.c.bf16 %v614_v13, %v613_v12  ;;  %v615_v15 = vld [vmem:[%s2611_s2 + $0x30] sm:$0xff]  ;;  %v1073_v8 = vld [vmem:[%s2587_s17 + $0x20] sm:$0xff]  ;;  %v1076_v12 = vld [vmem:[%s2587_s17 + $0x38] sm:$0xff] }
  0x48   :  { %v1705_v17 = vpack.c.bf16 %v616_v16, %v615_v15  ;;  %v1078_v15 = vld [vmem:[%s2587_s17 + $0x48] sm:$0xff] }
  0x49   :  { %1656 = vmatpush3.bf16.msra.mxu0 %v1655_v18  ;;  %v617_v18 = vld [vmem:[%s2611_s2 + $0x40] sm:$0xff] }
  0x4a   :  { %1688 = vmatpush3.bf16.msra.mxu1 %v1687_v19  ;;  %1719 = vmatprep.subr.bf16.mxu0 %v1788_v23  ;;  %v618_v19 = vld [vmem:[%s2611_s2 + $0x48] sm:$0xff] }
  0x4b   :  { %1689 = vmatprep.subr.bf16.mxu1 %v1788_v23  ;;  %v1708_v20 = vpack.c.bf16 %v618_v19, %v617_v18  ;;  %v1080_v18 = vld [vmem:[%s2587_s17 + $0x58] sm:$0xff] }
  0x4c   :  { %449 = vmatmul.mubr.f32.vlgmr.msra.gmra.mrb[2].mxu0 %v2130_v58  ;;  %v529_v58 = vld [vmem:[%s2608_s23 + $0x10] sm:$0xff] }
  0x4d   :  { %519 = vmatmul.mubr.f32.vlgmr.msra.gmra.mrb[2].mxu1 %v2138_v61  ;;  %v530_v61 = vld [vmem:[%s2608_s23 + $0x18] sm:$0xff]  ;;  %1496 = vmatprep.mubr.msk.f32.mxu0 %vm1789_vm0, %v1790_v25 }
  0x4e   :  { %1691 = vmatpush3.bf16.msra.mxu1 %v1690_v22  ;;  %v1693_v24 = vpack.c.bf16 %v530_v61, %v529_v58  ;;  %1426 = vmatprep.mubr.msk.f32.mxu1 %vm1789_vm0, %v1790_v25  ;;  %v620_v22 = vld [vmem:[%s2611_s2 + $0x58] sm:$0xff]  ;;  %v621_v61 = vld [vmem:[%s2611_s2 + $0x60] sm:$0xff] }
  0x4f   :  { %1692 = vmatprep.subr.bf16.mxu1 %v1788_v23  ;;  %1721 = vmatpush3.bf16.msra.mxu0 %v1720_v28  ;;  %v1711_v58 = vpack.c.bf16 %v620_v22, %v619_v21  ;;  %v624_v28 = vld [vmem:[%s2611_s2 + $0x78] sm:$0xff] }
  0x50   :  { %1722 = vmatprep.subr.bf16.mxu0 %v1788_v23  ;;  %v1717_v29 = vpack.c.bf16 %v624_v28, %v623_v27 }
  0x52   :  { %1694 = vmatpush3.bf16.msra.mxu1 %v1693_v24  ;;  %v622_v24 = vld [vmem:[%s2611_s2 + $0x68] sm:$0xff] }
  0x53   :  { %1695 = vmatprep.subr.bf16.mxu1 %v1788_v23  ;;  %1724 = vmatpush3.bf16.msra.mxu0 %v1723_v31  ;;  %v1714_v26 = vpack.c.bf16 %v622_v24, %v621_v61  ;;  %v801_v31 = vld [vmem:[%s2579_s12 + $0x8] sm:$0xff] }
  0x54   :  { %1725 = vmatprep.subr.bf16.mxu0 %v1788_v23  ;;  %v1744_v33 = vpack.c.bf16 %v801_v31, %v800_v30 }
  0x57   :  { %1727 = vmatpush3.bf16.msra.mxu0 %v1726_v34  ;;  %v802_v34 = vld [vmem:[%s2579_s12 + $0x10] sm:$0xff] }
  0x58   :  { %1728 = vmatprep.subr.bf16.mxu0 %v1788_v23  ;;  %v1747_v36 = vpack.c.bf16 %v803_v35, %v802_v34  ;;  %v1204_v34 = vld [vmem:[%s2590_s16] ss:$0 sm:$0xff] }
  0x5b   :  { %1730 = vmatpush3.bf16.msra.mxu0 %v1729_v37 }
  0x5c   :  { %1731 = vmatprep.subr.bf16.mxu0 %v1788_v23 }
  0x5f   :  { %1733 = vmatpush3.bf16.msra.mxu0 %v1732_v40  ;;  %v1028_v40 = vld [vmem:[%s2581_s3] sm:$0x3] }
  0x60   :  { %1734 = vmatprep.subr.bf16.mxu0 %v1788_v23  ;;  %1032 = vperm.xlu0 %1784, %v1028_v40   ;;  %v1205_v40 = vld [vmem:[%s2592_s18] ss:$0 sm:$0xff] }
  0x63   :  { %1736 = vmatpush3.bf16.msra.mxu0 %v1735_v43  ;;  %v797_v43 = vld [vmem:[%s2583_s11 + $0x8] sm:$0xff] }
  0x64   :  { %1737 = vmatprep.subr.bf16.mxu0 %v1788_v23  ;;  %1047 = vperm.xlu0 %1784, %v1043_v41   ;;  %v1750_v47 = vpack.c.bf16 %v797_v43, %v796_v42 }
  0x67   :  { %1739 = vmatpush3.bf16.msra.mxu0 %v1738_v46 }
  0x68   :  { %1740 = vmatprep.subr.bf16.mxu0 %v1788_v23 }
  0x6b   :  { %1742 = vmatpush3.bf16.msra.mxu0 %v1741_v49  ;;  %v799_v49 = vld [vmem:[%s2583_s11 + $0x18] sm:$0xff] }
  0x6c   :  { %1761 = vmatprep.subr.bf16.mxu0 %v1788_v23 }
  0x6e   :  { %1497 = vmatmul.mubr.f32.vlgmr.msra.gmra.mrb[4].mxu0 %v702_v50 }
  0x6f   :  { %1558 = vmatprep.mubr.msk.f32.mxu0 %vm1789_vm0, %v1790_v25 }
  0xdf   :  { %v1033_v24 = vpop.permute.xlu0 %1032 }
  0xe3   :  { %v1048_v27 = vpop.permute.xlu0 %1047 }
  0xff   :  { %v1242_v51 = vpop.f32.mrb[0].mxu0 }
 0x100   :  { %v1277_v52 = vpop.f32.mrb[0].mxu1  ;;  %v1243_v53 = vpop.f32.mrb[1].mxu0 }
 0x101   :  { %v1244_v54 = vadd.f32 %v1243_v53, %v1242_v51  ;;  %v1278_v55 = vpop.f32.mrb[1].mxu1  ;;  %v1753_v51 = vpack.c.bf16 %v799_v49, %v798_v48  ;;  %v951_v53 = vld [vmem:[%s2584_s13 + $0x8] sm:$0xff]  ;;  %v1209_v49 = vld [vmem:[#allocation2] ss:$0 sm:$0xff] }
 0x102   :  { %v1279_v56 = vadd.f32 %v1278_v55, %v1277_v52  ;;  %v950_v52 = vld [vmem:[%s2584_s13] sm:$0xff] }
 0x104   :  { %v381_v57 = vadd.f32 %v1279_v56, %v1244_v54  ;;  %v1197_v54 = vld [vmem:[%s2585_s8] ss:$0 sm:$0xff]  ;;  %v1756_v56 = vpack.c.bf16 %v951_v53, %v950_v52 }
 0x11f   :  { %v1312_v59 = vpop.f32.mrb[2].mxu0 }
 0x120   :  { %v1313_v60 = vpop.f32.mrb[3].mxu0  ;;  %v1347_v62 = vpop.f32.mrb[2].mxu1 }
 0x121   :  { %v1314_v63 = vadd.f32 %v1313_v60, %v1312_v59  ;;  %v1348_v0 = vpop.f32.mrb[3].mxu1  ;;  %v952_v60 = vld [vmem:[%s2584_s13 + $0x10] sm:$0xff] }
 0x122   :  { %v1349_v1 = vadd.f32 %v1348_v0, %v1347_v62  ;;  %v953_v62 = vld [vmem:[%s2584_s13 + $0x18] sm:$0xff] }
 0x123   :  { %v451_v2 = vadd.f32 %v1314_v63, %v381_v57  ;;  %v1198_v63 = vld [vmem:[%s2586_s10] ss:$0 sm:$0xff]  ;;  %v1759_v0 = vpack.c.bf16 %v953_v62, %v952_v60 }
 0x125   :  { %v521_v5 = vadd.f32 %v1349_v1, %v451_v2  ;;  %v1069_v2 = vld [vmem:[%s2587_s17] sm:$0xff] }
 0x127   :  { %vm524_vm1 = vcmp.gt.f32.partialorder %v521_v5, 0.0  ;;  %v525_v6 = vmul.f32 0.1, %v521_v5 }
 0x129   :  { %v526_v10 = vsel %vm524_vm1, %v521_v5, %v525_v6  ;;  %v1762_v5 = vpack.c.bf16 %v1070_v3, %v1069_v2  ;;  %v1072_v6 = vld [vmem:[%s2587_s17 + $0x18] sm:$0xff] }
 0x12a   :  { %1427 = vmatmul.mubr.msk.f32.vlgmr.msra.gmra.mrb[4].mxu1 %vm531_vm2, %v526_v10  ;;  %v1768_v10 = vpack.c.bf16 %v1074_v9, %v1073_v8 }
 0x12b   :  { %1697 = vmatpush3.bf16.msra.mxu1 %v1696_v7  ;;  %1461 = vmatprep.mubr.msk.f32.mxu1 %vm1789_vm0, %v1790_v25  ;;  %v1765_v7 = vpack.c.bf16 %v1072_v6, %v1071_v4 }
 0x12c   :  { %1698 = vmatprep.subr.bf16.mxu1 %v1788_v23  ;;  %1763 = vmatpush3.bf16.msra.mxu0 %v1762_v5 }
 0x12d   :  { %1764 = vmatprep.subr.bf16.mxu0 %v1788_v23 }
 0x12f   :  { %1700 = vmatpush3.bf16.msra.mxu1 %v1699_v11  ;;  %v1075_v11 = vld [vmem:[%s2587_s17 + $0x30] sm:$0xff] }
 0x130   :  { %1701 = vmatprep.subr.bf16.mxu1 %v1788_v23  ;;  %1766 = vmatpush3.bf16.msra.mxu0 %v1765_v7  ;;  %v1771_v13 = vpack.c.bf16 %v1076_v12, %v1075_v11 }
 0x131   :  { %1767 = vmatprep.subr.bf16.mxu0 %v1788_v23 }
 0x133   :  { %1703 = vmatpush3.bf16.msra.mxu1 %v1702_v14  ;;  %v1077_v14 = vld [vmem:[%s2587_s17 + $0x40] sm:$0xff] }
 0x134   :  { %1704 = vmatprep.subr.bf16.mxu1 %v1788_v23  ;;  %1769 = vmatpush3.bf16.msra.mxu0 %v1768_v10  ;;  %v1774_v16 = vpack.c.bf16 %v1078_v15, %v1077_v14 }
 0x135   :  { %1770 = vmatprep.subr.bf16.mxu0 %v1788_v23 }
 0x137   :  { %1706 = vmatpush3.bf16.msra.mxu1 %v1705_v17  ;;  %v1079_v17 = vld [vmem:[%s2587_s17 + $0x50] sm:$0xff] }
 0x138   :  { %1707 = vmatprep.subr.bf16.mxu1 %v1788_v23  ;;  %1772 = vmatpush3.bf16.msra.mxu0 %v1771_v13  ;;  %v1777_v19 = vpack.c.bf16 %v1080_v18, %v1079_v17 }
 0x139   :  { %1773 = vmatprep.subr.bf16.mxu0 %v1788_v23 }
 0x13b   :  { %1709 = vmatpush3.bf16.msra.mxu1 %v1708_v20  ;;  %v1081_v20 = vld [vmem:[%s2587_s17 + $0x60] sm:$0x3] }
 0x13c   :  { %1710 = vmatprep.subr.bf16.mxu1 %v1788_v23  ;;  %1775 = vmatpush3.bf16.msra.mxu0 %v1774_v16 }
 0x13d   :  { %1776 = vmatprep.subr.bf16.mxu0 %v1788_v23 }
 0x13f   :  { %1712 = vmatpush3.bf16.msra.mxu1 %v1711_v58 }
 0x140   :  { %1713 = vmatprep.subr.bf16.mxu1 %v1788_v23  ;;  %1778 = vmatpush3.bf16.msra.mxu0 %v1777_v19 }
 0x141   :  { %v792_v37 = vpop.f32.mrb[4].mxu0  ;;  %1556 = vmatprep.subr.mxu0 %v1790_v25 }
 0x142   :  { %v1498_v38 = vpop.f32.mrb[5].mxu0  ;;  %v793_v1 = vadd.f32 %v1198_v63, %v792_v37 }
 0x143   :  { %1715 = vmatpush3.bf16.msra.mxu1 %v1714_v26  ;;  %v1202_v26 = vld [vmem:[%s2588_s14] ss:$0 sm:$0xff] }
 0x144   :  { %1716 = vmatprep.subr.bf16.mxu1 %v1788_v23  ;;  %1557 = vmatpush3.msk.msra.mxu0 %vm1093_vm4, %v1081_v20 }
 0x147   :  { %1718 = vmatpush3.bf16.msra.mxu1 %v1717_v29  ;;  %v1041_v29 = vmul.f32 %v1202_v26, %v1033_v24 }
 0x148   :  { %1743 = vmatprep.subr.bf16.mxu1 %v1788_v23 }
 0x14a   :  { %1462 = vmatmul.mubr.f32.vlgmr.msra.gmra.mrb[6].mxu1 %v608_v32 }
 0x14b   :  { %1745 = vmatpush3.bf16.msra.mxu1 %v1744_v33  ;;  %1507 = vmatprep.mubr.msk.f32.mxu1 %vm1789_vm0, %v1790_v25 }
 0x14c   :  { %1746 = vmatprep.subr.bf16.mxu1 %v1788_v23 }
 0x14f   :  { %1748 = vmatpush3.bf16.msra.mxu1 %v1747_v36 }
 0x150   :  { %1749 = vmatprep.subr.bf16.mxu1 %v1788_v23 }
 0x1fd   :  { %v601_v44 = vpop.f32.mrb[4].mxu1 }
 0x1fe   :  { %vm605_vm3 = vcmp.gt.f32.partialorder %v601_v44, 0.0  ;;  %v606_v45 = vmul.f32 0.1, %v601_v44  ;;  %v1428_v46 = vpop.f32.mrb[5].mxu1 }
 0x200   :  { %v607_v50 = vsel %vm605_vm3, %v601_v44, %v606_v45  ;;  %v1208_v45 = vld [vmem:[%s2593_s19] ss:$0 sm:$0xff] }
 0x201   :  { %1508 = vmatmul.mubr.msk.f32.vlgmr.msra.gmra.mrb[8].mxu1 %vm531_vm2, %v607_v50 }
 0x202   :  { %1751 = vmatpush3.bf16.msra.mxu1 %v1750_v47  ;;  %1518 = vmatprep.mubr.msk.f32.mxu1 %vm1789_vm0, %v1790_v25 }
 0x203   :  { %1752 = vmatprep.subr.bf16.mxu1 %v1788_v23 }
 0x206   :  { %1754 = vmatpush3.bf16.msra.mxu1 %v1753_v51 }
 0x207   :  { %1755 = vmatprep.subr.bf16.mxu1 %v1788_v23 }
 0x21d   :  { %v698_v55 = vpop.f32.mrb[6].mxu1 }
 0x21e   :  { %v699_v57 = vadd.f32 %v1197_v54, %v698_v55  ;;  %v1463_v59 = vpop.f32.mrb[7].mxu1 }
 0x220   :  { %1519 = vmatmul.mubr.msk.f32.vlgmr.msra.gmra.mrb[10].mxu1 %vm531_vm2, %v699_v57 }
 0x221   :  { %1757 = vmatpush3.bf16.msra.mxu1 %v1756_v56  ;;  %1529 = vmatprep.mubr.msk.f32.mxu1 %vm1789_vm0, %v1790_v25  ;;  %v1203_v25 = vld [vmem:[%s2589_s15] ss:$0 sm:$0xff] }
 0x222   :  { %1758 = vmatprep.subr.bf16.mxu1 %v1788_v23  ;;  %v1056_v32 = vmul.f32 %v1203_v25, %v1048_v27 }
 0x225   :  { %1760 = vmatpush3.bf16.msra.mxu1 %v1759_v0 }
 0x228   :  { %1530 = vmatmul.mubr.msk.f32.vlgmr.msra.gmra.mrb[12].mxu1 %vm531_vm2, %v793_v1 }
 0x2d4   :  { %v873_v21 = vpop.f32.mrb[8].mxu1 }
 0x2d5   :  { %v1509_v23 = vpop.f32.mrb[9].mxu1 }
 0x2f3   :  { %v946_v22 = vpop.f32.mrb[10].mxu1 }
 0x2f4   :  { %v947_v58 = vadd.f32 %v946_v22, %v873_v21  ;;  %v1520_v61 = vpop.f32.mrb[11].mxu1 }
 0x2fb   :  { %v1023_v28 = vpop.f32.mrb[12].mxu1 }
 0x2fc   :  { %v1027_v30 = vadd.f32 %v1023_v28, %v947_v58  ;;  %v1531_v31 = vpop.f32.mrb[13].mxu1 }
 0x2fe   :  { %v1042_v33 = vadd.f32 %v1041_v29, %v1027_v30 }
 0x300   :  { %v1057_v35 = vadd.f32 %v1056_v32, %v1042_v33 }
 0x302   :  { %v1065_v36 = vadd.f32 %v1204_v34, %v1057_v35 }
 0x304   :  { %vm1066_vm5 = vcmp.gt.f32.partialorder %v1065_v36, 0.0  ;;  %v1067_v37 = vmul.f32 0.2, %v1065_v36 }
 0x306   :  { %v1068_v38 = vsel %vm1066_vm5, %v1065_v36, %v1067_v37 }
 0x307   :  { %1559 = vmatmul.mubr.msk.f32.vlgmr.msra.gmra.mrb[6].mxu0 %vm1089_vm6, %v1068_v38 }
 0x3da   :  { %v1163_v41 = vpop.f32.mrb[6].mxu0 }
 0x3db   :  { %v1164_v42 = vadd.f32 %v1205_v40, %v1163_v41  ;;  %v1560_v43 = vpop.f32.mrb[7].mxu0 }
 0x3dd   :  { %v1168_v44 = vmul.f32 0.2, %v1164_v42  ;;  %vm1167_vm7 = vcmp.gt.f32.partialorder %v1164_v42, 0.0 }
 0x3df   :  { %v1169_v46 = vsel %vm1167_vm7, %v1164_v42, %v1168_v44 }
 0x3e0   :  { %v1177_v47 = vmul.f32 %v1208_v45, %v1169_v46 }
 0x3e2   :  { %v1179_v48 = vsel %vm1178_vm8, %v1177_v47, 0.0 }
 0x3e3   :  { %1180 = vadd.xlane.f32.xlu1 %v1179_v48 }
 0x470   :  { %v1181_v50 = vpop.xlane.xlu1 %1180 }
 0x471   :  { %v1189_v51 = vadd.f32 %v1209_v49, %v1181_v50 }
 0x473   :  { %1191 = vst.msk [vmem:[%s2594_s21] sm:$0x3] %vm1190_vm9, %v1189_v51 }

// kernel: dltkcat_forward.14
= control target key start
LH: loop header
LB: loop body
LE: loop exit
PB: predicated region body
PF: predicated region fallthrough
CT: control target
= control target key end

     0   :  { %s2917_s29 = smov 0   ;;  %s3330_s0 = inlined_call_operand.vmem [shape: f32[2,8,32], index: 0, kind: input, shape index: {}]   ;;  %s3331_s1 = inlined_call_operand.vmem [shape: f32[2,16,32], index: 1, kind: input, shape index: {}]   ;;  %s3332_s2 = inlined_call_operand.vmem [shape: f32[2,8,1], index: 2, kind: input, shape index: {}]   ;;  %s3333_s3 = inlined_call_operand.vmem [shape: f32[2,1,16], index: 3, kind: input, shape index: {}]   ;;  %s3334_s4 = inlined_call_operand.vmem [shape: f32[2,16,1], index: 4, kind: input, shape index: {}]   ;;  %s3335_s5 = inlined_call_operand.vmem [shape: f32[2,12,8,32], index: 5, kind: input, shape index: {}]   ;;  %s3336_s6 = inlined_call_operand.vmem [shape: f32[2,8,16,32], index: 6, kind: input, shape index: {}]   ;;  %s3337_s7 = inlined_call_operand.vmem [shape: f32[4,1,32], index: 7, kind: input, shape index: {}]   ;;  %s3338_s8 = inlined_call_operand.vmem [shape: f32[4,1,32], index: 8, kind: input, shape index: {}]   ;;  %s3339_s9 = inlined_call_operand.vmem [shape: f32[4,1,1], index: 9, kind: input, shape index: {}]   ;;  %s3340_s10 = inlined_call_operand.vmem [shape: f32[4,1,32], index: 10, kind: input, shape index: {}]   ;;  %s3341_s11 = inlined_call_operand.vmem [shape: f32[4,1,32], index: 11, kind: input, shape index: {}]   ;;  %s3342_s12 = inlined_call_operand.vmem [shape: f32[4,1,1], index: 12, kind: input, shape index: {}]   ;;  %s3343_s13 = inlined_call_operand.vmem [shape: f32[2,4,32], index: 13, kind: output, shape index: {0}]   ;;  %s3344_s14 = inlined_call_operand.vmem [shape: f32[2,4,32], index: 14, kind: output, shape index: {1}]  }
   0x1 LB: > { %s2512_s30 = sadd.s32 4294967295, %s2836_s29   ;;  %p2516_p0 = scmp.ge.s32.totalorder %s2836_s29, 1  ;;  %s2836_s29 = sphi %s2917_s29, %s25_s29  }
   0x2   : > { %p471_p1 = scmp.lt.s32.totalorder %s2836_s29, 3 }
   0x4   : > { %p472_p2 = pnand %p2516_p0, %p471_p1 }
   0x5   : > { %p546_p3 = scmp.lt.s32.totalorder (!%p472_p2), %s2512_s30, 1  ;;  %v2838_v0 = vmov (!%p472_p2), 0.0|0.0   ;;  %vm2839_vm0 = vmmov (!%p472_p2), 0   ;;  %v2840_v1 = vmov (!%p472_p2), 0.0   ;;  %v2841_v2 = vmov (!%p472_p2), 0  }
   0x6   : > { %475 = sbr.rel (%p472_p2) target bundleno = 992 (0x3e0), region = 72  ;;  %2737 = vmatprep.subr.bf16.mxu0 (!%p472_p2), %v2838_v0  ;;  %2665 = vmatprep.mubr.msk.f32.mxu0 (!%p472_p2), %vm2839_vm0, %v2840_v1  ;;  %vm614_vm1 = vcmask (!%p472_p2), 261120   ;;  %vm696_vm3 = vcmask (!%p472_p2), 130048   ;;  %v2565_v36 = vld [vmem:[%s3340_s10 + $0x1] ss:$0 sm:$0xff] (!%p472_p2)  ;;  %vm802_vm4 = vcmask (!%p472_p2), 64512  }
   0x7   : > { %2778 = vset.pattern.permute.xlu0 (!%p472_p2), %v2841_v2  ;;  %2741 = vmatprep.subr.bf16.mxu1 (!%p472_p2), %v2838_v0  ;;  %vm2946_vm2 = vmpackc.low (!%p472_p2), %vm614_vm1, %vm614_vm1  ;;  %v2590_v39 = vld [vmem:[%s3340_s10 + $0x2] ss:$0 sm:$0xff] (!%p472_p2)  ;;  %v2615_v43 = vld [vmem:[%s3340_s10 + $0x3] ss:$0 sm:$0xff] (!%p472_p2)  ;;  %vm956_vm5 = vcmask (!%p472_p2), 7168   ;;  %vm1021_vm6 = vcmask (!%p472_p2), 253952  }
   0x8   : > { %2672 = vmatprep.mubr.msk.f32.mxu1 (!%p472_p2), %vm2839_vm0, %v2840_v1  ;;  %v2539_v48 = vld [vmem:[%s3337_s7] ss:$0 sm:$0xff] (!%p472_p2)  ;;  %v2559_v57 = vld [vmem:[%s3337_s7 + $0x1] ss:$0 sm:$0xff] (!%p472_p2) }
   0x9   : > { %v2542_v52 = vld [vmem:[%s3340_s10] ss:$0 sm:$0xff] (!%p472_p2) }
   0xd   : > { %s3348_s30 = smov (!%p546_p3, %s2512_s30), 1 }
   0xe   : > { %s2622_s15 = sshll.u32 %s3348_s30, 4  ;;  %s2765_s19 = smul.u32 96, %s3348_s30 }
   0xf   : > { %s2940_s18 = scalar_lea.vmem %s3331_s1, %s2622_s15  ;;  %s2517_s20 = sshll.u32 %s3348_s30, 3 }
  0x10   : > { %v586_v3 = vld [vmem:[%s2940_s18] sm:$0xff]  ;;  %v587_v4 = vld [vmem:[%s2940_s18 + $0x8] sm:$0xff]  ;;  %s558_s23 = scalar_lea.vmem %s3332_s2, %s2517_s20  ;;  %s2965_s26 = scalar_lea.vmem %s3335_s5, %s2765_s19 }
  0x11   : > { %v2738_v6 = vpack.c.bf16 %v587_v4, %v586_v3  ;;  %v2957_v7 = vld [vmem:[%s558_s23] sm:$0xff]  ;;  %v2545_v9 = vld [vmem:[%s2965_s26 + $0x8] sm:$0xff]  ;;  %v2570_v10 = vld [vmem:[%s2965_s26 + $0x10] sm:$0xff]  ;;  %s2624_s27 = sshll.u32 %s3348_s30, 7  ;;  %s561_s22 = scalar_lea.vmem %s3333_s3, %s3348_s30 }
  0x12   : > { %594 = vperm.xlu0 %2778, %v2957_v7   ;;  %v604_v8 = vld [vmem:[%s2965_s26] sm:$0xff]  ;;  %v2595_v11 = vld [vmem:[%s2965_s26 + $0x18] sm:$0xff]  ;;  %s2994_s17 = scalar_lea.vmem %s3336_s6, %s2624_s27  ;;  %v2547_v56 = vld [vmem:[%s2965_s26 + $0x48] sm:$0xff]  ;;  %s566_s19 = scalar_lea.vmem %s3334_s4, %s2622_s15 }
  0x13   : > { %2740 = vmatpush3.bf16.xpose.msk.msra.mxu0 %vm2946_vm2, %v2738_v6  ;;  %v609_v12 = vld [vmem:[%s2994_s17] sm:$0xff]  ;;  %v610_v13 = vld [vmem:[%s2994_s17 + $0x8] sm:$0xff]  ;;  %v2550_v35 = vld [vmem:[%s2994_s17 + $0x50] sm:$0xff]  ;;  %v1326_v60 = vmul.f32 %v2559_v57, %v2547_v56  ;;  %s549_s24 = scalar_lea.vmem %s3330_s0, %s2517_s20  ;;  %s2526_s20 = sshll.u32 %s3348_s30, 2 }
  0x14   : > { %2744 = vmatprep.subr.bf16.mxu0 %v2838_v0  ;;  %v2742_v14 = vpack.c.bf16 %v610_v13, %v609_v12  ;;  %v2529_v15 = vld [vmem:[%s2965_s26 + $0x20] sm:$0xff]  ;;  %v1360_v37 = vmul.f32 %v2565_v36, %v2550_v35  ;;  %v2576_v38 = vld [vmem:[%s2994_s17 + $0x68] sm:$0xff]  ;;  %v2601_v42 = vld [vmem:[%s2994_s17 + $0x78] sm:$0xff]  ;;  %s3276_s27 = scalar_lea.vmem %s3343_s13, %s2526_s20  ;;  %s3305_s28 = scalar_lea.vmem %s3344_s14, %s2526_s20 }
  0x15   : > { %v2528_v18 = vld [vmem:[%s561_s22] ss:$0 sm:$0xff]  ;;  %v1799_v41 = vmul.f32 %v2590_v39, %v2576_v38  ;;  %v2237_v45 = vmul.f32 %v2615_v43, %v2601_v42  ;;  %v2532_v53 = vld [vmem:[%s2994_s17 + $0x48] sm:$0xff]  ;;  %v2551_v61 = vld [vmem:[%s2994_s17 + $0x58] sm:$0xff]  ;;  %v1327_v62 = vsel %vm614_vm1, %v1326_v60, 0.0 }
  0x16   : > { %2743 = vmatpush3.bf16.msra.mxu1 %v2742_v14  ;;  %v1362_v40 = vsel %vm614_vm1, %v1360_v37, 0.0  ;;  %v2530_v47 = vld [vmem:[%s2965_s26 + $0x40] sm:$0xff]  ;;  %v923_v55 = vmul.f32 %v2542_v52, %v2532_v53  ;;  %v1361_v63 = vmul.f32 %v2565_v36, %v2551_v61  ;;  %v2600_v5 = vld [vmem:[%s2994_s17 + $0x70] sm:$0xff] }
  0x17   : > { %2675 = vmatprep.subr.mxu1 %v2529_v15  ;;  %v1803_v44 = vsel %vm614_vm1, %v1799_v41, 0.0  ;;  %v2241_v46 = vsel %vm614_vm1, %v2237_v45, 0.0  ;;  %v891_v49 = vmul.f32 %v2539_v48, %v2530_v47  ;;  %v2531_v51 = vld [vmem:[%s2994_s17 + $0x40] sm:$0xff] }
  0x18   : > { %v922_v54 = vmul.f32 %v2542_v52, %v2531_v51  ;;  %v927_v59 = vsel %vm614_vm1, %v923_v55, 0.0  ;;  %v1365_v3 = vsel %vm614_vm1, %v1361_v63, 0.0  ;;  %v2561_v42 = vld [vmem:[%s3338_s8 + $0x1] ss:$0 sm:$0xff]  ;;  %v2541_v55 = vld [vmem:[%s3339_s9] ss:$0 sm:$0xff] }
  0x19   : > { %v892_v50 = vsel %vm614_vm1, %v891_v49, 0.0  ;;  %v2567_v45 = vld [vmem:[%s3341_s11 + $0x1] ss:$0 sm:$0xff]  ;;  %v2592_v60 = vld [vmem:[%s3341_s11 + $0x2] ss:$0 sm:$0xff] }
  0x1a   : > { %2666 = vmatmul.mubr.msk.f32.vlgmr.msra.gmra.mrb[0].mxu0 %vm614_vm1, %v604_v8  ;;  %v924_v58 = vsel %vm614_vm1, %v922_v54, 0.0  ;;  %v2236_v8 = vmul.f32 %v2615_v43, %v2600_v5 }
  0x1b   : > { %2747 = vmatpush3.bf16.xpose.msk.msra.mxu0 %vm2946_vm2, %v2738_v6  ;;  %2684 = vmatprep.mubr.msk.f32.mxu0 %vm2839_vm0, %v2840_v1 }
  0x1c   : > { %2751 = vmatprep.subr.bf16.mxu0 %v2838_v0 }
  0x22   : > { %2685 = vmatmul.mubr.msk.f32.vlgmr.msra.gmra.mrb[2].mxu0 %vm614_vm1, %v2545_v9  ;;  %v2238_v9 = vsel %vm614_vm1, %v2236_v8, 0.0 }
  0x23   : > { %2754 = vmatpush3.bf16.xpose.msk.msra.mxu0 %vm2946_vm2, %v2738_v6  ;;  %2703 = vmatprep.mubr.msk.f32.mxu0 %vm2839_vm0, %v2840_v1 }
  0x24   : > { %2758 = vmatprep.subr.bf16.mxu0 %v2838_v0 }
  0x2a   : > { %2704 = vmatmul.mubr.msk.f32.vlgmr.msra.gmra.mrb[4].mxu0 %vm614_vm1, %v2570_v10  ;;  %v2548_v10 = vld [vmem:[%s2994_s17 + $0x10] sm:$0xff] }
  0x2b   : > { %2761 = vmatpush3.bf16.xpose.msk.msra.mxu0 %vm2946_vm2, %v2738_v6  ;;  %2722 = vmatprep.mubr.msk.f32.mxu0 %vm2839_vm0, %v2840_v1 }
  0x32   : > { %2723 = vmatmul.mubr.msk.f32.vlgmr.msra.gmra.mrb[6].mxu0 %vm614_vm1, %v2595_v11  ;;  %v2549_v11 = vld [vmem:[%s2994_s17 + $0x18] sm:$0xff] }
  0x33   : > { %v2749_v13 = vpack.c.bf16 %v2549_v11, %v2548_v10 }
  0x91   : > { %v595_v19 = vpop.permute.xlu0 %594 }
  0x92   : > { %v603_v21 = vmul.f32 %v2528_v18, %v595_v19 }
  0xed   : > { %v690_v16 = vpop.f32.mrb[0].mxu0 }
  0xee   : > { %2780 = vtanh.f32 %v690_v16  ;;  %v2667_v17 = vpop.f32.mrb[1].mxu0  ;;  %v2573_v16 = vld [vmem:[%s2994_s17 + $0x20] sm:$0xff] }
  0xef   : > { %v2574_v17 = vld [vmem:[%s2994_s17 + $0x28] sm:$0xff] }
  0xf0   : > { %v2756_v19 = vpack.c.bf16 %v2574_v17, %v2573_v16  ;;  %v2584_v16 = vld [vmem:[%s3337_s7 + $0x2] ss:$0 sm:$0xff] }
  0xf5   : > { %v1126_v20 = vpop.f32.mrb[2].mxu0 }
  0xf6   : > { %2782 = vtanh.f32 %v1126_v20  ;;  %v2686_v22 = vpop.f32.mrb[3].mxu0 }
  0xf7   : > { %v2598_v22 = vld [vmem:[%s2994_s17 + $0x30] sm:$0xff] }
  0xf8   : > { %v2781_v23 = vpop.eup %2780 }
  0xf9   : > { %v695_v24 = vmul.f32 %v2781_v23, %v603_v21  ;;  %v2599_v23 = vld [vmem:[%s2994_s17 + $0x38] sm:$0xff] }
  0xfb   : > { %770 = vxpose.xlu0.b32.start.end [1/1] (short) (narrow) %v695_v24, 16  ;;  %2673 = vmatmul.mubr.msk.f32.vlgmr.msra.gmra.mrb[0].mxu1 %vm696_vm3, %v695_v24 }
  0xfc   : > { %2676 = vmatpush3.msra.mxu1 %v2529_v15  ;;  %v2546_v15 = vld [vmem:[%s2965_s26 + $0x28] sm:$0xff] }
  0xfd   : > { %v1564_v25 = vpop.f32.mrb[4].mxu0  ;;  %2748 = vmatprep.subr.bf16.mxu1 %v2838_v0 }
  0xfe   : > { %2784 = vtanh.f32 %v1564_v25  ;;  %v2705_v26 = vpop.f32.mrb[5].mxu0  ;;  %v2763_v25 = vpack.c.bf16 %v2599_v23, %v2598_v22 }
 0x100   : > { %v2783_v27 = vpop.eup %2782 }
 0x101   : > { %v3005_v28 = vmul.f32 %v2783_v27, %v603_v21  ;;  %v2596_v27 = vld [vmem:[%s2965_s26 + $0x38] sm:$0xff] }
 0x103   : > { %1205 = vxpose.xlu1.b32.start.end [1/1] (short) (narrow) %v3005_v28, 16 }
 0x105   : > { %v2002_v29 = vpop.f32.mrb[6].mxu0 }
 0x106   : > { %2786 = vtanh.f32 %v2002_v29  ;;  %v2724_v30 = vpop.f32.mrb[7].mxu0 }
 0x108   : > { %v2785_v31 = vpop.eup %2784 }
 0x109   : > { %v3008_v32 = vmul.f32 %v2785_v31, %v603_v21 }
 0x10b   : > { %1643 = vxpose.xlu1.b32.start.end [1/1] (short) (narrow) %v3008_v32, 16 }
 0x110   : > { %v2787_v33 = vpop.eup %2786 }
 0x111   : > { %v3011_v34 = vmul.f32 %v2787_v33, %v603_v21  ;;  %v2571_v21 = vld [vmem:[%s2965_s26 + $0x30] sm:$0xff] }
 0x113   : > { %2081 = vxpose.xlu1.b32.start.end [1/1] (short) (narrow) %v3011_v34, 16 }
 0x12c   : > { %1363 = vadd.xlane.f32.xlu0 %v1362_v40 }
 0x130   : > { %1804 = vadd.xlane.f32.xlu0 %v1803_v44 }
 0x131   : > { %2779 = vset.pattern.permute.xlu1 %v2841_v2  ;;  %v2575_v2 = vld [vmem:[%s2994_s17 + $0x60] sm:$0xff] }
 0x132   : > { %v1798_v4 = vmul.f32 %v2590_v39, %v2575_v2 }
 0x134   : > { %2242 = vadd.xlane.f32.xlu0 %v2241_v46  ;;  %v1800_v6 = vsel %vm614_vm1, %v1798_v4, 0.0 }
 0x13e   : > { %893 = vadd.xlane.f32.xlu1 %v892_v50 }
 0x142   : > { %925 = vadd.xlane.f32.xlu1 %v924_v58 }
 0x146   : > { %928 = vadd.xlane.f32.xlu1 %v927_v59 }
 0x14a   : > { %1328 = vadd.xlane.f32.xlu1 %v1327_v62 }
 0x14e   : > { %1366 = vadd.xlane.f32.xlu1 %v1365_v3 }
 0x152   : > { %1801 = vadd.xlane.f32.xlu1 %v1800_v6 }
 0x156   : > { %2239 = vadd.xlane.f32.xlu1 %v2238_v9 }
 0x17b   : > { %v786_v12 = vpop.trf.xlu0 }
 0x17c   : > { %2677 = vmatprep.mubr.msk.f32.mxu1 %vm802_vm4, %v786_v12 }
 0x17f   : > { %v787_v14 = vpop.trf.xlu0 }
 0x180   : > { %2678 = vmatmul.mubr.msk.f32.vlgmr.msra.gmra.mrb[2].mxu1 %vm802_vm4, %v787_v14  ;;  %v2617_v14 = vld [vmem:[%s3341_s11 + $0x3] ss:$0 sm:$0xff] }
 0x181   : > { %2750 = vmatpush3.bf16.msra.mxu1 %v2749_v13  ;;  %2691 = vmatprep.mubr.msk.f32.mxu1 %vm2839_vm0, %v2840_v1 }
 0x182   : > { %2694 = vmatprep.subr.mxu1 %v2546_v15 }
 0x183   : > { %v1221_v18 = vpop.trf.xlu1 }
 0x184   : > { %2692 = vmatmul.mubr.msk.f32.vlgmr.msra.gmra.mrb[4].mxu1 %vm696_vm3, %v3005_v28 }
 0x185   : > { %2695 = vmatpush3.msra.mxu1 %v2546_v15  ;;  %2696 = vmatprep.mubr.msk.f32.mxu1 %vm802_vm4, %v1221_v18  ;;  %v2572_v15 = vld [vmem:[%s2965_s26 + $0x50] sm:$0xff] }
 0x186   : > { %2755 = vmatprep.subr.bf16.mxu1 %v2838_v0  ;;  %v1764_v22 = vmul.f32 %v2584_v16, %v2572_v15 }
 0x187   : > { %v1222_v20 = vpop.trf.xlu1 }
 0x188   : > { %2697 = vmatmul.mubr.msk.f32.vlgmr.msra.gmra.mrb[6].mxu1 %vm802_vm4, %v1222_v20 }
 0x189   : > { %2757 = vmatpush3.bf16.msra.mxu1 %v2756_v19  ;;  %2710 = vmatprep.mubr.msk.f32.mxu1 %vm2839_vm0, %v2840_v1  ;;  %v2586_v19 = vld [vmem:[%s3338_s8 + $0x2] ss:$0 sm:$0xff] }
 0x18a   : > { %2713 = vmatprep.subr.mxu1 %v2571_v21 }
 0x18b   : > { %v1659_v24 = vpop.trf.xlu1 }
 0x18c   : > { %2711 = vmatmul.mubr.msk.f32.vlgmr.msra.gmra.mrb[8].mxu1 %vm696_vm3, %v3008_v32 }
 0x18d   : > { %2714 = vmatpush3.msra.mxu1 %v2571_v21  ;;  %2715 = vmatprep.mubr.msk.f32.mxu1 %vm802_vm4, %v1659_v24 }
 0x18e   : > { %2762 = vmatprep.subr.bf16.mxu1 %v2838_v0  ;;  %v2540_v0 = vld [vmem:[%s3338_s8] ss:$0 sm:$0xff] }
 0x18f   : > { %v1660_v26 = vpop.trf.xlu1 }
 0x190   : > { %2716 = vmatmul.mubr.msk.f32.vlgmr.msra.gmra.mrb[10].mxu1 %vm802_vm4, %v1660_v26  ;;  %v2609_v26 = vld [vmem:[%s3337_s7 + $0x3] ss:$0 sm:$0xff] }
 0x191   : > { %2764 = vmatpush3.bf16.msra.mxu1 %v2763_v25  ;;  %2729 = vmatprep.mubr.msk.f32.mxu1 %vm2839_vm0, %v2840_v1  ;;  %v2597_v25 = vld [vmem:[%s2965_s26 + $0x58] sm:$0xff] }
 0x192   : > { %2732 = vmatprep.subr.mxu1 %v2596_v27 }
 0x193   : > { %v2097_v28 = vpop.trf.xlu1 }
 0x194   : > { %2730 = vmatmul.mubr.msk.f32.vlgmr.msra.gmra.mrb[12].mxu1 %vm696_vm3, %v3011_v34  ;;  %v2543_v34 = vld [vmem:[%s3341_s11] ss:$0 sm:$0xff] }
 0x195   : > { %2733 = vmatpush3.msra.mxu1 %v2596_v27  ;;  %2734 = vmatprep.mubr.msk.f32.mxu1 %vm802_vm4, %v2097_v28 }
 0x197   : > { %v2098_v29 = vpop.trf.xlu1 }
 0x198   : > { %2735 = vmatmul.mubr.msk.f32.vlgmr.msra.gmra.mrb[14].mxu1 %vm802_vm4, %v2098_v29 }
 0x1b9   : > { %v3088_v33 = vpop.xlane.xlu0 %1363 }
 0x1bd   : > { %v3093_v36 = vpop.xlane.xlu0 %1804 }
 0x1c1   : > { %v3099_v44 = vpop.xlane.xlu0 %2242 }
 0x1cb   : > { %v894_v51 = vpop.xlane.xlu1 %893 }
 0x1ce   : > { %v766_v30 = vpop.f32.mrb[0].mxu1 }
 0x1cf   : > { %v902_v31 = vmul.f32 %v2540_v0, %v766_v30  ;;  %v2674_v32 = vpop.f32.mrb[1].mxu1  ;;  %v2611_v30 = vld [vmem:[%s3338_s8 + $0x3] ss:$0 sm:$0xff] }
 0x1d0   : > { %v2202_v32 = vmul.f32 %v2609_v26, %v2597_v25  ;;  %v2594_v25 = vld [vmem:[%s3342_s12 + $0x2] ss:$0 sm:$0xff] }
 0x1d1   : > { %v903_v1 = vsel %vm614_vm1, %v902_v31, 0.0  ;;  %v1765_v31 = vsel %vm614_vm1, %v1764_v22, 0.0 }
 0x1d2   : > { %904 = vadd.xlane.f32.xlu0 %v903_v1 }
 0x253   : > { %v2679_v35 = vpop.f32.mrb[2].mxu1 }
 0x254   : > { %v938_v37 = vmul.f32 %v2679_v35, %v2543_v34  ;;  %v875_v38 = vpop.f32.mrb[3].mxu1 }
 0x255   : > { %v937_v39 = vmul.f32 %v2543_v34, %v875_v38  ;;  %v2203_v38 = vsel %vm614_vm1, %v2202_v32, 0.0 }
 0x256   : > { %v942_v40 = vsel %vm614_vm1, %v938_v37, 0.0 }
 0x257   : > { %943 = vadd.xlane.f32.xlu1 %v942_v40  ;;  %v1201_v41 = vpop.f32.mrb[4].mxu1  ;;  %v939_v47 = vsel %vm614_vm1, %v937_v39, 0.0 }
 0x258   : > { %v2693_v43 = vpop.f32.mrb[5].mxu1  ;;  %v1338_v46 = vmul.f32 %v2561_v42, %v1201_v41 }
 0x25a   : > { %v1339_v54 = vsel %vm614_vm1, %v1338_v46, 0.0 }
 0x25b   : > { %v2698_v48 = vpop.f32.mrb[6].mxu1  ;;  %940 = vadd.xlane.f32.xlu1 %v939_v47 }
 0x25c   : > { %v1377_v49 = vmul.f32 %v2698_v48, %v2567_v45  ;;  %v1309_v50 = vpop.f32.mrb[7].mxu1 }
 0x25d   : > { %v1376_v52 = vmul.f32 %v2567_v45, %v1309_v50 }
 0x25e   : > { %v1381_v53 = vsel %vm614_vm1, %v1377_v49, 0.0 }
 0x25f   : > { %v905_v56 = vpop.xlane.xlu0 %904  ;;  %1382 = vadd.xlane.f32.xlu0 %v1381_v53  ;;  %v1639_v57 = vpop.f32.mrb[8].mxu1  ;;  %1340 = vadd.xlane.f32.xlu1 %v1339_v54  ;;  %v1378_v62 = vsel %vm614_vm1, %v1376_v52, 0.0 }
 0x260   : > { %v906_v58 = vadd.f32 %v905_v56, %v894_v51  ;;  %v2712_v59 = vpop.f32.mrb[9].mxu1  ;;  %v1776_v29 = vmul.f32 %v2586_v19, %v1639_v57  ;;  %v926_v53 = vpop.xlane.xlu1 %925 }
 0x262   : > { %v914_v61 = vadd.f32 %v2541_v55, %v906_v58  ;;  %v1777_v37 = vsel %vm614_vm1, %v1776_v29, 0.0 }
 0x263   : > { %v2717_v63 = vpop.f32.mrb[10].mxu1  ;;  %1379 = vadd.xlane.f32.xlu1 %v1378_v62 }
 0x264   : > { %v957_v2 = vsel %vm956_vm5, %v914_v61, -inf  ;;  %v1815_v3 = vmul.f32 %v2717_v63, %v2592_v60  ;;  %v1747_v4 = vpop.f32.mrb[11].mxu1  ;;  %v929_v54 = vpop.xlane.xlu1 %928 }
 0x265   : > { %v958_v5 = vrot.slane %v957_v2, 4  ;;  %v1814_v6 = vmul.f32 %v2592_v60, %v1747_v4 }
 0x266   : > { %v1819_v8 = vsel %vm614_vm1, %v1815_v3, 0.0 }
 0x267   : > { %v959_v9 = vmax.f32 %v957_v2, %v958_v5  ;;  %1820 = vadd.xlane.f32.xlu0 %v1819_v8  ;;  %v2077_v10 = vpop.f32.mrb[12].mxu1  ;;  %v1816_v11 = vsel %vm614_vm1, %v1814_v6, 0.0  ;;  %v2563_v5 = vld [vmem:[%s3339_s9 + $0x1] ss:$0 sm:$0xff] }
 0x268   : > { %v2731_v12 = vpop.f32.mrb[13].mxu1  ;;  %1817 = vadd.xlane.f32.xlu1 %v1816_v11  ;;  %v2214_v35 = vmul.f32 %v2611_v30, %v2077_v10  ;;  %v1329_v55 = vpop.xlane.xlu1 %1328 }
 0x269   : > { %v960_v13 = vrot.slane %v959_v9, 2 }
 0x26a   : > { %v2215_v39 = vsel %vm614_vm1, %v2214_v35, 0.0 }
 0x26b   : > { %v961_v17 = vmax.f32 %v959_v9, %v960_v13  ;;  %v2736_v18 = vpop.f32.mrb[14].mxu1  ;;  %v2569_v13 = vld [vmem:[%s3342_s12 + $0x1] ss:$0 sm:$0xff] }
 0x26c   : > { %v2253_v20 = vmul.f32 %v2736_v18, %v2617_v14  ;;  %v2185_v21 = vpop.f32.mrb[15].mxu1  ;;  %v1367_v56 = vpop.xlane.xlu1 %1366 }
 0x26d   : > { %v962_v23 = vrot.slane %v961_v17, 1  ;;  %v2252_v24 = vmul.f32 %v2617_v14, %v2185_v21 }
 0x26e   : > { %v2257_v27 = vsel %vm614_vm1, %v2253_v20, 0.0 }
 0x26f   : > { %v963_v28 = vmax.f32 %v961_v17, %v962_v23  ;;  %2258 = vadd.xlane.f32.xlu0 %v2257_v27  ;;  %v2254_v0 = vsel %vm614_vm1, %v2252_v24, 0.0 }
 0x270   : > { %2255 = vadd.xlane.f32.xlu1 %v2254_v0  ;;  %v1802_v57 = vpop.xlane.xlu1 %1801 }
 0x271   : > { %v964_v1 = vsub.f32 %v914_v61, %v963_v28  ;;  %v2544_v61 = vld [vmem:[%s3342_s12] ss:$0 sm:$0xff] }
 0x273   : > { %v965_v34 = vmul.f32 1.442695, %v964_v1  ;;  %1766 = vadd.xlane.f32.xlu0 %v1765_v31 }
 0x274   : > { %1778 = vadd.xlane.f32.xlu1 %v1777_v37  ;;  %v3142_v58 = vpop.xlane.xlu1 %2239 }
 0x275   : > { %2788 = vpow2.f32 %v965_v34 }
 0x277   : > { %2204 = vadd.xlane.f32.xlu0 %v2203_v38 }
 0x278   : > { %2216 = vadd.xlane.f32.xlu1 %v2215_v39 }
 0x27f   : > { %v2789_v40 = vpop.eup %2788 }
 0x280   : > { %v967_v41 = vmul.f32 %v2789_v40, %v2957_v7 }
 0x282   : > { %v968_v42 = vsel %vm956_vm5, %v967_v41, 0.0 }
 0x283   : > { %v969_v43 = vrot.slane %v968_v42, 4 }
 0x285   : > { %v970_v45 = vadd.f32 %v969_v43, %v968_v42 }
 0x287   : > { %v971_v46 = vrot.slane %v970_v45, 2 }
 0x289   : > { %v972_v47 = vadd.f32 %v971_v46, %v970_v45 }
 0x28b   : > { %v973_v48 = vrot.slane %v972_v47, 1 }
 0x28d   : > { %v974_v49 = vadd.f32 %v973_v48, %v972_v47 }
 0x28f   : > { %v975_v50 = vadd.f32 1e-06, %v974_v49  ;;  %v2619_v49 = vld [vmem:[%s3342_s12 + $0x3] ss:$0 sm:$0xff] }
 0x291   : > { %2790 = vrcp.f32 %v975_v50 }
 0x29b   : > { %v2791_v51 = vpop.eup %2790 }
 0x29c   : > { %v977_v52 = vmul.f32 %v2791_v51, %v967_v41 }
 0x29e   : > { %1010 = vperm.xlu1 %2779, %v977_v52  }
 0x2e4   : > { %v944_v59 = vpop.xlane.xlu1 %943 }
 0x2e5   : > { %v946_v60 = vadd.f32 %v944_v59, %v929_v54 }
 0x2e7   : > { %v955_v63 = vadd.f32 %v2544_v61, %v946_v60 }
 0x2e8   : > { %v941_v62 = vpop.xlane.xlu1 %940 }
 0x2e9   : > { %v945_v2 = vadd.f32 %v941_v62, %v926_v53  ;;  %v979_v8 = vsel %vm956_vm5, %v955_v63, -inf }
 0x2eb   : > { %v954_v3 = vadd.f32 %v2544_v61, %v945_v2 }
 0x2ec   : > { %v1383_v4 = vpop.xlane.xlu0 %1382  ;;  %v1341_v6 = vpop.xlane.xlu1 %1340 }
 0x2ed   : > { %v978_v9 = vsel %vm956_vm5, %v954_v3, -inf  ;;  %v1385_v10 = vadd.f32 %v1383_v4, %v1367_v56  ;;  %v1342_v11 = vadd.f32 %v1341_v6, %v1329_v55 }
 0x2ee   : > { %v980_v12 = vmax.f32 %v978_v9, %v979_v8 }
 0x2ef   : > { %v1351_v14 = vadd.f32 %v2563_v5, %v1342_v11  ;;  %v3155_v17 = vadd.f32 %v2569_v13, %v1385_v10  ;;  %v2588_v5 = vld [vmem:[%s3339_s9 + $0x2] ss:$0 sm:$0xff] }
 0x2f0   : > { %v981_v15 = vrot.slane %v980_v12, 4  ;;  %v1380_v16 = vpop.xlane.xlu1 %1379 }
 0x2f1   : > { %v1396_v18 = vsel %vm956_vm5, %v1351_v14, -inf  ;;  %v1384_v19 = vadd.f32 %v1380_v16, %v3088_v33  ;;  %v1418_v27 = vsel %vm956_vm5, %v3155_v17, -inf }
 0x2f2   : > { %v982_v20 = vmax.f32 %v980_v12, %v981_v15  ;;  %v1397_v21 = vrot.slane %v1396_v18, 4 }
 0x2f3   : > { %v3159_v22 = vadd.f32 %v2569_v13, %v1384_v19 }
 0x2f4   : > { %v983_v23 = vrot.slane %v982_v20, 2  ;;  %v1398_v24 = vmax.f32 %v1396_v18, %v1397_v21  ;;  %v1821_v26 = vpop.xlane.xlu0 %1820 }
 0x2f5   : > { %v1417_v28 = vsel %vm956_vm5, %v3159_v22, -inf  ;;  %v1823_v29 = vadd.f32 %v1821_v26, %v3093_v36  ;;  %v1818_v33 = vpop.xlane.xlu1 %1817 }
 0x2f6   : > { %v984_v0 = vmax.f32 %v982_v20, %v983_v23  ;;  %v1399_v30 = vrot.slane %v1398_v24, 2  ;;  %v1419_v31 = vmax.f32 %v1417_v28, %v1418_v27  ;;  %v1822_v32 = vadd.f32 %v1818_v33, %v1802_v57  ;;  %v3204_v27 = vld [vmem:[%s566_s19] sm:$0xff] }
 0x2f7   : > { %v3169_v1 = vadd.f32 %v2594_v25, %v1823_v29 }
 0x2f8   : > { %v985_v34 = vrot.slane %v984_v0, 1  ;;  %v1400_v35 = vmax.f32 %v1398_v24, %v1399_v30  ;;  %v1420_v37 = vrot.slane %v1419_v31, 4  ;;  %v3171_v38 = vadd.f32 %v2594_v25, %v1822_v32 }
 0x2f9   : > { %v1856_v39 = vsel %vm956_vm5, %v3169_v1, -inf }
 0x2fa   : > { %v986_v40 = vmax.f32 %v984_v0, %v985_v34  ;;  %v1401_v41 = vrot.slane %v1400_v35, 1  ;;  %v1421_v42 = vmax.f32 %v1419_v31, %v1420_v37  ;;  %v1855_v36 = vsel %vm956_vm5, %v3171_v38, -inf  ;;  %v3208_v0 = vld [vmem:[%s566_s19 + $0x8] sm:$0xff] }
 0x2fb   : > { %v1857_v43 = vmax.f32 %v1855_v36, %v1856_v39 }
 0x2fc   : > { %v987_v45 = vsub.f32 %v954_v3, %v986_v40  ;;  %v988_v46 = vsub.f32 %v955_v63, %v986_v40  ;;  %v1402_v47 = vmax.f32 %v1400_v35, %v1401_v41  ;;  %v1422_v48 = vrot.slane %v1421_v42, 2  ;;  %v2259_v50 = vpop.xlane.xlu0 %2258 }
 0x2fd   : > { %v1858_v51 = vrot.slane %v1857_v43, 4  ;;  %v2261_v52 = vadd.f32 %v2259_v50, %v3099_v44  ;;  %v2256_v53 = vpop.xlane.xlu1 %2255 }
 0x2fe   : > { %v989_v54 = vmul.f32 1.442695, %v987_v45  ;;  %v991_v55 = vmul.f32 1.442695, %v988_v46  ;;  %v1403_v56 = vsub.f32 %v1351_v14, %v1402_v47  ;;  %v1423_v57 = vmax.f32 %v1421_v42, %v1422_v48 }
 0x2ff   : > { %v1859_v59 = vmax.f32 %v1857_v43, %v1858_v51  ;;  %v3181_v60 = vadd.f32 %v2619_v49, %v2261_v52  ;;  %v2260_v61 = vadd.f32 %v2256_v53, %v3142_v58 }
 0x300   : > { %2792 = vpow2.f32 %v989_v54  ;;  %v1404_v62 = vmul.f32 1.442695, %v1403_v56  ;;  %v1424_v63 = vrot.slane %v1423_v57, 1  ;;  %v1767_v2 = vpop.xlane.xlu0 %1766 }
 0x301   : > { %2794 = vpow2.f32 %v991_v55  ;;  %v1860_v3 = vrot.slane %v1859_v59, 2  ;;  %v2294_v4 = vsel %vm956_vm5, %v3181_v60, -inf  ;;  %v3186_v44 = vadd.f32 %v2619_v49, %v2260_v61  ;;  %v1779_v6 = vpop.xlane.xlu1 %1778 }
 0x302   : > { %2796 = vpow2.f32 %v1404_v62  ;;  %v1425_v8 = vmax.f32 %v1423_v57, %v1424_v63  ;;  %v1780_v58 = vadd.f32 %v1779_v6, %v1767_v2 }
 0x303   : > { %v1861_v9 = vmax.f32 %v1859_v59, %v1860_v3  ;;  %v2293_v10 = vsel %vm956_vm5, %v3186_v44, -inf }
 0x304   : > { %v1426_v11 = vsub.f32 %v3159_v22, %v1425_v8  ;;  %v1427_v12 = vsub.f32 %v3155_v17, %v1425_v8  ;;  %v2295_v13 = vmax.f32 %v2293_v10, %v2294_v4  ;;  %v1789_v14 = vadd.f32 %v2588_v5, %v1780_v58  ;;  %v2205_v15 = vpop.xlane.xlu0 %2204  ;;  %v2613_v17 = vld [vmem:[%s3339_s9 + $0x3] ss:$0 sm:$0xff] }
 0x305   : > { %v1862_v16 = vrot.slane %v1861_v9, 1  ;;  %v2217_v18 = vpop.xlane.xlu1 %2216 }
 0x306   : > { %v1428_v19 = vmul.f32 1.442695, %v1426_v11  ;;  %v1430_v20 = vmul.f32 1.442695, %v1427_v12  ;;  %v2296_v21 = vrot.slane %v2295_v13, 4  ;;  %v1834_v23 = vsel %vm956_vm5, %v1789_v14, -inf }
 0x307   : > { %v1863_v24 = vmax.f32 %v1861_v9, %v1862_v16  ;;  %v1835_v25 = vrot.slane %v1834_v23, 4  ;;  %v2218_v22 = vadd.f32 %v2217_v18, %v2205_v15 }
 0x308   : > { %2798 = vpow2.f32 %v1428_v19  ;;  %v2297_v26 = vmax.f32 %v2295_v13, %v2296_v21 }
 0x309   : > { %2800 = vpow2.f32 %v1430_v20  ;;  %v1864_v28 = vsub.f32 %v3171_v38, %v1863_v24  ;;  %v1865_v29 = vsub.f32 %v3169_v1, %v1863_v24  ;;  %v1836_v33 = vmax.f32 %v1834_v23, %v1835_v25 }
 0x30a   : > { %v2793_v30 = vpop.eup %2792  ;;  %v2298_v31 = vrot.slane %v2297_v26, 2  ;;  %v2227_v32 = vadd.f32 %v2613_v17, %v2218_v22 }
 0x30b   : > { %v2795_v34 = vpop.eup %2794  ;;  %v1866_v35 = vmul.f32 1.442695, %v1864_v28  ;;  %v1868_v37 = vmul.f32 1.442695, %v1865_v29  ;;  %v1837_v39 = vrot.slane %v1836_v33, 2  ;;  %v3211_v40 = vmul.f32 %v2793_v30, %v3204_v27  ;;  %v3251_v29 = vld [vmem:[%s549_s24] sm:$0xff] }
 0x30c   : > { %v2797_v41 = vpop.eup %2796  ;;  %v2299_v42 = vmax.f32 %v2297_v26, %v2298_v31  ;;  %v2272_v36 = vsel %vm956_vm5, %v2227_v32, -inf  ;;  %v3215_v38 = vmul.f32 %v2795_v34, %v3208_v0 }
 0x30d   : > { %2802 = vpow2.f32 %v1866_v35  ;;  %v1838_v1 = vmax.f32 %v1836_v33, %v1837_v39  ;;  %v2273_v43 = vrot.slane %v2272_v36, 4  ;;  %v995_v45 = vsel %vm956_vm5, %v3211_v40, 0.0 }
 0x30e   : > { %2804 = vpow2.f32 %v1868_v37  ;;  %v2300_v46 = vrot.slane %v2299_v42, 1  ;;  %v996_v47 = vsel %vm956_vm5, %v3215_v38, 0.0  ;;  %v3222_v48 = vmul.f32 %v2797_v41, %v2957_v7 }
 0x30f   : > { %v1839_v49 = vrot.slane %v1838_v1, 1  ;;  %v2274_v50 = vmax.f32 %v2272_v36, %v2273_v43  ;;  %v997_v51 = vadd.f32 %v996_v47, %v995_v45 }
 0x310   : > { %v2301_v52 = vmax.f32 %v2299_v42, %v2300_v46  ;;  %v1407_v53 = vsel %vm956_vm5, %v3222_v48, 0.0 }
 0x311   : > { %v1840_v54 = vmax.f32 %v1838_v1, %v1839_v49  ;;  %v2275_v55 = vrot.slane %v2274_v50, 2  ;;  %v998_v56 = vrot.slane %v997_v51, 4  ;;  %v1408_v57 = vrot.slane %v1407_v53, 4 }
 0x312   : > { %v2799_v59 = vpop.eup %2798  ;;  %v2302_v61 = vsub.f32 %v3186_v44, %v2301_v52  ;;  %v2303_v62 = vsub.f32 %v3181_v60, %v2301_v52 }
 0x313   : > { %v2801_v63 = vpop.eup %2800  ;;  %v1841_v2 = vsub.f32 %v1789_v14, %v1840_v54  ;;  %v2276_v3 = vmax.f32 %v2274_v50, %v2275_v55  ;;  %v999_v4 = vadd.f32 %v998_v56, %v997_v51  ;;  %v1409_v5 = vadd.f32 %v1408_v57, %v1407_v53 }
 0x314   : > { %v2304_v6 = vmul.f32 1.442695, %v2302_v61  ;;  %v2306_v8 = vmul.f32 1.442695, %v2303_v62  ;;  %v3229_v58 = vmul.f32 %v2799_v59, %v3204_v27  ;;  %v3232_v9 = vmul.f32 %v2801_v63, %v3208_v0 }
 0x315   : > { %v1842_v10 = vmul.f32 1.442695, %v1841_v2  ;;  %v2277_v11 = vrot.slane %v2276_v3, 1  ;;  %v1000_v12 = vrot.slane %v999_v4, 2  ;;  %v1410_v44 = vrot.slane %v1409_v5, 2 }
 0x316   : > { %2806 = vpow2.f32 %v2304_v6  ;;  %v1434_v60 = vsel %vm956_vm5, %v3229_v58, 0.0  ;;  %v1435_v13 = vsel %vm956_vm5, %v3232_v9, 0.0 }
 0x317   : > { %v2803_v14 = vpop.eup %2802  ;;  %2808 = vpow2.f32 %v2306_v8  ;;  %v2278_v15 = vmax.f32 %v2276_v3, %v2277_v11  ;;  %v1001_v16 = vadd.f32 %v1000_v12, %v999_v4  ;;  %v1411_v18 = vadd.f32 %v1410_v44, %v1409_v5 }
 0x318   : > { %v2805_v19 = vpop.eup %2804  ;;  %2810 = vpow2.f32 %v1842_v10  ;;  %v1436_v20 = vadd.f32 %v1435_v13, %v1434_v60  ;;  %v3244_v21 = vmul.f32 %v2803_v14, %v3204_v27 }
 0x319   : > { %v2279_v23 = vsub.f32 %v2227_v32, %v2278_v15  ;;  %v1002_v24 = vrot.slane %v1001_v16, 1  ;;  %v1412_v25 = vrot.slane %v1411_v18, 1  ;;  %v3247_v17 = vmul.f32 %v2805_v19, %v3208_v0 }
 0x31a   : > { %v1437_v22 = vrot.slane %v1436_v20, 4  ;;  %v1872_v26 = vsel %vm956_vm5, %v3244_v21, 0.0 }
 0x31b   : > { %v2280_v28 = vmul.f32 1.442695, %v2279_v23  ;;  %v1003_v33 = vadd.f32 %v1002_v24, %v1001_v16  ;;  %v1413_v30 = vadd.f32 %v1412_v25, %v1411_v18  ;;  %v1873_v31 = vsel %vm956_vm5, %v3247_v17, 0.0 }
 0x31c   : > { %v1438_v34 = vadd.f32 %v1437_v22, %v1436_v20  ;;  %v1874_v35 = vadd.f32 %v1873_v31, %v1872_v26 }
 0x31d   : > { %2812 = vpow2.f32 %v2280_v28  ;;  %v1011_v32 = vpop.permute.xlu1 %1010  ;;  %v1004_v37 = vadd.f32 1e-06, %v1003_v33  ;;  %v1414_v39 = vadd.f32 1e-06, %v1413_v30 }
 0x31e   : > { %v1013_v41 = vmul.f32 %v1011_v32, %v3251_v29  ;;  %v1439_v42 = vrot.slane %v1438_v34, 2  ;;  %v1875_v36 = vrot.slane %v1874_v35, 4 }
 0x31f   : > { %2814 = vrcp.f32 %v1004_v37 }
 0x320   : > { %v2807_v1 = vpop.eup %2806  ;;  %v1014_v43 = vsel %vm614_vm1, %v1013_v41, 0.0  ;;  %2816 = vrcp.f32 %v1414_v39  ;;  %v1440_v45 = vadd.f32 %v1439_v42, %v1438_v34  ;;  %v1876_v46 = vadd.f32 %v1875_v36, %v1874_v35 }
 0x321   : > { %v2809_v47 = vpop.eup %2808  ;;  %v1015_v49 = vrot.slane %v1014_v43, 4  ;;  %v3258_v50 = vmul.f32 %v2807_v1, %v3204_v27 }
 0x322   : > { %v2811_v51 = vpop.eup %2810  ;;  %v1441_v52 = vrot.slane %v1440_v45, 1  ;;  %v1877_v53 = vrot.slane %v1876_v46, 2  ;;  %v3261_v54 = vmul.f32 %v2809_v47, %v3208_v0 }
 0x323   : > { %v1016_v55 = vadd.f32 %v1015_v49, %v1014_v43  ;;  %v1844_v56 = vmul.f32 %v2811_v51, %v2957_v7  ;;  %v2310_v57 = vsel %vm956_vm5, %v3258_v50, 0.0 }
 0x324   : > { %v1442_v59 = vadd.f32 %v1441_v52, %v1440_v45  ;;  %v2311_v61 = vsel %vm956_vm5, %v3261_v54, 0.0  ;;  %v1878_v4 = vadd.f32 %v1877_v53, %v1876_v46 }
 0x325   : > { %v1017_v62 = vrot.slane %v1016_v55, 2  ;;  %v1845_v27 = vsel %vm956_vm5, %v1844_v56, 0.0  ;;  %v2312_v63 = vadd.f32 %v2311_v61, %v2310_v57  ;;  %v2828_v57 = vld [vmem:[%s2940_s18 + $0x8] sm:$0xff] }
 0x326   : > { %v1443_v2 = vadd.f32 1e-06, %v1442_v59  ;;  %v1846_v3 = vrot.slane %v1845_v27, 4  ;;  %v1879_v15 = vrot.slane %v1878_v4, 1 }
 0x327   : > { %v2813_v0 = vpop.eup %2812  ;;  %v1018_v5 = vadd.f32 %v1017_v62, %v1016_v55  ;;  %v2313_v6 = vrot.slane %v2312_v63, 4 }
 0x328   : > { %2818 = vrcp.f32 %v1443_v2  ;;  %v1847_v8 = vadd.f32 %v1846_v3, %v1845_v27  ;;  %v2282_v10 = vmul.f32 %v2813_v0, %v2957_v7  ;;  %v1880_v22 = vadd.f32 %v1879_v15, %v1878_v4  ;;  %v2829_v27 = vld [vmem:[%s2940_s18] sm:$0xff] }
 0x329   : > { %v2815_v11 = vpop.eup %2814  ;;  %v1019_v12 = vrot.slane %v1018_v5, 1  ;;  %v2314_v44 = vadd.f32 %v2313_v6, %v2312_v63 }
 0x32a   : > { %v2817_v60 = vpop.eup %2816  ;;  %v1007_v13 = vmul.f32 %v2815_v11, %v3215_v38  ;;  %v1848_v14 = vrot.slane %v1847_v8, 2  ;;  %v2283_v7 = vsel %vm956_vm5, %v2282_v10, 0.0  ;;  %v1006_v38 = vmul.f32 %v2815_v11, %v3211_v40 }
 0x32b   : > { %v1020_v16 = vadd.f32 %v1019_v12, %v1018_v5  ;;  %v1416_v18 = vmul.f32 %v2817_v60, %v3222_v48  ;;  %v2315_v19 = vrot.slane %v2314_v44, 2  ;;  %v2284_v23 = vrot.slane %v2283_v7, 4 }
 0x32c   : > { %1030 = vperm.xlu1 %2779, %v1007_v13   ;;  %v1849_v20 = vadd.f32 %v1848_v14, %v1847_v8  ;;  %v1881_v35 = vadd.f32 1e-06, %v1880_v22 }
 0x32d   : > { %1022 = vst.msk [vmem:[%s3276_s27] sm:$0x1] %vm1021_vm6, %v1020_v16  ;;  %1449 = vperm.xlu0 %2778, %v1416_v18   ;;  %v2316_v24 = vadd.f32 %v2315_v19, %v2314_v44  ;;  %v2285_v26 = vadd.f32 %v2284_v23, %v2283_v7 }
 0x32e   : > { %v1850_v25 = vrot.slane %v1849_v20, 1 }
 0x32f   : > { %v2317_v28 = vrot.slane %v2316_v24, 1  ;;  %v2286_v30 = vrot.slane %v2285_v26, 2 }
 0x330   : > { %v1851_v33 = vadd.f32 %v1850_v25, %v1849_v20 }
 0x331   : > { %1025 = vperm.xlu0 %2778, %v1006_v38   ;;  %v2318_v48 = vadd.f32 %v2317_v28, %v2316_v24  ;;  %v2287_v32 = vadd.f32 %v2286_v30, %v2285_v26 }
 0x332   : > { %v2819_v31 = vpop.eup %2818  ;;  %v1852_v34 = vadd.f32 1e-06, %v1851_v33 }
 0x333   : > { %v1445_v37 = vmul.f32 %v2819_v31, %v3229_v58  ;;  %v2288_v39 = vrot.slane %v2287_v32, 1  ;;  %v2319_v41 = vadd.f32 1e-06, %v2318_v48  ;;  %v1446_v36 = vmul.f32 %v2819_v31, %v3232_v9 }
 0x334   : > { %2820 = vrcp.f32 %v1852_v34 }
 0x335   : > { %1463 = vperm.xlu1 %2779, %v1445_v37   ;;  %2822 = vrcp.f32 %v1881_v35  ;;  %v2289_v42 = vadd.f32 %v2288_v39, %v2287_v32 }
 0x336   : > { %2824 = vrcp.f32 %v2319_v41 }
 0x337   : > { %v2290_v40 = vadd.f32 1e-06, %v2289_v42 }
 0x339   : > { %1468 = vperm.xlu1 %2779, %v1446_v36   ;;  %2826 = vrcp.f32 %v2290_v40 }
 0x33e   : > { %v2821_v1 = vpop.eup %2820 }
 0x33f   : > { %v1854_v43 = vmul.f32 %v2821_v1, %v1844_v56  ;;  %v2823_v45 = vpop.eup %2822 }
 0x340   : > { %v2825_v46 = vpop.eup %2824  ;;  %v1884_v58 = vmul.f32 %v2823_v45, %v3247_v17  ;;  %v1883_v9 = vmul.f32 %v2823_v45, %v3244_v21 }
 0x341   : > { %1887 = vperm.xlu0 %2778, %v1854_v43   ;;  %v2321_v51 = vmul.f32 %v2825_v46, %v3258_v50  ;;  %v2322_v52 = vmul.f32 %v2825_v46, %v3261_v54 }
 0x343   : > { %v2827_v47 = vpop.eup %2826 }
 0x344   : > { %v2292_v49 = vmul.f32 %v2827_v47, %v2282_v10 }
 0x345   : > { %1906 = vperm.xlu0 %2778, %v1884_v58  }
 0x346   : > { %2325 = vperm.xlu1 %2779, %v2292_v49  }
 0x349   : > { %2339 = vperm.xlu0 %2778, %v2321_v51  }
 0x34a   : > { %1901 = vperm.xlu1 %2779, %v1883_v9  }
 0x34e   : > { %2344 = vperm.xlu1 %2779, %v2322_v52  }
 0x3ab   : > { %v1031_v55 = vpop.permute.xlu1 %1030 }
 0x3ac   : > { %v1450_v53 = vpop.permute.xlu0 %1449  ;;  %v1034_v59 = vmul.f32 %v2828_v57, %v1031_v55 }
 0x3ad   : > { %v1452_v56 = vmul.f32 %v1450_v53, %v3251_v29 }
 0x3ae   : > { %v1036_v2 = vsel %vm614_vm1, %v1034_v59, 0.0 }
 0x3af   : > { %v1453_v17 = vsel %vm614_vm1, %v1452_v56, 0.0 }
 0x3b0   : > { %v1454_v61 = vrot.slane %v1453_v17, 4  ;;  %v1026_v62 = vpop.permute.xlu0 %1025 }
 0x3b1   : > { %v1033_v63 = vmul.f32 %v2829_v27, %v1026_v62 }
 0x3b2   : > { %v1455_v50 = vadd.f32 %v1454_v61, %v1453_v17 }
 0x3b3   : > { %v1035_v21 = vsel %vm614_vm1, %v1033_v63, 0.0 }
 0x3b4   : > { %v1456_v54 = vrot.slane %v1455_v50, 2  ;;  %v1037_v3 = vadd.f32 %v1036_v2, %v1035_v21  ;;  %v1464_v4 = vpop.permute.xlu1 %1463 }
 0x3b5   : > { %v1471_v6 = vmul.f32 %v2829_v27, %v1464_v4 }
 0x3b6   : > { %v1457_v0 = vadd.f32 %v1456_v54, %v1455_v50  ;;  %v1038_v5 = vrot.slane %v1037_v3, 4 }
 0x3b7   : > { %v1473_v13 = vsel %vm614_vm1, %v1471_v6, 0.0 }
 0x3b8   : > { %v1458_v8 = vrot.slane %v1457_v0, 1  ;;  %v1039_v10 = vadd.f32 %v1038_v5, %v1037_v3  ;;  %v1469_v11 = vpop.permute.xlu1 %1468 }
 0x3b9   : > { %v1472_v12 = vmul.f32 %v2828_v57, %v1469_v11 }
 0x3ba   : > { %v1459_v44 = vadd.f32 %v1458_v8, %v1457_v0  ;;  %v1040_v60 = vrot.slane %v1039_v10, 2 }
 0x3bb   : > { %v1474_v14 = vsel %vm614_vm1, %v1472_v12, 0.0 }
 0x3bc   : > { %1460 = vst.msk [vmem:[%s3276_s27 + $0x1] sm:$0x1] %vm1021_vm6, %v1459_v44  ;;  %v1041_v15 = vadd.f32 %v1040_v60, %v1039_v10  ;;  %v1475_v16 = vadd.f32 %v1474_v14, %v1473_v13 }
 0x3be   : > { %v1042_v18 = vrot.slane %v1041_v15, 1  ;;  %v1476_v7 = vrot.slane %v1475_v16, 4 }
 0x3c0   : > { %v1043_v19 = vadd.f32 %v1042_v18, %v1041_v15  ;;  %v1477_v20 = vadd.f32 %v1476_v7, %v1475_v16  ;;  %v1888_v23 = vpop.permute.xlu0 %1887 }
 0x3c1   : > { %v1890_v24 = vmul.f32 %v1888_v23, %v3251_v29 }
 0x3c2   : > { %1044 = vst.msk [vmem:[%s3305_s28] sm:$0x1] %vm1021_vm6, %v1043_v19  ;;  %v1478_v25 = vrot.slane %v1477_v20, 2 }
 0x3c3   : > { %v1891_v22 = vsel %vm614_vm1, %v1890_v24, 0.0 }
 0x3c4   : > { %v1479_v26 = vadd.f32 %v1478_v25, %v1477_v20  ;;  %v1892_v38 = vrot.slane %v1891_v22, 4  ;;  %v1907_v28 = vpop.permute.xlu0 %1906 }
 0x3c5   : > { %v2326_v48 = vpop.permute.xlu1 %2325  ;;  %v1910_v32 = vmul.f32 %v2828_v57, %v1907_v28 }
 0x3c6   : > { %v1480_v33 = vrot.slane %v1479_v26, 1  ;;  %v1893_v30 = vadd.f32 %v1892_v38, %v1891_v22  ;;  %v2328_v31 = vmul.f32 %v2326_v48, %v3251_v29 }
 0x3c7   : > { %v1912_v45 = vsel %vm614_vm1, %v1910_v32, 0.0 }
 0x3c8   : > { %v1481_v34 = vadd.f32 %v1480_v33, %v1479_v26  ;;  %v1894_v35 = vrot.slane %v1893_v30, 2  ;;  %v2329_v37 = vsel %vm614_vm1, %v2328_v31, 0.0  ;;  %v2340_v42 = vpop.permute.xlu0 %2339 }
 0x3c9   : > { %v2330_v41 = vrot.slane %v2329_v37, 4  ;;  %v1902_v36 = vpop.permute.xlu1 %1901  ;;  %v2347_v46 = vmul.f32 %v2829_v27, %v2340_v42 }
 0x3ca   : > { %1482 = vst.msk [vmem:[%s3305_s28 + $0x1] sm:$0x1] %vm1021_vm6, %v1481_v34  ;;  %v1895_v39 = vadd.f32 %v1894_v35, %v1893_v30  ;;  %v1909_v40 = vmul.f32 %v2829_v27, %v1902_v36 }
 0x3cb   : > { %v2331_v43 = vadd.f32 %v2330_v41, %v2329_v37  ;;  %v2349_v55 = vsel %vm614_vm1, %v2347_v46, 0.0 }
 0x3cc   : > { %v1896_v1 = vrot.slane %v1895_v39, 1  ;;  %v1911_v29 = vsel %vm614_vm1, %v1909_v40, 0.0 }
 0x3cd   : > { %v2332_v47 = vrot.slane %v2331_v43, 2  ;;  %v1913_v49 = vadd.f32 %v1912_v45, %v1911_v29  ;;  %v2345_v51 = vpop.permute.xlu1 %2344 }
 0x3ce   : > { %v1897_v58 = vadd.f32 %v1896_v1, %v1895_v39  ;;  %v2348_v9 = vmul.f32 %v2828_v57, %v2345_v51 }
 0x3cf   : > { %v2333_v52 = vadd.f32 %v2332_v47, %v2331_v43  ;;  %v1914_v53 = vrot.slane %v1913_v49, 4 }
 0x3d0   : > { %1898 = vst.msk [vmem:[%s3276_s27 + $0x2] sm:$0x1] %vm1021_vm6, %v1897_v58  ;;  %v2350_v56 = vsel %vm614_vm1, %v2348_v9, 0.0 }
 0x3d1   : > { %v2334_v17 = vrot.slane %v2333_v52, 1  ;;  %v1915_v59 = vadd.f32 %v1914_v53, %v1913_v49  ;;  %v2351_v61 = vadd.f32 %v2350_v56, %v2349_v55 }
 0x3d3   : > { %v2335_v62 = vadd.f32 %v2334_v17, %v2333_v52  ;;  %v1916_v27 = vrot.slane %v1915_v59, 2  ;;  %v2352_v63 = vrot.slane %v2351_v61, 4 }
 0x3d5   : > { %2336 = vst.msk [vmem:[%s3276_s27 + $0x3] sm:$0x1] %vm1021_vm6, %v2335_v62  ;;  %v1917_v50 = vadd.f32 %v1916_v27, %v1915_v59  ;;  %v2353_v57 = vadd.f32 %v2352_v63, %v2351_v61 }
 0x3d7   : > { %v1918_v2 = vrot.slane %v1917_v50, 1  ;;  %v2354_v21 = vrot.slane %v2353_v57, 2 }
 0x3d9   : > { %v1919_v54 = vadd.f32 %v1918_v2, %v1917_v50  ;;  %v2355_v3 = vadd.f32 %v2354_v21, %v2353_v57 }
 0x3db   : > { %1920 = vst.msk [vmem:[%s3305_s28 + $0x2] sm:$0x1] %vm1021_vm6, %v1919_v54  ;;  %v2356_v4 = vrot.slane %v2355_v3, 1 }
 0x3dd   : > { %v2357_v0 = vadd.f32 %v2356_v4, %v2355_v3 }
 0x3df   : > { %2358 = vst.msk [vmem:[%s3305_s28 + $0x3] sm:$0x1] %vm1021_vm6, %v2357_v0 }
 0x3e0 PF: > { %s25_s29 = sadd.s32 1, %s2836_s29  }
 0x3e1   : > { %p22_p4 = scmp.ge.s32.totalorder %s25_s29, 4  }
 0x3e3   :  { %24 = sbr.rel (!%p22_p4) target bundleno = 1 (0x1), region = 168 }

</bundles_post_ra>
